<compile_context>
chip_gen: v6e
topology: v6e:2x2x1
jax: 0.10.0
libtpu: 0.0.40
codegen_flags: <defaults>
</compile_context>

<pallas_src>
import math

import jax
import jax.numpy as jnp
import numpy as np
from jax import lax
from jax.experimental import pallas as pl
from jax.experimental.pallas import tpu as pltpu

LANE = 128
_EPS = 1e-5  # ScaleNorm clamp


def _round_up(n, m):
    return ((n + m - 1) // m) * m


def _pad2d(a, rows, cols):
    r, c = a.shape
    return jnp.pad(a, ((0, rows - r), (0, cols - c)))


# ------------------------------ fused kernel -------------------------------- #

def _build_kernel(num_layers, nb, seq, num_heads):
    """Kernel processing `nb` batch elements (nb*seq activation rows) per grid step."""
    HS = num_heads * LANE

    def kernel(x_ref, peb_ref, ew_ref, wqkv_ref, wo_ref, bo_ref,
               w1_ref, b1_ref, w2_ref, b2_ref, o_ref):
        f32, bf16 = jnp.float32, jnp.bfloat16

        # --- embed Linear + (embed bias + positional encoding, pre-folded) ---
        h = (jnp.dot(x_ref[...], ew_ref[...], preferred_element_type=f32)
             + peb_ref[...])                                     # (nb*seq, Hp) f32

        for l in range(num_layers):
            # ===== Sublayer 1: ScaleNorm (g1 folded into Wqkv) + MHA + residual =====
            ss = jnp.sum(h * h, axis=-1, keepdims=True)
            xn = (h * lax.rsqrt(jnp.maximum(ss, _EPS * _EPS))).astype(bf16)
            # fused Q/K/V projection; each head owns a full 128-lane slot.
            qkv = jnp.dot(xn, wqkv_ref[l], preferred_element_type=f32)  # (nb*seq, 3*HS)
            q = qkv[:, 0:HS]          # qscale (1/sqrt(dh)) already folded into weights
            k = qkv[:, HS:2 * HS]
            v = qkv[:, 2 * HS:3 * HS]

            rows = []
            for b in range(nb):                      # attention is per batch element
                r0 = b * seq
                cols = []
                for hd in range(num_heads):          # 128-aligned whole-vreg slices
                    c0 = hd * LANE
                    qh = q[r0:r0 + seq, c0:c0 + LANE]
                    kh = k[r0:r0 + seq, c0:c0 + LANE]
                    vh = v[r0:r0 + seq, c0:c0 + LANE]
                    s = lax.dot_general(qh, kh, (((1,), (1,)), ((), ())),
                                        preferred_element_type=f32)   # (seq, seq)
                    s = s - jnp.max(s, axis=-1, keepdims=True)
                    p = jnp.exp(s)
                    # approx reciprocal: EUP, ~1e-3 rel. err, within test tolerance.
                    p = p * pl.reciprocal(jnp.sum(p, axis=-1, keepdims=True),
                                          approx=True)
                    cols.append(jnp.dot(p, vh, preferred_element_type=f32))
                rows.append(jnp.concatenate(cols, axis=-1))       # (seq, HS)
            attn = jnp.concatenate(rows, axis=0).astype(bf16)     # (nb*seq, HS)
            # single fused out-projection over all heads
            h = jnp.dot(attn, wo_ref[l], preferred_element_type=f32) + bo_ref[l] + h

            # ===== Sublayer 2: ScaleNorm (g2 folded into W1) + PositionwiseFF + res =====
            ss = jnp.sum(h * h, axis=-1, keepdims=True)
            xn = (h * lax.rsqrt(jnp.maximum(ss, _EPS * _EPS))).astype(bf16)
            mid = jnp.maximum(
                jnp.dot(xn, w1_ref[l], preferred_element_type=f32) + b1_ref[l], 0.0)
            h = (jnp.dot(mid.astype(bf16), w2_ref[l], preferred_element_type=f32)
                 + b2_ref[l] + h)

        # --- fused epilogue: per-batch mean over the sequence dimension ---
        for b in range(nb):
            o_ref[b] = jnp.mean(h[b * seq:(b + 1) * seq], axis=0, keepdims=True)

    return kernel


def _forward_impl(x, packed, *, hidden, batch_per_step=None):
    B, S, F = x.shape
    Fp, Hp = packed["embed_w"].shape
    L = packed["Wqkv"].shape[0]
    NH = packed["Wqkv"].shape[2] // (3 * LANE)
    HS = NH * LANE
    Ip = packed["W1"].shape[2]

    NB = B if batch_per_step is None else batch_per_step
    assert B % NB == 0, (B, NB)
    G = B // NB

    # input: pad feature dim to lanes, flatten batch*seq, pre-cast to bf16.
    x2d = jnp.pad(x, ((0, 0), (0, 0), (0, Fp - F))).reshape(B * S, Fp).astype(jnp.bfloat16)
    # embed bias + positional encoding pre-added into one constant, tiled per grid step.
    peb = jnp.tile(packed["pe"][:S] + packed["embed_b"], (NB, 1))     # (NB*S, Hp) f32

    def const(shape):
        n = len(shape)
        return pl.BlockSpec(shape, lambda g, _n=n: (0,) * _n)

    kernel = _build_kernel(L, NB, S, NH)

    # Advisory cost estimate so XLA can schedule around the custom call.
    weight_bytes = sum(int(np.prod(packed[k].shape)) * packed[k].dtype.itemsize
                       for k in ("embed_w", "Wqkv", "Wo", "bo", "W1", "b1", "W2", "b2"))
    flops = (2 * B * S * Fp * Hp
             + L * (2 * B * S * Hp * 3 * HS          # fused QKV
                    + 4 * B * NH * S * S * LANE      # scores + p@v
                    + 2 * B * S * HS * Hp            # fused out-projection
                    + 4 * B * S * Hp * Ip))          # FF
    cost = pl.CostEstimate(
        flops=int(flops),
        transcendentals=int(L * B * (NH * S * S + 4 * S)),
        bytes_accessed=int(x2d.size * x2d.dtype.itemsize
                           + G * peb.size * peb.dtype.itemsize
                           + weight_bytes + B * Hp * 4))

    out = pl.pallas_call(
        kernel,
        out_shape=jax.ShapeDtypeStruct((B, 1, Hp), jnp.float32),
        grid=(G,),
        in_specs=[
            pl.BlockSpec((NB * S, Fp), lambda g: (g, 0)),   # x (bf16)
            const((NB * S, Hp)),                            # pe + embed_b (f32)
            const((Fp, Hp)),                                # embed_w (bf16)
            const((L, Hp, 3 * HS)),                         # fused Wqkv, head-slot layout (bf16)
            const((L, HS, Hp)),                             # Wo, head-slot layout (bf16)
            const((L, 1, Hp)),                              # bo (f32)
            const((L, Hp, Ip)),                             # W1 (g2 folded, bf16)
            const((L, 1, Ip)),                              # b1 (f32)
            const((L, Ip, Hp)),                             # W2 (bf16)
            const((L, 1, Hp)),                              # b2 (f32)
        ],
        out_specs=pl.BlockSpec((NB, 1, Hp), lambda g: (g, 0, 0)),
        compiler_params=pltpu.CompilerParams(
            dimension_semantics=("parallel",)),
        cost_estimate=cost,
    )(x2d, peb, packed["embed_w"], packed["Wqkv"], packed["Wo"], packed["bo"],
      packed["W1"], packed["b1"], packed["W2"], packed["b2"])

    return out.reshape(B, Hp)[:, :hidden]


transformer_sequence_encoder = jax.jit(
    _forward_impl, static_argnames=("hidden", "batch_per_step"))


# ------------------------------- parameters --------------------------------- #

def _xavier_normal(key, shape, gain):
    fan_in, fan_out = shape
    std = gain * math.sqrt(2.0 / (fan_in + fan_out))
    return std * jax.random.normal(key, shape, dtype=jnp.float32)


def _sinusoidal_pe(max_len, dim):
    pos = jnp.arange(max_len, dtype=jnp.float32)[:, None]
    div = jnp.exp(jnp.arange(0, dim, 2, dtype=jnp.float32) * (-math.log(10000.0) / dim))
    pe = jnp.zeros((max_len, dim), jnp.float32)
    pe = pe.at[:, 0::2].set(jnp.sin(pos * div))
    pe = pe.at[:, 1::2].set(jnp.cos(pos * div))
    return pe


def init_params(key, input_size, hidden, num_heads, inner, num_layers, max_len):
    """Logical (unpadded) parameters, matching the PyTorch module init."""
    gain = (2.5 * hidden) ** (-0.5)
    keys = jax.random.split(key, 1 + 6 * num_layers)
    params = {
        "embed_w": _xavier_normal(keys[0], (input_size, hidden), gain),
        "embed_b": jnp.zeros((hidden,), jnp.float32),
        "pe": _sinusoidal_pe(max_len, hidden),
        "layers": [],
    }
    idx = 1
    for _ in range(num_layers):
        lp = {
            "num_heads": num_heads,
            "Wq": _xavier_normal(keys[idx + 0], (hidden, hidden), gain),
            "Wk": _xavier_normal(keys[idx + 1], (hidden, hidden), gain),
            "Wv": _xavier_normal(keys[idx + 2], (hidden, hidden), gain),
            "Wo": _xavier_normal(keys[idx + 3], (hidden, hidden), gain),
            "bo": jnp.zeros((hidden,), jnp.float32),
            "g1": jnp.float32(math.sqrt(hidden)),   # ScaleNorm scale init
            "g2": jnp.float32(math.sqrt(hidden)),
            "W1": _xavier_normal(keys[idx + 4], (hidden, inner), gain),
            "b1": jnp.zeros((inner,), jnp.float32),
            "W2": _xavier_normal(keys[idx + 5], (inner, hidden), gain),
            "b2": jnp.zeros((hidden,), jnp.float32),
        }
        idx += 6
        params["layers"].append(lp)
    return params


def pack_params(params, lane=LANE):
    """Pad to lane width, re-layout heads onto 128-lane slots, fold scalars, cast bf16.

    Pad rows/cols are exactly zero, so pad lanes of the activations stay zero through
    embed, ScaleNorm, attention, FF and residuals; ScaleNorm and the mean are unaffected.
    """
    F, H = params["embed_w"].shape
    inner = params["layers"][0]["W1"].shape[1]
    layers = params["layers"]
    L = len(layers)
    nh = layers[0]["num_heads"]
    dh = H // nh
    qscale = 1.0 / math.sqrt(dh)
    Fp, Hp, Ip = _round_up(F, lane), _round_up(H, lane), _round_up(inner, lane)
    HS = nh * lane
    bf16 = jnp.bfloat16

    def pad_row(v, cols):
        return _pad2d(v.reshape(1, -1), 1, cols)

    def head_cols(w, scale):
        # (H, H) projection: place head hd's dh output columns at lane offset hd*lane.
        out = jnp.zeros((Hp, HS), jnp.float32)
        for hd in range(nh):
            out = out.at[:H, hd * lane:hd * lane + dh].set(scale * w[:, hd * dh:(hd + 1) * dh])
        return out

    def head_rows(w):
        # (H, H) out-projection: place head hd's dh input rows at row offset hd*lane.
        out = jnp.zeros((HS, Hp), jnp.float32)
        for hd in range(nh):
            out = out.at[hd * lane:hd * lane + dh, :H].set(w[hd * dh:(hd + 1) * dh, :])
        return out

    packed = {
        "embed_w": _pad2d(params["embed_w"], Fp, Hp).astype(bf16),
        "embed_b": pad_row(params["embed_b"], Hp),                      # f32
        "pe": _pad2d(params["pe"], params["pe"].shape[0], Hp),          # f32
        # g1 (ScaleNorm) and 1/sqrt(dh) folded into the fused QKV weights.
        "Wqkv": jnp.stack([
            jnp.concatenate([head_cols(lp["Wq"], lp["g1"] * qscale),
                             head_cols(lp["Wk"], lp["g1"]),
                             head_cols(lp["Wv"], lp["g1"])], axis=1)
            for lp in layers]).astype(bf16),
        "Wo": jnp.stack([head_rows(lp["Wo"]) for lp in layers]).astype(bf16),
        "bo": jnp.stack([pad_row(lp["bo"], Hp) for lp in layers]),      # f32
        # g2 (ScaleNorm) folded into W1.
        "W1": jnp.stack([_pad2d(lp["W1"], Hp, Ip) * lp["g2"] for lp in layers]).astype(bf16),
        "b1": jnp.stack([pad_row(lp["b1"], Ip) for lp in layers]),      # f32
        "W2": jnp.stack([_pad2d(lp["W2"], Ip, Hp) for lp in layers]).astype(bf16),
        "b2": jnp.stack([pad_row(lp["b2"], Hp) for lp in layers]),      # f32
    }
    return packed


# --------------------------- pure-JAX reference ----------------------------- #

def reference_forward(x, params):
    def sn(t, g):
        n = jnp.maximum(jnp.sqrt(jnp.sum(t * t, axis=-1, keepdims=True)), _EPS)
        return t * (g / n)

    B, S, _ = x.shape
    H = params["embed_w"].shape[1]
    h = x @ params["embed_w"] + params["embed_b"]
    h = h + params["pe"][:S][None]
    for lp in params["layers"]:
        nh = lp["num_heads"]
        dh = H // nh
        xn = sn(h, lp["g1"])
        q = (xn @ lp["Wq"]).reshape(B, S, nh, dh).transpose(0, 2, 1, 3)
        k = (xn @ lp["Wk"]).reshape(B, S, nh, dh).transpose(0, 2, 1, 3)
        v = (xn @ lp["Wv"]).reshape(B, S, nh, dh).transpose(0, 2, 1, 3)
        s = jnp.einsum("bhqd,bhkd->bhqk", q, k) / math.sqrt(dh)
        p = jax.nn.softmax(s, axis=-1)
        o = jnp.einsum("bhqk,bhkd->bhqd", p, v).transpose(0, 2, 1, 3).reshape(B, S, H)
        h = o @ lp["Wo"] + lp["bo"] + h
        xn = sn(h, lp["g2"])
        ff = jnp.maximum(xn @ lp["W1"] + lp["b1"], 0.0) @ lp["W2"] + lp["b2"]
        h = ff + h
    return h.mean(axis=1)


# ---------------------------------- main ------------------------------------ #

if __name__ == "__main__":
    B, S = 2, 8
    INPUT_SIZE, HIDDEN, NUM_HEADS, INNER, NUM_LAYERS, MAX_LEN = 64, 40, 5, 64, 2, 512

    key = jax.random.PRNGKey(0)
    kx, kp = jax.random.split(key)
    x = jax.random.normal(kx, (B, S, INPUT_SIZE), dtype=jnp.float32)
    params = init_params(kp, INPUT_SIZE, HIDDEN, NUM_HEADS, INNER, NUM_LAYERS, MAX_LEN)
    packed = pack_params(params)

    # Default: whole batch in one grid step (best on single-TC v5e/v6e).
    # On v7x with larger workloads, pass batch_per_step=1 to shard B over both TCs.
    out = transformer_sequence_encoder(x, packed, hidden=HIDDEN)
    out = jax.block_until_ready(out)
    assert out.shape == (B, HIDDEN), out.shape

    ref = jax.block_until_ready(reference_forward(x, params))
    np.testing.assert_allclose(np.asarray(out), np.asarray(ref), rtol=5e-2, atol=5e-2)

    print("KERNEL_OK")
</pallas_src>

<mosaic_0001>
module attributes {stable_mosaic.version = 11 : i64} {
  func.func @kernel(%arg0: i32, %arg1: memref<16x128xbf16, #tpu.memory_space<vmem>>, %arg2: memref<16x128xf32, #tpu.memory_space<vmem>>, %arg3: memref<128x128xbf16, #tpu.memory_space<vmem>>, %arg4: memref<2x128x1920xbf16, #tpu.memory_space<vmem>>, %arg5: memref<2x640x128xbf16, #tpu.memory_space<vmem>>, %arg6: memref<2x1x128xf32, #tpu.memory_space<vmem>>, %arg7: memref<2x128x128xbf16, #tpu.memory_space<vmem>>, %arg8: memref<2x1x128xf32, #tpu.memory_space<vmem>>, %arg9: memref<2x128x128xbf16, #tpu.memory_space<vmem>>, %arg10: memref<2x1x128xf32, #tpu.memory_space<vmem>>, %arg11: memref<2x1x128xf32, #tpu.memory_space<vmem>>) attributes {dimension_semantics = [#tpu.dimension_semantics<parallel>], iteration_bounds = array<i64: 1>, scalar_prefetch = 0 : i64, scratch_operands = 0 : i64, tpu.core_type = #tpu.core_type<tc>, window_params = [{transform_indices = @transform_0, window_bounds = array<i64: 16, 128>}, {pipeline_mode = #tpu.pipeline_mode<synchronous>, transform_indices = @transform_1, window_bounds = array<i64: 16, 128>}, {pipeline_mode = #tpu.pipeline_mode<synchronous>, transform_indices = @transform_2, window_bounds = array<i64: 128, 128>}, {pipeline_mode = #tpu.pipeline_mode<synchronous>, transform_indices = @transform_3, window_bounds = array<i64: 2, 128, 1920>}, {pipeline_mode = #tpu.pipeline_mode<synchronous>, transform_indices = @transform_4, window_bounds = array<i64: 2, 640, 128>}, {pipeline_mode = #tpu.pipeline_mode<synchronous>, transform_indices = @transform_5, window_bounds = array<i64: 2, 1, 128>}, {pipeline_mode = #tpu.pipeline_mode<synchronous>, transform_indices = @transform_6, window_bounds = array<i64: 2, 128, 128>}, {pipeline_mode = #tpu.pipeline_mode<synchronous>, transform_indices = @transform_7, window_bounds = array<i64: 2, 1, 128>}, {pipeline_mode = #tpu.pipeline_mode<synchronous>, transform_indices = @transform_8, window_bounds = array<i64: 2, 128, 128>}, {pipeline_mode = #tpu.pipeline_mode<synchronous>, transform_indices = @transform_9, window_bounds = array<i64: 2, 1, 128>}, {transform_indices = @transform_10, window_bounds = array<i64: 2, 1, 128>}]} {
    %c0 = arith.constant 0 : index
    %c0_0 = arith.constant 0 : index
    %0 = vector.load %arg1[%c0, %c0_0] : memref<16x128xbf16, #tpu.memory_space<vmem>>, vector<16x128xbf16>
    %c0_1 = arith.constant 0 : index
    %c0_2 = arith.constant 0 : index
    %1 = vector.load %arg3[%c0_1, %c0_2] : memref<128x128xbf16, #tpu.memory_space<vmem>>, vector<128x128xbf16>
    %cst = arith.constant dense<0.000000e+00> : vector<16x128xf32>
    %2 = tpu.matmul %0, %1, %cst {dimension_numbers = #tpu.dot_dimension_numbers<[1], [0], [0], [1], [0, 0, 1, 1], [], []>} : vector<16x128xbf16>, vector<128x128xbf16>, vector<16x128xf32> -> vector<16x128xf32>
    %c0_3 = arith.constant 0 : index
    %c0_4 = arith.constant 0 : index
    %3 = vector.load %arg2[%c0_3, %c0_4] : memref<16x128xf32, #tpu.memory_space<vmem>>, vector<16x128xf32>
    %4 = arith.addf %2, %3 : vector<16x128xf32>
    %5 = arith.mulf %4, %4 : vector<16x128xf32>
    %cst_5 = arith.constant dense<0.000000e+00> : vector<16xf32>
    %6 = vector.multi_reduction <add>, %5, %cst_5 [1] : vector<16x128xf32> to vector<16xf32>
    %7 = vector.shape_cast %6 : vector<16xf32> to vector<16x1xf32>
    %cst_6 = arith.constant 1.000000e-10 : f32
    %8 = vector.broadcast %cst_6 : f32 to vector<16x1xf32>
    %9 = arith.maximumf %7, %8 : vector<16x1xf32>
    %10 = math.rsqrt %9 : vector<16x1xf32>
    %11 = vector.broadcast %10 : vector<16x1xf32> to vector<16x128xf32>
    %12 = arith.mulf %4, %11 : vector<16x128xf32>
    %13 = arith.truncf %12 : vector<16x128xf32> to vector<16x128xbf16>
    %c0_7 = arith.constant 0 : index
    %c0_8 = arith.constant 0 : index
    %c0_9 = arith.constant 0 : index
    %14 = vector.load %arg4[%c0_7, %c0_8, %c0_9] : memref<2x128x1920xbf16, #tpu.memory_space<vmem>>, vector<1x128x1920xbf16>
    %15 = vector.shape_cast %14 : vector<1x128x1920xbf16> to vector<128x1920xbf16>
    %cst_10 = arith.constant dense<0.000000e+00> : vector<16x1920xf32>
    %16 = tpu.matmul %13, %15, %cst_10 {dimension_numbers = #tpu.dot_dimension_numbers<[1], [0], [0], [1], [0, 0, 1, 1], [], []>} : vector<16x128xbf16>, vector<128x1920xbf16>, vector<16x1920xf32> -> vector<16x1920xf32>
    %17 = vector.extract_strided_slice %16 {offsets = [0, 0], sizes = [16, 640], strides = [1, 1]} : vector<16x1920xf32> to vector<16x640xf32>
    %18 = vector.extract_strided_slice %16 {offsets = [0, 640], sizes = [16, 640], strides = [1, 1]} : vector<16x1920xf32> to vector<16x640xf32>
    %19 = vector.extract_strided_slice %16 {offsets = [0, 1280], sizes = [16, 640], strides = [1, 1]} : vector<16x1920xf32> to vector<16x640xf32>
    %20 = vector.extract_strided_slice %17 {offsets = [0, 0], sizes = [8, 128], strides = [1, 1]} : vector<16x640xf32> to vector<8x128xf32>
    %21 = vector.extract_strided_slice %18 {offsets = [0, 0], sizes = [8, 128], strides = [1, 1]} : vector<16x640xf32> to vector<8x128xf32>
    %22 = vector.extract_strided_slice %19 {offsets = [0, 0], sizes = [8, 128], strides = [1, 1]} : vector<16x640xf32> to vector<8x128xf32>
    %cst_11 = arith.constant dense<0.000000e+00> : vector<8x8xf32>
    %23 = tpu.matmul %20, %21, %cst_11 {dimension_numbers = #tpu.dot_dimension_numbers<[1], [1], [0], [0], [0, 0, 1, 0], [], []>} : vector<8x128xf32>, vector<8x128xf32>, vector<8x8xf32> -> vector<8x8xf32>
    %cst_12 = arith.constant dense<0xFF800000> : vector<8xf32>
    %24 = vector.multi_reduction <maximumf>, %23, %cst_12 [1] : vector<8x8xf32> to vector<8xf32>
    %25 = vector.shape_cast %24 : vector<8xf32> to vector<8x1xf32>
    %26 = vector.broadcast %25 : vector<8x1xf32> to vector<8x8xf32>
    %27 = arith.subf %23, %26 : vector<8x8xf32>
    %28 = math.exp %27 : vector<8x8xf32>
    %cst_13 = arith.constant dense<0.000000e+00> : vector<8xf32>
    %29 = vector.multi_reduction <add>, %28, %cst_13 [1] : vector<8x8xf32> to vector<8xf32>
    %30 = vector.shape_cast %29 : vector<8xf32> to vector<8x1xf32>
    %31 = tpu.reciprocal %30 {approx = true} : vector<8x1xf32> -> vector<8x1xf32>
    %32 = vector.broadcast %31 : vector<8x1xf32> to vector<8x8xf32>
    %33 = arith.mulf %28, %32 : vector<8x8xf32>
    %cst_14 = arith.constant dense<0.000000e+00> : vector<8x128xf32>
    %34 = tpu.matmul %33, %22, %cst_14 {dimension_numbers = #tpu.dot_dimension_numbers<[1], [0], [0], [1], [0, 0, 1, 1], [], []>} : vector<8x8xf32>, vector<8x128xf32>, vector<8x128xf32> -> vector<8x128xf32>
    %35 = vector.extract_strided_slice %17 {offsets = [0, 128], sizes = [8, 128], strides = [1, 1]} : vector<16x640xf32> to vector<8x128xf32>
    %36 = vector.extract_strided_slice %18 {offsets = [0, 128], sizes = [8, 128], strides = [1, 1]} : vector<16x640xf32> to vector<8x128xf32>
    %37 = vector.extract_strided_slice %19 {offsets = [0, 128], sizes = [8, 128], strides = [1, 1]} : vector<16x640xf32> to vector<8x128xf32>
    %cst_15 = arith.constant dense<0.000000e+00> : vector<8x8xf32>
    %38 = tpu.matmul %35, %36, %cst_15 {dimension_numbers = #tpu.dot_dimension_numbers<[1], [1], [0], [0], [0, 0, 1, 0], [], []>} : vector<8x128xf32>, vector<8x128xf32>, vector<8x8xf32> -> vector<8x8xf32>
    %cst_16 = arith.constant dense<0xFF800000> : vector<8xf32>
    %39 = vector.multi_reduction <maximumf>, %38, %cst_16 [1] : vector<8x8xf32> to vector<8xf32>
    %40 = vector.shape_cast %39 : vector<8xf32> to vector<8x1xf32>
    %41 = vector.broadcast %40 : vector<8x1xf32> to vector<8x8xf32>
    %42 = arith.subf %38, %41 : vector<8x8xf32>
    %43 = math.exp %42 : vector<8x8xf32>
    %cst_17 = arith.constant dense<0.000000e+00> : vector<8xf32>
    %44 = vector.multi_reduction <add>, %43, %cst_17 [1] : vector<8x8xf32> to vector<8xf32>
    %45 = vector.shape_cast %44 : vector<8xf32> to vector<8x1xf32>
    %46 = tpu.reciprocal %45 {approx = true} : vector<8x1xf32> -> vector<8x1xf32>
    %47 = vector.broadcast %46 : vector<8x1xf32> to vector<8x8xf32>
    %48 = arith.mulf %43, %47 : vector<8x8xf32>
    %cst_18 = arith.constant dense<0.000000e+00> : vector<8x128xf32>
    %49 = tpu.matmul %48, %37, %cst_18 {dimension_numbers = #tpu.dot_dimension_numbers<[1], [0], [0], [1], [0, 0, 1, 1], [], []>} : vector<8x8xf32>, vector<8x128xf32>, vector<8x128xf32> -> vector<8x128xf32>
    %50 = vector.extract_strided_slice %17 {offsets = [0, 256], sizes = [8, 128], strides = [1, 1]} : vector<16x640xf32> to vector<8x128xf32>
    %51 = vector.extract_strided_slice %18 {offsets = [0, 256], sizes = [8, 128], strides = [1, 1]} : vector<16x640xf32> to vector<8x128xf32>
    %52 = vector.extract_strided_slice %19 {offsets = [0, 256], sizes = [8, 128], strides = [1, 1]} : vector<16x640xf32> to vector<8x128xf32>
    %cst_19 = arith.constant dense<0.000000e+00> : vector<8x8xf32>
    %53 = tpu.matmul %50, %51, %cst_19 {dimension_numbers = #tpu.dot_dimension_numbers<[1], [1], [0], [0], [0, 0, 1, 0], [], []>} : vector<8x128xf32>, vector<8x128xf32>, vector<8x8xf32> -> vector<8x8xf32>
    %cst_20 = arith.constant dense<0xFF800000> : vector<8xf32>
    %54 = vector.multi_reduction <maximumf>, %53, %cst_20 [1] : vector<8x8xf32> to vector<8xf32>
    %55 = vector.shape_cast %54 : vector<8xf32> to vector<8x1xf32>
    %56 = vector.broadcast %55 : vector<8x1xf32> to vector<8x8xf32>
    %57 = arith.subf %53, %56 : vector<8x8xf32>
    %58 = math.exp %57 : vector<8x8xf32>
    %cst_21 = arith.constant dense<0.000000e+00> : vector<8xf32>
    %59 = vector.multi_reduction <add>, %58, %cst_21 [1] : vector<8x8xf32> to vector<8xf32>
    %60 = vector.shape_cast %59 : vector<8xf32> to vector<8x1xf32>
    %61 = tpu.reciprocal %60 {approx = true} : vector<8x1xf32> -> vector<8x1xf32>
    %62 = vector.broadcast %61 : vector<8x1xf32> to vector<8x8xf32>
    %63 = arith.mulf %58, %62 : vector<8x8xf32>
    %cst_22 = arith.constant dense<0.000000e+00> : vector<8x128xf32>
    %64 = tpu.matmul %63, %52, %cst_22 {dimension_numbers = #tpu.dot_dimension_numbers<[1], [0], [0], [1], [0, 0, 1, 1], [], []>} : vector<8x8xf32>, vector<8x128xf32>, vector<8x128xf32> -> vector<8x128xf32>
    %65 = vector.extract_strided_slice %17 {offsets = [0, 384], sizes = [8, 128], strides = [1, 1]} : vector<16x640xf32> to vector<8x128xf32>
    %66 = vector.extract_strided_slice %18 {offsets = [0, 384], sizes = [8, 128], strides = [1, 1]} : vector<16x640xf32> to vector<8x128xf32>
    %67 = vector.extract_strided_slice %19 {offsets = [0, 384], sizes = [8, 128], strides = [1, 1]} : vector<16x640xf32> to vector<8x128xf32>
    %cst_23 = arith.constant dense<0.000000e+00> : vector<8x8xf32>
    %68 = tpu.matmul %65, %66, %cst_23 {dimension_numbers = #tpu.dot_dimension_numbers<[1], [1], [0], [0], [0, 0, 1, 0], [], []>} : vector<8x128xf32>, vector<8x128xf32>, vector<8x8xf32> -> vector<8x8xf32>
    %cst_24 = arith.constant dense<0xFF800000> : vector<8xf32>
    %69 = vector.multi_reduction <maximumf>, %68, %cst_24 [1] : vector<8x8xf32> to vector<8xf32>
    %70 = vector.shape_cast %69 : vector<8xf32> to vector<8x1xf32>
    %71 = vector.broadcast %70 : vector<8x1xf32> to vector<8x8xf32>
    %72 = arith.subf %68, %71 : vector<8x8xf32>
    %73 = math.exp %72 : vector<8x8xf32>
    %cst_25 = arith.constant dense<0.000000e+00> : vector<8xf32>
    %74 = vector.multi_reduction <add>, %73, %cst_25 [1] : vector<8x8xf32> to vector<8xf32>
    %75 = vector.shape_cast %74 : vector<8xf32> to vector<8x1xf32>
    %76 = tpu.reciprocal %75 {approx = true} : vector<8x1xf32> -> vector<8x1xf32>
    %77 = vector.broadcast %76 : vector<8x1xf32> to vector<8x8xf32>
    %78 = arith.mulf %73, %77 : vector<8x8xf32>
    %cst_26 = arith.constant dense<0.000000e+00> : vector<8x128xf32>
    %79 = tpu.matmul %78, %67, %cst_26 {dimension_numbers = #tpu.dot_dimension_numbers<[1], [0], [0], [1], [0, 0, 1, 1], [], []>} : vector<8x8xf32>, vector<8x128xf32>, vector<8x128xf32> -> vector<8x128xf32>
    %80 = vector.extract_strided_slice %17 {offsets = [0, 512], sizes = [8, 128], strides = [1, 1]} : vector<16x640xf32> to vector<8x128xf32>
    %81 = vector.extract_strided_slice %18 {offsets = [0, 512], sizes = [8, 128], strides = [1, 1]} : vector<16x640xf32> to vector<8x128xf32>
    %82 = vector.extract_strided_slice %19 {offsets = [0, 512], sizes = [8, 128], strides = [1, 1]} : vector<16x640xf32> to vector<8x128xf32>
    %cst_27 = arith.constant dense<0.000000e+00> : vector<8x8xf32>
    %83 = tpu.matmul %80, %81, %cst_27 {dimension_numbers = #tpu.dot_dimension_numbers<[1], [1], [0], [0], [0, 0, 1, 0], [], []>} : vector<8x128xf32>, vector<8x128xf32>, vector<8x8xf32> -> vector<8x8xf32>
    %cst_28 = arith.constant dense<0xFF800000> : vector<8xf32>
    %84 = vector.multi_reduction <maximumf>, %83, %cst_28 [1] : vector<8x8xf32> to vector<8xf32>
    %85 = vector.shape_cast %84 : vector<8xf32> to vector<8x1xf32>
    %86 = vector.broadcast %85 : vector<8x1xf32> to vector<8x8xf32>
    %87 = arith.subf %83, %86 : vector<8x8xf32>
    %88 = math.exp %87 : vector<8x8xf32>
    %cst_29 = arith.constant dense<0.000000e+00> : vector<8xf32>
    %89 = vector.multi_reduction <add>, %88, %cst_29 [1] : vector<8x8xf32> to vector<8xf32>
    %90 = vector.shape_cast %89 : vector<8xf32> to vector<8x1xf32>
    %91 = tpu.reciprocal %90 {approx = true} : vector<8x1xf32> -> vector<8x1xf32>
    %92 = vector.broadcast %91 : vector<8x1xf32> to vector<8x8xf32>
    %93 = arith.mulf %88, %92 : vector<8x8xf32>
    %cst_30 = arith.constant dense<0.000000e+00> : vector<8x128xf32>
    %94 = tpu.matmul %93, %82, %cst_30 {dimension_numbers = #tpu.dot_dimension_numbers<[1], [0], [0], [1], [0, 0, 1, 1], [], []>} : vector<8x8xf32>, vector<8x128xf32>, vector<8x128xf32> -> vector<8x128xf32>
    %95 = tpu.concatenate %34, %49, %64, %79, %94 in 1 : vector<8x128xf32>, vector<8x128xf32>, vector<8x128xf32>, vector<8x128xf32>, vector<8x128xf32> -> vector<8x640xf32>
    %96 = vector.extract_strided_slice %17 {offsets = [8, 0], sizes = [8, 128], strides = [1, 1]} : vector<16x640xf32> to vector<8x128xf32>
    %97 = vector.extract_strided_slice %18 {offsets = [8, 0], sizes = [8, 128], strides = [1, 1]} : vector<16x640xf32> to vector<8x128xf32>
    %98 = vector.extract_strided_slice %19 {offsets = [8, 0], sizes = [8, 128], strides = [1, 1]} : vector<16x640xf32> to vector<8x128xf32>
    %cst_31 = arith.constant dense<0.000000e+00> : vector<8x8xf32>
    %99 = tpu.matmul %96, %97, %cst_31 {dimension_numbers = #tpu.dot_dimension_numbers<[1], [1], [0], [0], [0, 0, 1, 0], [], []>} : vector<8x128xf32>, vector<8x128xf32>, vector<8x8xf32> -> vector<8x8xf32>
    %cst_32 = arith.constant dense<0xFF800000> : vector<8xf32>
    %100 = vector.multi_reduction <maximumf>, %99, %cst_32 [1] : vector<8x8xf32> to vector<8xf32>
    %101 = vector.shape_cast %100 : vector<8xf32> to vector<8x1xf32>
    %102 = vector.broadcast %101 : vector<8x1xf32> to vector<8x8xf32>
    %103 = arith.subf %99, %102 : vector<8x8xf32>
    %104 = math.exp %103 : vector<8x8xf32>
    %cst_33 = arith.constant dense<0.000000e+00> : vector<8xf32>
    %105 = vector.multi_reduction <add>, %104, %cst_33 [1] : vector<8x8xf32> to vector<8xf32>
    %106 = vector.shape_cast %105 : vector<8xf32> to vector<8x1xf32>
    %107 = tpu.reciprocal %106 {approx = true} : vector<8x1xf32> -> vector<8x1xf32>
    %108 = vector.broadcast %107 : vector<8x1xf32> to vector<8x8xf32>
    %109 = arith.mulf %104, %108 : vector<8x8xf32>
    %cst_34 = arith.constant dense<0.000000e+00> : vector<8x128xf32>
    %110 = tpu.matmul %109, %98, %cst_34 {dimension_numbers = #tpu.dot_dimension_numbers<[1], [0], [0], [1], [0, 0, 1, 1], [], []>} : vector<8x8xf32>, vector<8x128xf32>, vector<8x128xf32> -> vector<8x128xf32>
    %111 = vector.extract_strided_slice %17 {offsets = [8, 128], sizes = [8, 128], strides = [1, 1]} : vector<16x640xf32> to vector<8x128xf32>
    %112 = vector.extract_strided_slice %18 {offsets = [8, 128], sizes = [8, 128], strides = [1, 1]} : vector<16x640xf32> to vector<8x128xf32>
    %113 = vector.extract_strided_slice %19 {offsets = [8, 128], sizes = [8, 128], strides = [1, 1]} : vector<16x640xf32> to vector<8x128xf32>
    %cst_35 = arith.constant dense<0.000000e+00> : vector<8x8xf32>
    %114 = tpu.matmul %111, %112, %cst_35 {dimension_numbers = #tpu.dot_dimension_numbers<[1], [1], [0], [0], [0, 0, 1, 0], [], []>} : vector<8x128xf32>, vector<8x128xf32>, vector<8x8xf32> -> vector<8x8xf32>
    %cst_36 = arith.constant dense<0xFF800000> : vector<8xf32>
    %115 = vector.multi_reduction <maximumf>, %114, %cst_36 [1] : vector<8x8xf32> to vector<8xf32>
    %116 = vector.shape_cast %115 : vector<8xf32> to vector<8x1xf32>
    %117 = vector.broadcast %116 : vector<8x1xf32> to vector<8x8xf32>
    %118 = arith.subf %114, %117 : vector<8x8xf32>
    %119 = math.exp %118 : vector<8x8xf32>
    %cst_37 = arith.constant dense<0.000000e+00> : vector<8xf32>
    %120 = vector.multi_reduction <add>, %119, %cst_37 [1] : vector<8x8xf32> to vector<8xf32>
    %121 = vector.shape_cast %120 : vector<8xf32> to vector<8x1xf32>
    %122 = tpu.reciprocal %121 {approx = true} : vector<8x1xf32> -> vector<8x1xf32>
    %123 = vector.broadcast %122 : vector<8x1xf32> to vector<8x8xf32>
    %124 = arith.mulf %119, %123 : vector<8x8xf32>
    %cst_38 = arith.constant dense<0.000000e+00> : vector<8x128xf32>
    %125 = tpu.matmul %124, %113, %cst_38 {dimension_numbers = #tpu.dot_dimension_numbers<[1], [0], [0], [1], [0, 0, 1, 1], [], []>} : vector<8x8xf32>, vector<8x128xf32>, vector<8x128xf32> -> vector<8x128xf32>
    %126 = vector.extract_strided_slice %17 {offsets = [8, 256], sizes = [8, 128], strides = [1, 1]} : vector<16x640xf32> to vector<8x128xf32>
    %127 = vector.extract_strided_slice %18 {offsets = [8, 256], sizes = [8, 128], strides = [1, 1]} : vector<16x640xf32> to vector<8x128xf32>
    %128 = vector.extract_strided_slice %19 {offsets = [8, 256], sizes = [8, 128], strides = [1, 1]} : vector<16x640xf32> to vector<8x128xf32>
    %cst_39 = arith.constant dense<0.000000e+00> : vector<8x8xf32>
    %129 = tpu.matmul %126, %127, %cst_39 {dimension_numbers = #tpu.dot_dimension_numbers<[1], [1], [0], [0], [0, 0, 1, 0], [], []>} : vector<8x128xf32>, vector<8x128xf32>, vector<8x8xf32> -> vector<8x8xf32>
    %cst_40 = arith.constant dense<0xFF800000> : vector<8xf32>
    %130 = vector.multi_reduction <maximumf>, %129, %cst_40 [1] : vector<8x8xf32> to vector<8xf32>
    %131 = vector.shape_cast %130 : vector<8xf32> to vector<8x1xf32>
    %132 = vector.broadcast %131 : vector<8x1xf32> to vector<8x8xf32>
    %133 = arith.subf %129, %132 : vector<8x8xf32>
    %134 = math.exp %133 : vector<8x8xf32>
    %cst_41 = arith.constant dense<0.000000e+00> : vector<8xf32>
    %135 = vector.multi_reduction <add>, %134, %cst_41 [1] : vector<8x8xf32> to vector<8xf32>
    %136 = vector.shape_cast %135 : vector<8xf32> to vector<8x1xf32>
    %137 = tpu.reciprocal %136 {approx = true} : vector<8x1xf32> -> vector<8x1xf32>
    %138 = vector.broadcast %137 : vector<8x1xf32> to vector<8x8xf32>
    %139 = arith.mulf %134, %138 : vector<8x8xf32>
    %cst_42 = arith.constant dense<0.000000e+00> : vector<8x128xf32>
    %140 = tpu.matmul %139, %128, %cst_42 {dimension_numbers = #tpu.dot_dimension_numbers<[1], [0], [0], [1], [0, 0, 1, 1], [], []>} : vector<8x8xf32>, vector<8x128xf32>, vector<8x128xf32> -> vector<8x128xf32>
    %141 = vector.extract_strided_slice %17 {offsets = [8, 384], sizes = [8, 128], strides = [1, 1]} : vector<16x640xf32> to vector<8x128xf32>
    %142 = vector.extract_strided_slice %18 {offsets = [8, 384], sizes = [8, 128], strides = [1, 1]} : vector<16x640xf32> to vector<8x128xf32>
    %143 = vector.extract_strided_slice %19 {offsets = [8, 384], sizes = [8, 128], strides = [1, 1]} : vector<16x640xf32> to vector<8x128xf32>
    %cst_43 = arith.constant dense<0.000000e+00> : vector<8x8xf32>
    %144 = tpu.matmul %141, %142, %cst_43 {dimension_numbers = #tpu.dot_dimension_numbers<[1], [1], [0], [0], [0, 0, 1, 0], [], []>} : vector<8x128xf32>, vector<8x128xf32>, vector<8x8xf32> -> vector<8x8xf32>
    %cst_44 = arith.constant dense<0xFF800000> : vector<8xf32>
    %145 = vector.multi_reduction <maximumf>, %144, %cst_44 [1] : vector<8x8xf32> to vector<8xf32>
    %146 = vector.shape_cast %145 : vector<8xf32> to vector<8x1xf32>
    %147 = vector.broadcast %146 : vector<8x1xf32> to vector<8x8xf32>
    %148 = arith.subf %144, %147 : vector<8x8xf32>
    %149 = math.exp %148 : vector<8x8xf32>
    %cst_45 = arith.constant dense<0.000000e+00> : vector<8xf32>
    %150 = vector.multi_reduction <add>, %149, %cst_45 [1] : vector<8x8xf32> to vector<8xf32>
    %151 = vector.shape_cast %150 : vector<8xf32> to vector<8x1xf32>
    %152 = tpu.reciprocal %151 {approx = true} : vector<8x1xf32> -> vector<8x1xf32>
    %153 = vector.broadcast %152 : vector<8x1xf32> to vector<8x8xf32>
    %154 = arith.mulf %149, %153 : vector<8x8xf32>
    %cst_46 = arith.constant dense<0.000000e+00> : vector<8x128xf32>
    %155 = tpu.matmul %154, %143, %cst_46 {dimension_numbers = #tpu.dot_dimension_numbers<[1], [0], [0], [1], [0, 0, 1, 1], [], []>} : vector<8x8xf32>, vector<8x128xf32>, vector<8x128xf32> -> vector<8x128xf32>
    %156 = vector.extract_strided_slice %17 {offsets = [8, 512], sizes = [8, 128], strides = [1, 1]} : vector<16x640xf32> to vector<8x128xf32>
    %157 = vector.extract_strided_slice %18 {offsets = [8, 512], sizes = [8, 128], strides = [1, 1]} : vector<16x640xf32> to vector<8x128xf32>
    %158 = vector.extract_strided_slice %19 {offsets = [8, 512], sizes = [8, 128], strides = [1, 1]} : vector<16x640xf32> to vector<8x128xf32>
    %cst_47 = arith.constant dense<0.000000e+00> : vector<8x8xf32>
    %159 = tpu.matmul %156, %157, %cst_47 {dimension_numbers = #tpu.dot_dimension_numbers<[1], [1], [0], [0], [0, 0, 1, 0], [], []>} : vector<8x128xf32>, vector<8x128xf32>, vector<8x8xf32> -> vector<8x8xf32>
    %cst_48 = arith.constant dense<0xFF800000> : vector<8xf32>
    %160 = vector.multi_reduction <maximumf>, %159, %cst_48 [1] : vector<8x8xf32> to vector<8xf32>
    %161 = vector.shape_cast %160 : vector<8xf32> to vector<8x1xf32>
    %162 = vector.broadcast %161 : vector<8x1xf32> to vector<8x8xf32>
    %163 = arith.subf %159, %162 : vector<8x8xf32>
    %164 = math.exp %163 : vector<8x8xf32>
    %cst_49 = arith.constant dense<0.000000e+00> : vector<8xf32>
    %165 = vector.multi_reduction <add>, %164, %cst_49 [1] : vector<8x8xf32> to vector<8xf32>
    %166 = vector.shape_cast %165 : vector<8xf32> to vector<8x1xf32>
    %167 = tpu.reciprocal %166 {approx = true} : vector<8x1xf32> -> vector<8x1xf32>
    %168 = vector.broadcast %167 : vector<8x1xf32> to vector<8x8xf32>
    %169 = arith.mulf %164, %168 : vector<8x8xf32>
    %cst_50 = arith.constant dense<0.000000e+00> : vector<8x128xf32>
    %170 = tpu.matmul %169, %158, %cst_50 {dimension_numbers = #tpu.dot_dimension_numbers<[1], [0], [0], [1], [0, 0, 1, 1], [], []>} : vector<8x8xf32>, vector<8x128xf32>, vector<8x128xf32> -> vector<8x128xf32>
    %171 = tpu.concatenate %110, %125, %140, %155, %170 in 1 : vector<8x128xf32>, vector<8x128xf32>, vector<8x128xf32>, vector<8x128xf32>, vector<8x128xf32> -> vector<8x640xf32>
    %172 = tpu.concatenate %95, %171 in 0 : vector<8x640xf32>, vector<8x640xf32> -> vector<16x640xf32>
    %173 = arith.truncf %172 : vector<16x640xf32> to vector<16x640xbf16>
    %c0_51 = arith.constant 0 : index
    %c0_52 = arith.constant 0 : index
    %c0_53 = arith.constant 0 : index
    %174 = vector.load %arg5[%c0_51, %c0_52, %c0_53] : memref<2x640x128xbf16, #tpu.memory_space<vmem>>, vector<1x640x128xbf16>
    %175 = vector.shape_cast %174 : vector<1x640x128xbf16> to vector<640x128xbf16>
    %cst_54 = arith.constant dense<0.000000e+00> : vector<16x128xf32>
    %176 = tpu.matmul %173, %175, %cst_54 {dimension_numbers = #tpu.dot_dimension_numbers<[1], [0], [0], [1], [0, 0, 1, 1], [], []>} : vector<16x640xbf16>, vector<640x128xbf16>, vector<16x128xf32> -> vector<16x128xf32>
    %c0_55 = arith.constant 0 : index
    %c0_56 = arith.constant 0 : index
    %c0_57 = arith.constant 0 : index
    %177 = vector.load %arg6[%c0_55, %c0_56, %c0_57] : memref<2x1x128xf32, #tpu.memory_space<vmem>>, vector<1x1x128xf32>
    %178 = vector.shape_cast %177 : vector<1x1x128xf32> to vector<1x128xf32>
    %179 = vector.broadcast %178 : vector<1x128xf32> to vector<16x128xf32>
    %180 = arith.addf %176, %179 : vector<16x128xf32>
    %181 = arith.addf %180, %4 : vector<16x128xf32>
    %182 = arith.mulf %181, %181 : vector<16x128xf32>
    %cst_58 = arith.constant dense<0.000000e+00> : vector<16xf32>
    %183 = vector.multi_reduction <add>, %182, %cst_58 [1] : vector<16x128xf32> to vector<16xf32>
    %184 = vector.shape_cast %183 : vector<16xf32> to vector<16x1xf32>
    %cst_59 = arith.constant 1.000000e-10 : f32
    %185 = vector.broadcast %cst_59 : f32 to vector<16x1xf32>
    %186 = arith.maximumf %184, %185 : vector<16x1xf32>
    %187 = math.rsqrt %186 : vector<16x1xf32>
    %188 = vector.broadcast %187 : vector<16x1xf32> to vector<16x128xf32>
    %189 = arith.mulf %181, %188 : vector<16x128xf32>
    %190 = arith.truncf %189 : vector<16x128xf32> to vector<16x128xbf16>
    %c0_60 = arith.constant 0 : index
    %c0_61 = arith.constant 0 : index
    %c0_62 = arith.constant 0 : index
    %191 = vector.load %arg7[%c0_60, %c0_61, %c0_62] : memref<2x128x128xbf16, #tpu.memory_space<vmem>>, vector<1x128x128xbf16>
    %192 = vector.shape_cast %191 : vector<1x128x128xbf16> to vector<128x128xbf16>
    %cst_63 = arith.constant dense<0.000000e+00> : vector<16x128xf32>
    %193 = tpu.matmul %190, %192, %cst_63 {dimension_numbers = #tpu.dot_dimension_numbers<[1], [0], [0], [1], [0, 0, 1, 1], [], []>} : vector<16x128xbf16>, vector<128x128xbf16>, vector<16x128xf32> -> vector<16x128xf32>
    %c0_64 = arith.constant 0 : index
    %c0_65 = arith.constant 0 : index
    %c0_66 = arith.constant 0 : index
    %194 = vector.load %arg8[%c0_64, %c0_65, %c0_66] : memref<2x1x128xf32, #tpu.memory_space<vmem>>, vector<1x1x128xf32>
    %195 = vector.shape_cast %194 : vector<1x1x128xf32> to vector<1x128xf32>
    %196 = vector.broadcast %195 : vector<1x128xf32> to vector<16x128xf32>
    %197 = arith.addf %193, %196 : vector<16x128xf32>
    %cst_67 = arith.constant 0.000000e+00 : f32
    %198 = vector.broadcast %cst_67 : f32 to vector<16x128xf32>
    %199 = arith.maximumf %197, %198 : vector<16x128xf32>
    %200 = arith.truncf %199 : vector<16x128xf32> to vector<16x128xbf16>
    %c0_68 = arith.constant 0 : index
    %c0_69 = arith.constant 0 : index
    %c0_70 = arith.constant 0 : index
    %201 = vector.load %arg9[%c0_68, %c0_69, %c0_70] : memref<2x128x128xbf16, #tpu.memory_space<vmem>>, vector<1x128x128xbf16>
    %202 = vector.shape_cast %201 : vector<1x128x128xbf16> to vector<128x128xbf16>
    %cst_71 = arith.constant dense<0.000000e+00> : vector<16x128xf32>
    %203 = tpu.matmul %200, %202, %cst_71 {dimension_numbers = #tpu.dot_dimension_numbers<[1], [0], [0], [1], [0, 0, 1, 1], [], []>} : vector<16x128xbf16>, vector<128x128xbf16>, vector<16x128xf32> -> vector<16x128xf32>
    %c0_72 = arith.constant 0 : index
    %c0_73 = arith.constant 0 : index
    %c0_74 = arith.constant 0 : index
    %204 = vector.load %arg10[%c0_72, %c0_73, %c0_74] : memref<2x1x128xf32, #tpu.memory_space<vmem>>, vector<1x1x128xf32>
    %205 = vector.shape_cast %204 : vector<1x1x128xf32> to vector<1x128xf32>
    %206 = vector.broadcast %205 : vector<1x128xf32> to vector<16x128xf32>
    %207 = arith.addf %203, %206 : vector<16x128xf32>
    %208 = arith.addf %207, %181 : vector<16x128xf32>
    %209 = arith.mulf %208, %208 : vector<16x128xf32>
    %cst_75 = arith.constant dense<0.000000e+00> : vector<16xf32>
    %210 = vector.multi_reduction <add>, %209, %cst_75 [1] : vector<16x128xf32> to vector<16xf32>
    %211 = vector.shape_cast %210 : vector<16xf32> to vector<16x1xf32>
    %cst_76 = arith.constant 1.000000e-10 : f32
    %212 = vector.broadcast %cst_76 : f32 to vector<16x1xf32>
    %213 = arith.maximumf %211, %212 : vector<16x1xf32>
    %214 = math.rsqrt %213 : vector<16x1xf32>
    %215 = vector.broadcast %214 : vector<16x1xf32> to vector<16x128xf32>
    %216 = arith.mulf %208, %215 : vector<16x128xf32>
    %217 = arith.truncf %216 : vector<16x128xf32> to vector<16x128xbf16>
    %c1 = arith.constant 1 : index
    %c0_77 = arith.constant 0 : index
    %c0_78 = arith.constant 0 : index
    %218 = vector.load %arg4[%c1, %c0_77, %c0_78] : memref<2x128x1920xbf16, #tpu.memory_space<vmem>>, vector<1x128x1920xbf16>
    %219 = vector.shape_cast %218 : vector<1x128x1920xbf16> to vector<128x1920xbf16>
    %cst_79 = arith.constant dense<0.000000e+00> : vector<16x1920xf32>
    %220 = tpu.matmul %217, %219, %cst_79 {dimension_numbers = #tpu.dot_dimension_numbers<[1], [0], [0], [1], [0, 0, 1, 1], [], []>} : vector<16x128xbf16>, vector<128x1920xbf16>, vector<16x1920xf32> -> vector<16x1920xf32>
    %221 = vector.extract_strided_slice %220 {offsets = [0, 0], sizes = [16, 640], strides = [1, 1]} : vector<16x1920xf32> to vector<16x640xf32>
    %222 = vector.extract_strided_slice %220 {offsets = [0, 640], sizes = [16, 640], strides = [1, 1]} : vector<16x1920xf32> to vector<16x640xf32>
    %223 = vector.extract_strided_slice %220 {offsets = [0, 1280], sizes = [16, 640], strides = [1, 1]} : vector<16x1920xf32> to vector<16x640xf32>
    %224 = vector.extract_strided_slice %221 {offsets = [0, 0], sizes = [8, 128], strides = [1, 1]} : vector<16x640xf32> to vector<8x128xf32>
    %225 = vector.extract_strided_slice %222 {offsets = [0, 0], sizes = [8, 128], strides = [1, 1]} : vector<16x640xf32> to vector<8x128xf32>
    %226 = vector.extract_strided_slice %223 {offsets = [0, 0], sizes = [8, 128], strides = [1, 1]} : vector<16x640xf32> to vector<8x128xf32>
    %cst_80 = arith.constant dense<0.000000e+00> : vector<8x8xf32>
    %227 = tpu.matmul %224, %225, %cst_80 {dimension_numbers = #tpu.dot_dimension_numbers<[1], [1], [0], [0], [0, 0, 1, 0], [], []>} : vector<8x128xf32>, vector<8x128xf32>, vector<8x8xf32> -> vector<8x8xf32>
    %cst_81 = arith.constant dense<0xFF800000> : vector<8xf32>
    %228 = vector.multi_reduction <maximumf>, %227, %cst_81 [1] : vector<8x8xf32> to vector<8xf32>
    %229 = vector.shape_cast %228 : vector<8xf32> to vector<8x1xf32>
    %230 = vector.broadcast %229 : vector<8x1xf32> to vector<8x8xf32>
    %231 = arith.subf %227, %230 : vector<8x8xf32>
    %232 = math.exp %231 : vector<8x8xf32>
    %cst_82 = arith.constant dense<0.000000e+00> : vector<8xf32>
    %233 = vector.multi_reduction <add>, %232, %cst_82 [1] : vector<8x8xf32> to vector<8xf32>
    %234 = vector.shape_cast %233 : vector<8xf32> to vector<8x1xf32>
    %235 = tpu.reciprocal %234 {approx = true} : vector<8x1xf32> -> vector<8x1xf32>
    %236 = vector.broadcast %235 : vector<8x1xf32> to vector<8x8xf32>
    %237 = arith.mulf %232, %236 : vector<8x8xf32>
    %cst_83 = arith.constant dense<0.000000e+00> : vector<8x128xf32>
    %238 = tpu.matmul %237, %226, %cst_83 {dimension_numbers = #tpu.dot_dimension_numbers<[1], [0], [0], [1], [0, 0, 1, 1], [], []>} : vector<8x8xf32>, vector<8x128xf32>, vector<8x128xf32> -> vector<8x128xf32>
    %239 = vector.extract_strided_slice %221 {offsets = [0, 128], sizes = [8, 128], strides = [1, 1]} : vector<16x640xf32> to vector<8x128xf32>
    %240 = vector.extract_strided_slice %222 {offsets = [0, 128], sizes = [8, 128], strides = [1, 1]} : vector<16x640xf32> to vector<8x128xf32>
    %241 = vector.extract_strided_slice %223 {offsets = [0, 128], sizes = [8, 128], strides = [1, 1]} : vector<16x640xf32> to vector<8x128xf32>
    %cst_84 = arith.constant dense<0.000000e+00> : vector<8x8xf32>
    %242 = tpu.matmul %239, %240, %cst_84 {dimension_numbers = #tpu.dot_dimension_numbers<[1], [1], [0], [0], [0, 0, 1, 0], [], []>} : vector<8x128xf32>, vector<8x128xf32>, vector<8x8xf32> -> vector<8x8xf32>
    %cst_85 = arith.constant dense<0xFF800000> : vector<8xf32>
    %243 = vector.multi_reduction <maximumf>, %242, %cst_85 [1] : vector<8x8xf32> to vector<8xf32>
    %244 = vector.shape_cast %243 : vector<8xf32> to vector<8x1xf32>
    %245 = vector.broadcast %244 : vector<8x1xf32> to vector<8x8xf32>
    %246 = arith.subf %242, %245 : vector<8x8xf32>
    %247 = math.exp %246 : vector<8x8xf32>
    %cst_86 = arith.constant dense<0.000000e+00> : vector<8xf32>
    %248 = vector.multi_reduction <add>, %247, %cst_86 [1] : vector<8x8xf32> to vector<8xf32>
    %249 = vector.shape_cast %248 : vector<8xf32> to vector<8x1xf32>
    %250 = tpu.reciprocal %249 {approx = true} : vector<8x1xf32> -> vector<8x1xf32>
    %251 = vector.broadcast %250 : vector<8x1xf32> to vector<8x8xf32>
    %252 = arith.mulf %247, %251 : vector<8x8xf32>
    %cst_87 = arith.constant dense<0.000000e+00> : vector<8x128xf32>
    %253 = tpu.matmul %252, %241, %cst_87 {dimension_numbers = #tpu.dot_dimension_numbers<[1], [0], [0], [1], [0, 0, 1, 1], [], []>} : vector<8x8xf32>, vector<8x128xf32>, vector<8x128xf32> -> vector<8x128xf32>
    %254 = vector.extract_strided_slice %221 {offsets = [0, 256], sizes = [8, 128], strides = [1, 1]} : vector<16x640xf32> to vector<8x128xf32>
    %255 = vector.extract_strided_slice %222 {offsets = [0, 256], sizes = [8, 128], strides = [1, 1]} : vector<16x640xf32> to vector<8x128xf32>
    %256 = vector.extract_strided_slice %223 {offsets = [0, 256], sizes = [8, 128], strides = [1, 1]} : vector<16x640xf32> to vector<8x128xf32>
    %cst_88 = arith.constant dense<0.000000e+00> : vector<8x8xf32>
    %257 = tpu.matmul %254, %255, %cst_88 {dimension_numbers = #tpu.dot_dimension_numbers<[1], [1], [0], [0], [0, 0, 1, 0], [], []>} : vector<8x128xf32>, vector<8x128xf32>, vector<8x8xf32> -> vector<8x8xf32>
    %cst_89 = arith.constant dense<0xFF800000> : vector<8xf32>
    %258 = vector.multi_reduction <maximumf>, %257, %cst_89 [1] : vector<8x8xf32> to vector<8xf32>
    %259 = vector.shape_cast %258 : vector<8xf32> to vector<8x1xf32>
    %260 = vector.broadcast %259 : vector<8x1xf32> to vector<8x8xf32>
    %261 = arith.subf %257, %260 : vector<8x8xf32>
    %262 = math.exp %261 : vector<8x8xf32>
    %cst_90 = arith.constant dense<0.000000e+00> : vector<8xf32>
    %263 = vector.multi_reduction <add>, %262, %cst_90 [1] : vector<8x8xf32> to vector<8xf32>
    %264 = vector.shape_cast %263 : vector<8xf32> to vector<8x1xf32>
    %265 = tpu.reciprocal %264 {approx = true} : vector<8x1xf32> -> vector<8x1xf32>
    %266 = vector.broadcast %265 : vector<8x1xf32> to vector<8x8xf32>
    %267 = arith.mulf %262, %266 : vector<8x8xf32>
    %cst_91 = arith.constant dense<0.000000e+00> : vector<8x128xf32>
    %268 = tpu.matmul %267, %256, %cst_91 {dimension_numbers = #tpu.dot_dimension_numbers<[1], [0], [0], [1], [0, 0, 1, 1], [], []>} : vector<8x8xf32>, vector<8x128xf32>, vector<8x128xf32> -> vector<8x128xf32>
    %269 = vector.extract_strided_slice %221 {offsets = [0, 384], sizes = [8, 128], strides = [1, 1]} : vector<16x640xf32> to vector<8x128xf32>
    %270 = vector.extract_strided_slice %222 {offsets = [0, 384], sizes = [8, 128], strides = [1, 1]} : vector<16x640xf32> to vector<8x128xf32>
    %271 = vector.extract_strided_slice %223 {offsets = [0, 384], sizes = [8, 128], strides = [1, 1]} : vector<16x640xf32> to vector<8x128xf32>
    %cst_92 = arith.constant dense<0.000000e+00> : vector<8x8xf32>
    %272 = tpu.matmul %269, %270, %cst_92 {dimension_numbers = #tpu.dot_dimension_numbers<[1], [1], [0], [0], [0, 0, 1, 0], [], []>} : vector<8x128xf32>, vector<8x128xf32>, vector<8x8xf32> -> vector<8x8xf32>
    %cst_93 = arith.constant dense<0xFF800000> : vector<8xf32>
    %273 = vector.multi_reduction <maximumf>, %272, %cst_93 [1] : vector<8x8xf32> to vector<8xf32>
    %274 = vector.shape_cast %273 : vector<8xf32> to vector<8x1xf32>
    %275 = vector.broadcast %274 : vector<8x1xf32> to vector<8x8xf32>
    %276 = arith.subf %272, %275 : vector<8x8xf32>
    %277 = math.exp %276 : vector<8x8xf32>
    %cst_94 = arith.constant dense<0.000000e+00> : vector<8xf32>
    %278 = vector.multi_reduction <add>, %277, %cst_94 [1] : vector<8x8xf32> to vector<8xf32>
    %279 = vector.shape_cast %278 : vector<8xf32> to vector<8x1xf32>
    %280 = tpu.reciprocal %279 {approx = true} : vector<8x1xf32> -> vector<8x1xf32>
    %281 = vector.broadcast %280 : vector<8x1xf32> to vector<8x8xf32>
    %282 = arith.mulf %277, %281 : vector<8x8xf32>
    %cst_95 = arith.constant dense<0.000000e+00> : vector<8x128xf32>
    %283 = tpu.matmul %282, %271, %cst_95 {dimension_numbers = #tpu.dot_dimension_numbers<[1], [0], [0], [1], [0, 0, 1, 1], [], []>} : vector<8x8xf32>, vector<8x128xf32>, vector<8x128xf32> -> vector<8x128xf32>
    %284 = vector.extract_strided_slice %221 {offsets = [0, 512], sizes = [8, 128], strides = [1, 1]} : vector<16x640xf32> to vector<8x128xf32>
    %285 = vector.extract_strided_slice %222 {offsets = [0, 512], sizes = [8, 128], strides = [1, 1]} : vector<16x640xf32> to vector<8x128xf32>
    %286 = vector.extract_strided_slice %223 {offsets = [0, 512], sizes = [8, 128], strides = [1, 1]} : vector<16x640xf32> to vector<8x128xf32>
    %cst_96 = arith.constant dense<0.000000e+00> : vector<8x8xf32>
    %287 = tpu.matmul %284, %285, %cst_96 {dimension_numbers = #tpu.dot_dimension_numbers<[1], [1], [0], [0], [0, 0, 1, 0], [], []>} : vector<8x128xf32>, vector<8x128xf32>, vector<8x8xf32> -> vector<8x8xf32>
    %cst_97 = arith.constant dense<0xFF800000> : vector<8xf32>
    %288 = vector.multi_reduction <maximumf>, %287, %cst_97 [1] : vector<8x8xf32> to vector<8xf32>
    %289 = vector.shape_cast %288 : vector<8xf32> to vector<8x1xf32>
    %290 = vector.broadcast %289 : vector<8x1xf32> to vector<8x8xf32>
    %291 = arith.subf %287, %290 : vector<8x8xf32>
    %292 = math.exp %291 : vector<8x8xf32>
    %cst_98 = arith.constant dense<0.000000e+00> : vector<8xf32>
    %293 = vector.multi_reduction <add>, %292, %cst_98 [1] : vector<8x8xf32> to vector<8xf32>
    %294 = vector.shape_cast %293 : vector<8xf32> to vector<8x1xf32>
    %295 = tpu.reciprocal %294 {approx = true} : vector<8x1xf32> -> vector<8x1xf32>
    %296 = vector.broadcast %295 : vector<8x1xf32> to vector<8x8xf32>
    %297 = arith.mulf %292, %296 : vector<8x8xf32>
    %cst_99 = arith.constant dense<0.000000e+00> : vector<8x128xf32>
    %298 = tpu.matmul %297, %286, %cst_99 {dimension_numbers = #tpu.dot_dimension_numbers<[1], [0], [0], [1], [0, 0, 1, 1], [], []>} : vector<8x8xf32>, vector<8x128xf32>, vector<8x128xf32> -> vector<8x128xf32>
    %299 = tpu.concatenate %238, %253, %268, %283, %298 in 1 : vector<8x128xf32>, vector<8x128xf32>, vector<8x128xf32>, vector<8x128xf32>, vector<8x128xf32> -> vector<8x640xf32>
    %300 = vector.extract_strided_slice %221 {offsets = [8, 0], sizes = [8, 128], strides = [1, 1]} : vector<16x640xf32> to vector<8x128xf32>
    %301 = vector.extract_strided_slice %222 {offsets = [8, 0], sizes = [8, 128], strides = [1, 1]} : vector<16x640xf32> to vector<8x128xf32>
    %302 = vector.extract_strided_slice %223 {offsets = [8, 0], sizes = [8, 128], strides = [1, 1]} : vector<16x640xf32> to vector<8x128xf32>
    %cst_100 = arith.constant dense<0.000000e+00> : vector<8x8xf32>
    %303 = tpu.matmul %300, %301, %cst_100 {dimension_numbers = #tpu.dot_dimension_numbers<[1], [1], [0], [0], [0, 0, 1, 0], [], []>} : vector<8x128xf32>, vector<8x128xf32>, vector<8x8xf32> -> vector<8x8xf32>
    %cst_101 = arith.constant dense<0xFF800000> : vector<8xf32>
    %304 = vector.multi_reduction <maximumf>, %303, %cst_101 [1] : vector<8x8xf32> to vector<8xf32>
    %305 = vector.shape_cast %304 : vector<8xf32> to vector<8x1xf32>
    %306 = vector.broadcast %305 : vector<8x1xf32> to vector<8x8xf32>
    %307 = arith.subf %303, %306 : vector<8x8xf32>
    %308 = math.exp %307 : vector<8x8xf32>
    %cst_102 = arith.constant dense<0.000000e+00> : vector<8xf32>
    %309 = vector.multi_reduction <add>, %308, %cst_102 [1] : vector<8x8xf32> to vector<8xf32>
    %310 = vector.shape_cast %309 : vector<8xf32> to vector<8x1xf32>
    %311 = tpu.reciprocal %310 {approx = true} : vector<8x1xf32> -> vector<8x1xf32>
    %312 = vector.broadcast %311 : vector<8x1xf32> to vector<8x8xf32>
    %313 = arith.mulf %308, %312 : vector<8x8xf32>
    %cst_103 = arith.constant dense<0.000000e+00> : vector<8x128xf32>
    %314 = tpu.matmul %313, %302, %cst_103 {dimension_numbers = #tpu.dot_dimension_numbers<[1], [0], [0], [1], [0, 0, 1, 1], [], []>} : vector<8x8xf32>, vector<8x128xf32>, vector<8x128xf32> -> vector<8x128xf32>
    %315 = vector.extract_strided_slice %221 {offsets = [8, 128], sizes = [8, 128], strides = [1, 1]} : vector<16x640xf32> to vector<8x128xf32>
    %316 = vector.extract_strided_slice %222 {offsets = [8, 128], sizes = [8, 128], strides = [1, 1]} : vector<16x640xf32> to vector<8x128xf32>
    %317 = vector.extract_strided_slice %223 {offsets = [8, 128], sizes = [8, 128], strides = [1, 1]} : vector<16x640xf32> to vector<8x128xf32>
    %cst_104 = arith.constant dense<0.000000e+00> : vector<8x8xf32>
    %318 = tpu.matmul %315, %316, %cst_104 {dimension_numbers = #tpu.dot_dimension_numbers<[1], [1], [0], [0], [0, 0, 1, 0], [], []>} : vector<8x128xf32>, vector<8x128xf32>, vector<8x8xf32> -> vector<8x8xf32>
    %cst_105 = arith.constant dense<0xFF800000> : vector<8xf32>
    %319 = vector.multi_reduction <maximumf>, %318, %cst_105 [1] : vector<8x8xf32> to vector<8xf32>
    %320 = vector.shape_cast %319 : vector<8xf32> to vector<8x1xf32>
    %321 = vector.broadcast %320 : vector<8x1xf32> to vector<8x8xf32>
    %322 = arith.subf %318, %321 : vector<8x8xf32>
    %323 = math.exp %322 : vector<8x8xf32>
    %cst_106 = arith.constant dense<0.000000e+00> : vector<8xf32>
    %324 = vector.multi_reduction <add>, %323, %cst_106 [1] : vector<8x8xf32> to vector<8xf32>
    %325 = vector.shape_cast %324 : vector<8xf32> to vector<8x1xf32>
    %326 = tpu.reciprocal %325 {approx = true} : vector<8x1xf32> -> vector<8x1xf32>
    %327 = vector.broadcast %326 : vector<8x1xf32> to vector<8x8xf32>
    %328 = arith.mulf %323, %327 : vector<8x8xf32>
    %cst_107 = arith.constant dense<0.000000e+00> : vector<8x128xf32>
    %329 = tpu.matmul %328, %317, %cst_107 {dimension_numbers = #tpu.dot_dimension_numbers<[1], [0], [0], [1], [0, 0, 1, 1], [], []>} : vector<8x8xf32>, vector<8x128xf32>, vector<8x128xf32> -> vector<8x128xf32>
    %330 = vector.extract_strided_slice %221 {offsets = [8, 256], sizes = [8, 128], strides = [1, 1]} : vector<16x640xf32> to vector<8x128xf32>
    %331 = vector.extract_strided_slice %222 {offsets = [8, 256], sizes = [8, 128], strides = [1, 1]} : vector<16x640xf32> to vector<8x128xf32>
    %332 = vector.extract_strided_slice %223 {offsets = [8, 256], sizes = [8, 128], strides = [1, 1]} : vector<16x640xf32> to vector<8x128xf32>
    %cst_108 = arith.constant dense<0.000000e+00> : vector<8x8xf32>
    %333 = tpu.matmul %330, %331, %cst_108 {dimension_numbers = #tpu.dot_dimension_numbers<[1], [1], [0], [0], [0, 0, 1, 0], [], []>} : vector<8x128xf32>, vector<8x128xf32>, vector<8x8xf32> -> vector<8x8xf32>
    %cst_109 = arith.constant dense<0xFF800000> : vector<8xf32>
    %334 = vector.multi_reduction <maximumf>, %333, %cst_109 [1] : vector<8x8xf32> to vector<8xf32>
    %335 = vector.shape_cast %334 : vector<8xf32> to vector<8x1xf32>
    %336 = vector.broadcast %335 : vector<8x1xf32> to vector<8x8xf32>
    %337 = arith.subf %333, %336 : vector<8x8xf32>
    %338 = math.exp %337 : vector<8x8xf32>
    %cst_110 = arith.constant dense<0.000000e+00> : vector<8xf32>
    %339 = vector.multi_reduction <add>, %338, %cst_110 [1] : vector<8x8xf32> to vector<8xf32>
    %340 = vector.shape_cast %339 : vector<8xf32> to vector<8x1xf32>
    %341 = tpu.reciprocal %340 {approx = true} : vector<8x1xf32> -> vector<8x1xf32>
    %342 = vector.broadcast %341 : vector<8x1xf32> to vector<8x8xf32>
    %343 = arith.mulf %338, %342 : vector<8x8xf32>
    %cst_111 = arith.constant dense<0.000000e+00> : vector<8x128xf32>
    %344 = tpu.matmul %343, %332, %cst_111 {dimension_numbers = #tpu.dot_dimension_numbers<[1], [0], [0], [1], [0, 0, 1, 1], [], []>} : vector<8x8xf32>, vector<8x128xf32>, vector<8x128xf32> -> vector<8x128xf32>
    %345 = vector.extract_strided_slice %221 {offsets = [8, 384], sizes = [8, 128], strides = [1, 1]} : vector<16x640xf32> to vector<8x128xf32>
    %346 = vector.extract_strided_slice %222 {offsets = [8, 384], sizes = [8, 128], strides = [1, 1]} : vector<16x640xf32> to vector<8x128xf32>
    %347 = vector.extract_strided_slice %223 {offsets = [8, 384], sizes = [8, 128], strides = [1, 1]} : vector<16x640xf32> to vector<8x128xf32>
    %cst_112 = arith.constant dense<0.000000e+00> : vector<8x8xf32>
    %348 = tpu.matmul %345, %346, %cst_112 {dimension_numbers = #tpu.dot_dimension_numbers<[1], [1], [0], [0], [0, 0, 1, 0], [], []>} : vector<8x128xf32>, vector<8x128xf32>, vector<8x8xf32> -> vector<8x8xf32>
    %cst_113 = arith.constant dense<0xFF800000> : vector<8xf32>
    %349 = vector.multi_reduction <maximumf>, %348, %cst_113 [1] : vector<8x8xf32> to vector<8xf32>
    %350 = vector.shape_cast %349 : vector<8xf32> to vector<8x1xf32>
    %351 = vector.broadcast %350 : vector<8x1xf32> to vector<8x8xf32>
    %352 = arith.subf %348, %351 : vector<8x8xf32>
    %353 = math.exp %352 : vector<8x8xf32>
    %cst_114 = arith.constant dense<0.000000e+00> : vector<8xf32>
    %354 = vector.multi_reduction <add>, %353, %cst_114 [1] : vector<8x8xf32> to vector<8xf32>
    %355 = vector.shape_cast %354 : vector<8xf32> to vector<8x1xf32>
    %356 = tpu.reciprocal %355 {approx = true} : vector<8x1xf32> -> vector<8x1xf32>
    %357 = vector.broadcast %356 : vector<8x1xf32> to vector<8x8xf32>
    %358 = arith.mulf %353, %357 : vector<8x8xf32>
    %cst_115 = arith.constant dense<0.000000e+00> : vector<8x128xf32>
    %359 = tpu.matmul %358, %347, %cst_115 {dimension_numbers = #tpu.dot_dimension_numbers<[1], [0], [0], [1], [0, 0, 1, 1], [], []>} : vector<8x8xf32>, vector<8x128xf32>, vector<8x128xf32> -> vector<8x128xf32>
    %360 = vector.extract_strided_slice %221 {offsets = [8, 512], sizes = [8, 128], strides = [1, 1]} : vector<16x640xf32> to vector<8x128xf32>
    %361 = vector.extract_strided_slice %222 {offsets = [8, 512], sizes = [8, 128], strides = [1, 1]} : vector<16x640xf32> to vector<8x128xf32>
    %362 = vector.extract_strided_slice %223 {offsets = [8, 512], sizes = [8, 128], strides = [1, 1]} : vector<16x640xf32> to vector<8x128xf32>
    %cst_116 = arith.constant dense<0.000000e+00> : vector<8x8xf32>
    %363 = tpu.matmul %360, %361, %cst_116 {dimension_numbers = #tpu.dot_dimension_numbers<[1], [1], [0], [0], [0, 0, 1, 0], [], []>} : vector<8x128xf32>, vector<8x128xf32>, vector<8x8xf32> -> vector<8x8xf32>
    %cst_117 = arith.constant dense<0xFF800000> : vector<8xf32>
    %364 = vector.multi_reduction <maximumf>, %363, %cst_117 [1] : vector<8x8xf32> to vector<8xf32>
    %365 = vector.shape_cast %364 : vector<8xf32> to vector<8x1xf32>
    %366 = vector.broadcast %365 : vector<8x1xf32> to vector<8x8xf32>
    %367 = arith.subf %363, %366 : vector<8x8xf32>
    %368 = math.exp %367 : vector<8x8xf32>
    %cst_118 = arith.constant dense<0.000000e+00> : vector<8xf32>
    %369 = vector.multi_reduction <add>, %368, %cst_118 [1] : vector<8x8xf32> to vector<8xf32>
    %370 = vector.shape_cast %369 : vector<8xf32> to vector<8x1xf32>
    %371 = tpu.reciprocal %370 {approx = true} : vector<8x1xf32> -> vector<8x1xf32>
    %372 = vector.broadcast %371 : vector<8x1xf32> to vector<8x8xf32>
    %373 = arith.mulf %368, %372 : vector<8x8xf32>
    %cst_119 = arith.constant dense<0.000000e+00> : vector<8x128xf32>
    %374 = tpu.matmul %373, %362, %cst_119 {dimension_numbers = #tpu.dot_dimension_numbers<[1], [0], [0], [1], [0, 0, 1, 1], [], []>} : vector<8x8xf32>, vector<8x128xf32>, vector<8x128xf32> -> vector<8x128xf32>
    %375 = tpu.concatenate %314, %329, %344, %359, %374 in 1 : vector<8x128xf32>, vector<8x128xf32>, vector<8x128xf32>, vector<8x128xf32>, vector<8x128xf32> -> vector<8x640xf32>
    %376 = tpu.concatenate %299, %375 in 0 : vector<8x640xf32>, vector<8x640xf32> -> vector<16x640xf32>
    %377 = arith.truncf %376 : vector<16x640xf32> to vector<16x640xbf16>
    %c1_120 = arith.constant 1 : index
    %c0_121 = arith.constant 0 : index
    %c0_122 = arith.constant 0 : index
    %378 = vector.load %arg5[%c1_120, %c0_121, %c0_122] : memref<2x640x128xbf16, #tpu.memory_space<vmem>>, vector<1x640x128xbf16>
    %379 = vector.shape_cast %378 : vector<1x640x128xbf16> to vector<640x128xbf16>
    %cst_123 = arith.constant dense<0.000000e+00> : vector<16x128xf32>
    %380 = tpu.matmul %377, %379, %cst_123 {dimension_numbers = #tpu.dot_dimension_numbers<[1], [0], [0], [1], [0, 0, 1, 1], [], []>} : vector<16x640xbf16>, vector<640x128xbf16>, vector<16x128xf32> -> vector<16x128xf32>
    %c1_124 = arith.constant 1 : index
    %c0_125 = arith.constant 0 : index
    %c0_126 = arith.constant 0 : index
    %381 = vector.load %arg6[%c1_124, %c0_125, %c0_126] : memref<2x1x128xf32, #tpu.memory_space<vmem>>, vector<1x1x128xf32>
    %382 = vector.shape_cast %381 : vector<1x1x128xf32> to vector<1x128xf32>
    %383 = vector.broadcast %382 : vector<1x128xf32> to vector<16x128xf32>
    %384 = arith.addf %380, %383 : vector<16x128xf32>
    %385 = arith.addf %384, %208 : vector<16x128xf32>
    %386 = arith.mulf %385, %385 : vector<16x128xf32>
    %cst_127 = arith.constant dense<0.000000e+00> : vector<16xf32>
    %387 = vector.multi_reduction <add>, %386, %cst_127 [1] : vector<16x128xf32> to vector<16xf32>
    %388 = vector.shape_cast %387 : vector<16xf32> to vector<16x1xf32>
    %cst_128 = arith.constant 1.000000e-10 : f32
    %389 = vector.broadcast %cst_128 : f32 to vector<16x1xf32>
    %390 = arith.maximumf %388, %389 : vector<16x1xf32>
    %391 = math.rsqrt %390 : vector<16x1xf32>
    %392 = vector.broadcast %391 : vector<16x1xf32> to vector<16x128xf32>
    %393 = arith.mulf %385, %392 : vector<16x128xf32>
    %394 = arith.truncf %393 : vector<16x128xf32> to vector<16x128xbf16>
    %c1_129 = arith.constant 1 : index
    %c0_130 = arith.constant 0 : index
    %c0_131 = arith.constant 0 : index
    %395 = vector.load %arg7[%c1_129, %c0_130, %c0_131] : memref<2x128x128xbf16, #tpu.memory_space<vmem>>, vector<1x128x128xbf16>
    %396 = vector.shape_cast %395 : vector<1x128x128xbf16> to vector<128x128xbf16>
    %cst_132 = arith.constant dense<0.000000e+00> : vector<16x128xf32>
    %397 = tpu.matmul %394, %396, %cst_132 {dimension_numbers = #tpu.dot_dimension_numbers<[1], [0], [0], [1], [0, 0, 1, 1], [], []>} : vector<16x128xbf16>, vector<128x128xbf16>, vector<16x128xf32> -> vector<16x128xf32>
    %c1_133 = arith.constant 1 : index
    %c0_134 = arith.constant 0 : index
    %c0_135 = arith.constant 0 : index
    %398 = vector.load %arg8[%c1_133, %c0_134, %c0_135] : memref<2x1x128xf32, #tpu.memory_space<vmem>>, vector<1x1x128xf32>
    %399 = vector.shape_cast %398 : vector<1x1x128xf32> to vector<1x128xf32>
    %400 = vector.broadcast %399 : vector<1x128xf32> to vector<16x128xf32>
    %401 = arith.addf %397, %400 : vector<16x128xf32>
    %cst_136 = arith.constant 0.000000e+00 : f32
    %402 = vector.broadcast %cst_136 : f32 to vector<16x128xf32>
    %403 = arith.maximumf %401, %402 : vector<16x128xf32>
    %404 = arith.truncf %403 : vector<16x128xf32> to vector<16x128xbf16>
    %c1_137 = arith.constant 1 : index
    %c0_138 = arith.constant 0 : index
    %c0_139 = arith.constant 0 : index
    %405 = vector.load %arg9[%c1_137, %c0_138, %c0_139] : memref<2x128x128xbf16, #tpu.memory_space<vmem>>, vector<1x128x128xbf16>
    %406 = vector.shape_cast %405 : vector<1x128x128xbf16> to vector<128x128xbf16>
    %cst_140 = arith.constant dense<0.000000e+00> : vector<16x128xf32>
    %407 = tpu.matmul %404, %406, %cst_140 {dimension_numbers = #tpu.dot_dimension_numbers<[1], [0], [0], [1], [0, 0, 1, 1], [], []>} : vector<16x128xbf16>, vector<128x128xbf16>, vector<16x128xf32> -> vector<16x128xf32>
    %c1_141 = arith.constant 1 : index
    %c0_142 = arith.constant 0 : index
    %c0_143 = arith.constant 0 : index
    %408 = vector.load %arg10[%c1_141, %c0_142, %c0_143] : memref<2x1x128xf32, #tpu.memory_space<vmem>>, vector<1x1x128xf32>
    %409 = vector.shape_cast %408 : vector<1x1x128xf32> to vector<1x128xf32>
    %410 = vector.broadcast %409 : vector<1x128xf32> to vector<16x128xf32>
    %411 = arith.addf %407, %410 : vector<16x128xf32>
    %412 = arith.addf %411, %385 : vector<16x128xf32>
    %413 = vector.extract_strided_slice %412 {offsets = [0, 0], sizes = [8, 128], strides = [1, 1]} : vector<16x128xf32> to vector<8x128xf32>
    %cst_144 = arith.constant dense<0.000000e+00> : vector<128xf32>
    %414 = vector.multi_reduction <add>, %413, %cst_144 [0] : vector<8x128xf32> to vector<128xf32>
    %415 = vector.shape_cast %414 : vector<128xf32> to vector<1x128xf32>
    %cst_145 = arith.constant 8.000000e+00 : f32
    %416 = vector.broadcast %cst_145 : f32 to vector<1x128xf32>
    %417 = arith.divf %415, %416 : vector<1x128xf32>
    %c0_146 = arith.constant 0 : index
    %c0_147 = arith.constant 0 : index
    %c0_148 = arith.constant 0 : index
    %418 = vector.load %arg11[%c0_146, %c0_147, %c0_148] : memref<2x1x128xf32, #tpu.memory_space<vmem>>, vector<1x1x128xf32>
    %419 = vector.shape_cast %418 : vector<1x1x128xf32> to vector<1x128xf32>
    %420 = vector.shape_cast %417 : vector<1x128xf32> to vector<1x1x128xf32>
    tpu.vector_store %arg11[%c0_146, %c0_147, %c0_148], %420 {strides = array<i32>} : memref<2x1x128xf32, #tpu.memory_space<vmem>>, vector<1x1x128xf32>,
    %421 = vector.extract_strided_slice %412 {offsets = [8, 0], sizes = [8, 128], strides = [1, 1]} : vector<16x128xf32> to vector<8x128xf32>
    %cst_149 = arith.constant dense<0.000000e+00> : vector<128xf32>
    %422 = vector.multi_reduction <add>, %421, %cst_149 [0] : vector<8x128xf32> to vector<128xf32>
    %423 = vector.shape_cast %422 : vector<128xf32> to vector<1x128xf32>
    %cst_150 = arith.constant 8.000000e+00 : f32
    %424 = vector.broadcast %cst_150 : f32 to vector<1x128xf32>
    %425 = arith.divf %423, %424 : vector<1x128xf32>
    %c1_151 = arith.constant 1 : index
    %c0_152 = arith.constant 0 : index
    %c0_153 = arith.constant 0 : index
    %426 = vector.load %arg11[%c1_151, %c0_152, %c0_153] : memref<2x1x128xf32, #tpu.memory_space<vmem>>, vector<1x1x128xf32>
    %427 = vector.shape_cast %426 : vector<1x1x128xf32> to vector<1x128xf32>
    %428 = vector.shape_cast %425 : vector<1x128xf32> to vector<1x1x128xf32>
    tpu.vector_store %arg11[%c1_151, %c0_152, %c0_153], %428 {strides = array<i32>} : memref<2x1x128xf32, #tpu.memory_space<vmem>>, vector<1x1x128xf32>,
    return
  }
  func.func @transform_0(%arg0: i32) -> (i32, i32) {
    %c0_i32 = arith.constant 0 : i32
    %c0_i32_0 = arith.constant 0 : i32
    return %arg0, %c0_i32 : i32, i32
  }
  func.func @transform_1(%arg0: i32) -> (i32, i32) {
    %c0_i32 = arith.constant 0 : i32
    %c0_i32_0 = arith.constant 0 : i32
    %c0_i32_1 = arith.constant 0 : i32
    return %c0_i32, %c0_i32_0 : i32, i32
  }
  func.func @transform_2(%arg0: i32) -> (i32, i32) {
    %c0_i32 = arith.constant 0 : i32
    %c0_i32_0 = arith.constant 0 : i32
    %c0_i32_1 = arith.constant 0 : i32
    return %c0_i32, %c0_i32_0 : i32, i32
  }
  func.func @transform_3(%arg0: i32) -> (i32, i32, i32) {
    %c0_i32 = arith.constant 0 : i32
    %c0_i32_0 = arith.constant 0 : i32
    %c0_i32_1 = arith.constant 0 : i32
    %c0_i32_2 = arith.constant 0 : i32
    return %c0_i32, %c0_i32_0, %c0_i32_1 : i32, i32, i32
  }
  func.func @transform_4(%arg0: i32) -> (i32, i32, i32) {
    %c0_i32 = arith.constant 0 : i32
    %c0_i32_0 = arith.constant 0 : i32
    %c0_i32_1 = arith.constant 0 : i32
    %c0_i32_2 = arith.constant 0 : i32
    return %c0_i32, %c0_i32_0, %c0_i32_1 : i32, i32, i32
  }
  func.func @transform_5(%arg0: i32) -> (i32, i32, i32) {
    %c0_i32 = arith.constant 0 : i32
    %c0_i32_0 = arith.constant 0 : i32
    %c0_i32_1 = arith.constant 0 : i32
    %c0_i32_2 = arith.constant 0 : i32
    return %c0_i32, %c0_i32_0, %c0_i32_1 : i32, i32, i32
  }
  func.func @transform_6(%arg0: i32) -> (i32, i32, i32) {
    %c0_i32 = arith.constant 0 : i32
    %c0_i32_0 = arith.constant 0 : i32
    %c0_i32_1 = arith.constant 0 : i32
    %c0_i32_2 = arith.constant 0 : i32
    return %c0_i32, %c0_i32_0, %c0_i32_1 : i32, i32, i32
  }
  func.func @transform_7(%arg0: i32) -> (i32, i32, i32) {
    %c0_i32 = arith.constant 0 : i32
    %c0_i32_0 = arith.constant 0 : i32
    %c0_i32_1 = arith.constant 0 : i32
    %c0_i32_2 = arith.constant 0 : i32
    return %c0_i32, %c0_i32_0, %c0_i32_1 : i32, i32, i32
  }
  func.func @transform_8(%arg0: i32) -> (i32, i32, i32) {
    %c0_i32 = arith.constant 0 : i32
    %c0_i32_0 = arith.constant 0 : i32
    %c0_i32_1 = arith.constant 0 : i32
    %c0_i32_2 = arith.constant 0 : i32
    return %c0_i32, %c0_i32_0, %c0_i32_1 : i32, i32, i32
  }
  func.func @transform_9(%arg0: i32) -> (i32, i32, i32) {
    %c0_i32 = arith.constant 0 : i32
    %c0_i32_0 = arith.constant 0 : i32
    %c0_i32_1 = arith.constant 0 : i32
    %c0_i32_2 = arith.constant 0 : i32
    return %c0_i32, %c0_i32_0, %c0_i32_1 : i32, i32, i32
  }
  func.func @transform_10(%arg0: i32) -> (i32, i32, i32) {
    %c0_i32 = arith.constant 0 : i32
    %c0_i32_0 = arith.constant 0 : i32
    %c0_i32_1 = arith.constant 0 : i32
    return %arg0, %c0_i32, %c0_i32_0 : i32, i32, i32
  }
}

</mosaic_0001>

<bundles_post_ra>
// kernel: _forward_impl.1
= control target key start
LH: loop header
LB: loop body
LE: loop exit
PB: predicated region body
PF: predicated region fallthrough
CT: control target
= control target key end

     0   :  { %15 = vsyncpa [#allocation3], 0  ;;  %s9296_s0 = inlined_call_operand.vmem [shape: bf16[16,128], index: 0, kind: input, shape index: {}]   ;;  %s9297_s1 = inlined_call_operand.vmem [shape: f32[16,128], index: 1, kind: input, shape index: {}]   ;;  %s9298_s2 = inlined_call_operand.vmem [shape: bf16[128,128], index: 2, kind: input, shape index: {}]   ;;  %s9299_s3 = inlined_call_operand.hbm [shape: bf16[2,128,1920], index: 3, kind: input, shape index: {}]   ;;  %s9300_s4 = inlined_call_operand.hbm [shape: bf16[2,640,128], index: 4, kind: input, shape index: {}]   ;;  %s9301_s5 = inlined_call_operand.vmem [shape: f32[2,1,128], index: 5, kind: input, shape index: {}]   ;;  %s9302_s6 = inlined_call_operand.hbm [shape: bf16[2,128,128], index: 6, kind: input, shape index: {}]   ;;  %s9303_s7 = inlined_call_operand.vmem [shape: f32[2,1,128], index: 7, kind: input, shape index: {}]   ;;  %s9304_s8 = inlined_call_operand.hbm [shape: bf16[2,128,128], index: 8, kind: input, shape index: {}]   ;;  %s9305_s9 = inlined_call_operand.vmem [shape: f32[2,1,128], index: 9, kind: input, shape index: {}]   ;;  %s9306_s10 = inlined_call_operand.hbm [shape: f32[2,1,128], index: 10, kind: output, shape index: {}]  }
   0x1   :  { %16 = vsyncpa [#allocation6], 0 }
   0x2   :  { %17 = vsyncpa [#allocation9], 0 }
   0x3   :  { %18 = vsyncpa [#allocation4], 0  ;;  %s8622_s13 = smov [#allocation5]  }
   0x4   :  { %s42_s14 = sshll.u32 %s8622_s13, 4  ;;  %s43_s14 = int_to_ptr.vmem [resolvable:$true] %s42_s14 }
   0x5   :  { %s8522_s15 = scalar_lea.vmem %s43_s14, 10240  ;;  %p8527_p1 = scmp.lt.s32.totalorder %s43_s14, %s43_s14 }
   0x6   :  { %p8523_p0 = scmp.ne.s32.totalorder %s43_s14, %s8522_s15  ;;  %p8528_p2 = scmp.lt.s32.totalorder %s8522_s15, %s8522_s15 }
   0x8   :  { %p8529_p3 = por %p8528_p2, %p8527_p1 }
   0xa   :  { %p8530_p4 = pnand %p8529_p3, %p8523_p0 }
   0xc   :  { %8533 = shalt.err (!%p8530_p4)
}
   0xd   :  { %s8623_s16 = smov 64   ;;  %s8624_s17 = smov 4  }
   0xe   :  { %48 = dma.hbm_to_vmem [thread:$0]  %s9300_s4, 10240, %s43_s14, [#allocation6], %s8623_s16, %s8623_s16, %s8624_s17  }
   0xf   :  { %s8625_s20 = smov [#allocation2]  }
  0x10   :  { %s30_s21 = sshll.u32 %s8625_s20, 4  ;;  %s31_s21 = int_to_ptr.vmem [resolvable:$true] %s30_s21 }
  0x11   :  { %s8542_s22 = scalar_lea.vmem %s31_s21, 30720  ;;  %p8547_p6 = scmp.lt.s32.totalorder %s31_s21, %s31_s21 }
  0x12   :  { %p8543_p5 = scmp.ne.s32.totalorder %s31_s21, %s8542_s22  ;;  %p8548_p7 = scmp.lt.s32.totalorder %s8542_s22, %s8542_s22 }
  0x14   :  { %p8549_p8 = por %p8548_p7, %p8547_p6 }
  0x16   :  { %p8550_p9 = pnand %p8549_p8, %p8543_p5 }
  0x18   :  { %8553 = shalt.err (!%p8550_p9)
}
  0x19   :  { %s8626_s23 = smov 960   ;;  %s8627_s24 = smov 60  }
  0x1a   :  { %36 = dma.hbm_to_vmem [thread:$0]  %s9299_s3, 30720, %s31_s21, [#allocation3], %s8626_s23, %s8626_s23, %s8627_s24  }
  0x1b   :  { %s8628_s27 = smov [#allocation7]   ;;  %s8629_s29 = smov [#allocation8]  }
  0x1c   :  { %s56_s28 = sshll.u32 %s8628_s27, 4  ;;  %s70_s4 = sshll.u32 %s8629_s29, 4  ;;  %s57_s28 = int_to_ptr.vmem [resolvable:$true] %s56_s28  ;;  %s71_s4 = int_to_ptr.vmem [resolvable:$true] %s70_s4 }
  0x1d   :  { %s8562_s30 = scalar_lea.vmem %s57_s28, 2048  ;;  %p8567_p11 = scmp.lt.s32.totalorder %s57_s28, %s57_s28 }
  0x1e   :  { %p8563_p10 = scmp.ne.s32.totalorder %s57_s28, %s8562_s30  ;;  %p8568_p12 = scmp.lt.s32.totalorder %s8562_s30, %s8562_s30 }
  0x20   :  { %p8569_p13 = por %p8568_p12, %p8567_p11 }
  0x22   :  { %p8570_p0 = pnand %p8569_p13, %p8563_p10 }
  0x24   :  { %8573 = shalt.err (!%p8570_p0)
}
  0x25   :  { %62 = dma.hbm_to_vmem [thread:$0]  %s9302_s6, 2048, %s57_s28, [#allocation6], %s8623_s16, %s8623_s16, %s8624_s17  }
  0x26   :  { %s8582_s3 = scalar_lea.vmem %s71_s4, 2048  ;;  %p8587_p2 = scmp.lt.s32.totalorder %s71_s4, %s71_s4 }
  0x27   :  { %p8583_p1 = scmp.ne.s32.totalorder %s71_s4, %s8582_s3  ;;  %p8588_p3 = scmp.lt.s32.totalorder %s8582_s3, %s8582_s3 }
  0x29   :  { %p8589_p4 = por %p8588_p3, %p8587_p2 }
  0x2b   :  { %p8590_p5 = pnand %p8589_p4, %p8583_p1 }
  0x2d   :  { %8593 = shalt.err (!%p8590_p5)
}
  0x2e   :  { %76 = dma.hbm_to_vmem [thread:$0]  %s9304_s8, 2048, %s71_s4, [#allocation9], %s8623_s16, %s8623_s16, %s8624_s17  }
  0x2f   :  { %8614 = dma.done.wait [#allocation3], 30720  }
  0x30   :  { %8615 = vsyncadd [#allocation3], 4294936576 }
  0x31   :  { %8616 = dma.done.wait [#allocation6], 12288  }
  0x32   :  { %8617 = vsyncadd [#allocation6], 4294955008 }
  0x33   :  { %8618 = dma.done.wait [#allocation9], 2048  }
  0x34   :  { %8619 = vsyncadd [#allocation9], 4294965248  ;;  %v8630_v0 = vmov 0.0   ;;  %vm8631_vm0 = vmmov 0   ;;  %v7945_v1 = vld [vmem:[%s9298_s2 + $0x38] sm:$0xff]   ;;  %v7946_v2 = vld [vmem:[%s9298_s2 + $0x30] sm:$0xff]  }
  0x35   :  { %7551 = vmatprep.subr.bf16.mxu0 %v8630_v0  ;;  %7567 = vmatprep.mubr.msk.bf16.mxu0 %vm8631_vm0, %v8630_v0  ;;  %v7947_v3 = vld [vmem:[%s9298_s2 + $0x28] sm:$0xff]   ;;  %v7948_v4 = vld [vmem:[%s9298_s2 + $0x20] sm:$0xff]   ;;  %v7949_v5 = vld [vmem:[%s9298_s2 + $0x18] sm:$0xff]   ;;  %v8632_v54 = vmov 0   ;;  %vm1368_vm1 = vcmask 64512  }
  0x36   :  { %7552 = vmatpush3.bf16.msra.mxu0 %v7945_v1  ;;  %v7950_v6 = vld [vmem:[%s9298_s2 + $0x10] sm:$0xff]   ;;  %v7951_v7 = vld [vmem:[%s9298_s2 + $0x8] sm:$0xff]   ;;  %v7952_v8 = vld [vmem:[%s9298_s2] sm:$0xff]   ;;  %988 = vmatprep.mubr.bf16.mxu1 %v8632_v54 }
  0x37   :  { %7553 = vmatprep.subr.bf16.mxu0 %v8630_v0  ;;  %v7953_v9 = vld [vmem:[%s9296_s0] sm:$0xff]   ;;  %v7954_v10 = vld [vmem:[#allocation2 + $0x34c] ss:$60 sps:$4 sm:$0xff]   ;;  %v7958_v12 = vld [vmem:[#allocation2 + $0x354] ss:$60 sps:$4 sm:$0xff]  }
  0x38   :  { %v7956_v11 = vld [vmem:[#allocation2 + $0x350] ss:$60 sps:$4 sm:$0xff]   ;;  %v7959_v13 = vld [vmem:[#allocation2 + $0x348] ss:$60 sps:$4 sm:$0xff]   ;;  %956 = vmatprep.subr.bf16.mxu1 %v7954_v10  ;;  %v7962_v15 = vld [vmem:[#allocation2 + $0x2d8] ss:$60 sps:$4 sm:$0xff]  }
  0x39   :  { %v7960_v14 = vld [vmem:[#allocation2 + $0x2d4] ss:$60 sps:$4 sm:$0xff]   ;;  %v7964_v16 = vld [vmem:[#allocation2 + $0x2dc] ss:$60 sps:$4 sm:$0xff]   ;;  %957 = vmatpush1.bf16.msra.mxu1 %v7959_v13  ;;  %v7970_v19 = vld [vmem:[#allocation2 + $0x264] ss:$60 sps:$4 sm:$0xff]  }
  0x3a   :  { %7554 = vmatpush3.bf16.msra.mxu0 %v7946_v2  ;;  %v7965_v17 = vld [vmem:[#allocation2 + $0x2d0] ss:$60 sps:$4 sm:$0xff]   ;;  %v7966_v18 = vld [vmem:[#allocation2 + $0x25c] ss:$60 sps:$4 sm:$0xff]   ;;  %958 = vmatprep.subr.bf16.mxu1 %v7960_v14  ;;  %v110_v21 = vld [vmem:[%s9297_s1] sm:$0xff] }
  0x3b   :  { %7555 = vmatprep.subr.bf16.mxu0 %v8630_v0  ;;  %v7968_v20 = vld [vmem:[#allocation2 + $0x260] ss:$60 sps:$4 sm:$0xff]   ;;  %v111_v25 = vld [vmem:[%s9297_s1 + $0x8] sm:$0xff]  ;;  %v7971_v31 = vld [vmem:[#allocation2 + $0x258] ss:$60 sps:$4 sm:$0xff]  }
  0x3c   :  { %v7972_v32 = vld [vmem:[#allocation2 + $0x1e4] ss:$60 sps:$4 sm:$0xff]   ;;  %v7976_v33 = vld [vmem:[#allocation2 + $0x1ec] ss:$60 sps:$4 sm:$0xff]   ;;  %v7982_v37 = vld [vmem:[#allocation2 + $0x174] ss:$60 sps:$4 sm:$0xff]  }
  0x3d   :  { %959 = vmatpush1.bf16.msra.mxu1 %v7965_v17  ;;  %v7974_v34 = vld [vmem:[#allocation2 + $0x1e8] ss:$60 sps:$4 sm:$0xff]   ;;  %v7977_v35 = vld [vmem:[#allocation2 + $0x1e0] ss:$60 sps:$4 sm:$0xff]   ;;  %v7980_v38 = vld [vmem:[#allocation2 + $0x170] ss:$60 sps:$4 sm:$0xff]  }
  0x3e   :  { %7556 = vmatpush3.bf16.msra.mxu0 %v7947_v3  ;;  %960 = vmatprep.subr.bf16.mxu1 %v7966_v18  ;;  %v7978_v36 = vld [vmem:[#allocation2 + $0x16c] ss:$60 sps:$4 sm:$0xff]   ;;  %v7984_v40 = vld [vmem:[#allocation2 + $0xf4] ss:$60 sps:$4 sm:$0xff]   ;;  %v7988_v41 = vld [vmem:[#allocation2 + $0xfc] ss:$60 sps:$4 sm:$0xff]  }
  0x3f   :  { %7557 = vmatprep.subr.bf16.mxu0 %v8630_v0  ;;  %v7983_v39 = vld [vmem:[#allocation2 + $0x168] ss:$60 sps:$4 sm:$0xff]   ;;  %v7986_v42 = vld [vmem:[#allocation2 + $0xf8] ss:$60 sps:$4 sm:$0xff]   ;;  %v7989_v43 = vld [vmem:[#allocation2 + $0xf0] ss:$60 sps:$4 sm:$0xff]  }
  0x40   :  { %v7990_v44 = vld [vmem:[#allocation2 + $0x7c] ss:$60 sps:$4 sm:$0xff]   ;;  %v7994_v45 = vld [vmem:[#allocation2 + $0x84] ss:$60 sps:$4 sm:$0xff]   ;;  %v8000_v49 = vld [vmem:[#allocation2 + $0xc] ss:$60 sps:$4 sm:$0xff]  }
  0x41   :  { %961 = vmatpush1.bf16.msra.mxu1 %v7971_v31  ;;  %v7992_v46 = vld [vmem:[#allocation2 + $0x80] ss:$60 sps:$4 sm:$0xff]   ;;  %v7995_v47 = vld [vmem:[#allocation2 + $0x78] ss:$60 sps:$4 sm:$0xff]   ;;  %v7998_v50 = vld [vmem:[#allocation2 + $0x8] ss:$60 sps:$4 sm:$0xff]  }
  0x42   :  { %7558 = vmatpush3.bf16.msra.mxu0 %v7948_v4  ;;  %962 = vmatprep.subr.bf16.mxu1 %v7972_v32  ;;  %v7996_v48 = vld [vmem:[#allocation2 + $0x4] ss:$60 sps:$4 sm:$0xff]   ;;  %v8004_v52 = vld [vmem:[#allocation2 + $0x35c] ss:$60 sps:$4 sm:$0xff]   ;;  %v8013_v4 = vld [vmem:[#allocation2 + $0x2ec] ss:$60 sps:$4 sm:$0xff]  }
  0x43   :  { %7559 = vmatprep.subr.bf16.mxu0 %v8630_v0  ;;  %v8001_v51 = vld [vmem:[#allocation2] ss:$60 sps:$4 sm:$0xff]   ;;  %v8002_v63 = vld [vmem:[#allocation2 + $0x358] ss:$60 sps:$4 sm:$0xff]   ;;  %v8017_v10 = vld [vmem:[#allocation2 + $0x270] ss:$60 sps:$4 sm:$0xff]  }
  0x44   :  { %v8007_v53 = vld [vmem:[#allocation2 + $0x364] ss:$60 sps:$4 sm:$0xff]   ;;  %v8020_v13 = vld [vmem:[#allocation2 + $0x1f0] ss:$60 sps:$4 sm:$0xff]   ;;  %v8023_v14 = vld [vmem:[#allocation2 + $0x1f8] ss:$60 sps:$4 sm:$0xff]  }
  0x45   :  { %963 = vmatpush1.bf16.msra.mxu1 %v7977_v35  ;;  %v8005_v1 = vld [vmem:[#allocation2 + $0x360] ss:$60 sps:$4 sm:$0xff]   ;;  %v8026_v17 = vld [vmem:[#allocation2 + $0x178] ss:$60 sps:$4 sm:$0xff]   ;;  %v8044_v31 = vld [vmem:[#allocation2 + $0x10] ss:$60 sps:$4 sm:$0xff]  }
  0x46   :  { %7560 = vmatpush3.bf16.msra.mxu0 %v7949_v5  ;;  %964 = vmatprep.subr.bf16.mxu1 %v7978_v36  ;;  %v8010_v3 = vld [vmem:[#allocation2 + $0x2e4] ss:$60 sps:$4 sm:$0xff]   ;;  %v8047_v32 = vld [vmem:[#allocation2 + $0x18] ss:$60 sps:$4 sm:$0xff]   ;;  %v8053_v36 = vld [vmem:[#allocation2 + $0x370] ss:$60 sps:$4 sm:$0xff]  }
  0x47   :  { %7561 = vmatprep.subr.bf16.mxu0 %v8630_v0  ;;  %v8008_v5 = vld [vmem:[#allocation2 + $0x2e0] ss:$60 sps:$4 sm:$0xff]   ;;  %v8050_v35 = vld [vmem:[#allocation2 + $0x368] ss:$60 sps:$4 sm:$0xff]  }
  0x48   :  { %v8029_v18 = vld [vmem:[#allocation2 + $0x180] ss:$60 sps:$4 sm:$0xff]  }
  0x49   :  { %965 = vmatpush1.bf16.msra.mxu1 %v7983_v39  ;;  %v8056_v39 = vld [vmem:[#allocation2 + $0x2f0] ss:$60 sps:$4 sm:$0xff]  }
  0x4a   :  { %7562 = vmatpush3.bf16.msra.mxu0 %v7950_v6  ;;  %966 = vmatprep.subr.bf16.mxu1 %v7984_v40  ;;  %v8011_v6 = vld [vmem:[#allocation2 + $0x2e8] ss:$60 sps:$4 sm:$0xff]   ;;  %v8059_v40 = vld [vmem:[#allocation2 + $0x2f8] ss:$60 sps:$4 sm:$0xff]  }
  0x4b   :  { %7563 = vmatprep.subr.bf16.mxu0 %v8630_v0 }
  0x4d   :  { %967 = vmatpush1.bf16.msra.mxu1 %v7989_v43  ;;  %v8062_v43 = vld [vmem:[#allocation2 + $0x278] ss:$60 sps:$4 sm:$0xff]  }
  0x4e   :  { %7564 = vmatpush3.bf16.msra.mxu0 %v7951_v7  ;;  %968 = vmatprep.subr.bf16.mxu1 %v7990_v44  ;;  %v8016_v7 = vld [vmem:[#allocation2 + $0x26c] ss:$60 sps:$4 sm:$0xff]   ;;  %v8065_v44 = vld [vmem:[#allocation2 + $0x280] ss:$60 sps:$4 sm:$0xff]  }
  0x4f   :  { %7565 = vmatprep.subr.bf16.mxu0 %v8630_v0 }
  0x51   :  { %969 = vmatpush1.bf16.msra.mxu1 %v7995_v47  ;;  %v8068_v47 = vld [vmem:[#allocation2 + $0x200] ss:$60 sps:$4 sm:$0xff]  }
  0x52   :  { %7566 = vmatpush3.bf16.msra.mxu0 %v7952_v8  ;;  %970 = vmatprep.subr.bf16.mxu1 %v7996_v48  ;;  %v8019_v8 = vld [vmem:[#allocation2 + $0x274] ss:$60 sps:$4 sm:$0xff]   ;;  %v8071_v48 = vld [vmem:[#allocation2 + $0x208] ss:$60 sps:$4 sm:$0xff]  }
  0x53   :  { %999 = vmatprep.subr.bf16.mxu0 %v7958_v12  ;;  %v8025_v12 = vld [vmem:[#allocation2 + $0x1fc] ss:$60 sps:$4 sm:$0xff]  }
  0x55   :  { %7568 = vmatmul.mubr.bf16.vlgmr.msra.gmra.mxu0 %v7953_v9  ;;  %971 = vmatpush1.bf16.msra.mxu1 %v8001_v51  ;;  %v8014_v9 = vld [vmem:[#allocation2 + $0x268] ss:$60 sps:$4 sm:$0xff]  }
  0x56   :  { %1000 = vmatpush1.bf16.msra.mxu0 %v7956_v11  ;;  %1031 = vmatprep.mubr.bf16.mxu0 %v8632_v54  ;;  %v8022_v11 = vld [vmem:[#allocation2 + $0x1f4] ss:$60 sps:$4 sm:$0xff]   ;;  %v8074_v51 = vld [vmem:[#allocation2 + $0x188] ss:$60 sps:$4 sm:$0xff]  }
  0x57   :  { %1001 = vmatprep.subr.bf16.mxu0 %v7964_v16  ;;  %1042 = vmatprep.subr.bf16.mxu1 %v8004_v52  ;;  %v8031_v16 = vld [vmem:[#allocation2 + $0x184] ss:$60 sps:$4 sm:$0xff]   ;;  %v8077_v52 = vld [vmem:[#allocation2 + $0x190] ss:$60 sps:$4 sm:$0xff]  }
  0x5a   :  { %1002 = vmatpush1.bf16.msra.mxu0 %v7962_v15  ;;  %v8028_v15 = vld [vmem:[#allocation2 + $0x17c] ss:$60 sps:$4 sm:$0xff]  }
  0x5b   :  { %1003 = vmatprep.subr.bf16.mxu0 %v7970_v19  ;;  %v8034_v19 = vld [vmem:[#allocation2 + $0x104] ss:$60 sps:$4 sm:$0xff]  }
  0x5e   :  { %1004 = vmatpush1.bf16.msra.mxu0 %v7968_v20  ;;  %v8037_v20 = vld [vmem:[#allocation2 + $0x10c] ss:$60 sps:$4 sm:$0xff]  }
  0x5f   :  { %1005 = vmatprep.subr.bf16.mxu0 %v7976_v33  ;;  %v8052_v33 = vld [vmem:[#allocation2 + $0x36c] ss:$60 sps:$4 sm:$0xff]  }
  0x62   :  { %1006 = vmatpush1.bf16.msra.mxu0 %v7974_v34  ;;  %v8055_v34 = vld [vmem:[#allocation2 + $0x374] ss:$60 sps:$4 sm:$0xff]  }
  0x63   :  { %1007 = vmatprep.subr.bf16.mxu0 %v7982_v37  ;;  %v8058_v37 = vld [vmem:[#allocation2 + $0x2f4] ss:$60 sps:$4 sm:$0xff]  }
  0x66   :  { %1008 = vmatpush1.bf16.msra.mxu0 %v7980_v38  ;;  %v8061_v38 = vld [vmem:[#allocation2 + $0x2fc] ss:$60 sps:$4 sm:$0xff]  }
  0x67   :  { %1009 = vmatprep.subr.bf16.mxu0 %v7988_v41  ;;  %v8064_v41 = vld [vmem:[#allocation2 + $0x27c] ss:$60 sps:$4 sm:$0xff]  }
  0x6a   :  { %1010 = vmatpush1.bf16.msra.mxu0 %v7986_v42  ;;  %v8067_v42 = vld [vmem:[#allocation2 + $0x284] ss:$60 sps:$4 sm:$0xff]  }
  0x6b   :  { %1011 = vmatprep.subr.bf16.mxu0 %v7994_v45  ;;  %v8070_v45 = vld [vmem:[#allocation2 + $0x204] ss:$60 sps:$4 sm:$0xff]  }
  0x6e   :  { %1012 = vmatpush1.bf16.msra.mxu0 %v7992_v46  ;;  %v8073_v46 = vld [vmem:[#allocation2 + $0x20c] ss:$60 sps:$4 sm:$0xff]  }
  0x6f   :  { %1013 = vmatprep.subr.bf16.mxu0 %v8000_v49  ;;  %v8076_v49 = vld [vmem:[#allocation2 + $0x18c] ss:$60 sps:$4 sm:$0xff]  }
  0x72   :  { %1014 = vmatpush1.bf16.msra.mxu0 %v7998_v50  ;;  %v8079_v50 = vld [vmem:[#allocation2 + $0x194] ss:$60 sps:$4 sm:$0xff]  }
  0x73   :  { %1085 = vmatprep.subr.bf16.mxu0 %v8007_v53  ;;  %v8082_v53 = vld [vmem:[#allocation2 + $0x114] ss:$60 sps:$4 sm:$0xff]  }
 0x115   :  { %v200_v22 = vpop.f32.mrf.mxu0 }
 0x116   :  { %v8752_v23 = vadd.f32 %v200_v22, %v110_v21  ;;  %v8032_v21 = vld [vmem:[#allocation2 + $0x100] ss:$60 sps:$4 sm:$0xff]   ;;  %v8035_v22 = vld [vmem:[#allocation2 + $0x108] ss:$60 sps:$4 sm:$0xff]  }
 0x117   :  { %v7569_v24 = vpop.f32.mrf.mxu0 }
 0x118   :  { %v207_v26 = vmul.f32 %v8752_v23, %v8752_v23  ;;  %v8040_v24 = vld [vmem:[#allocation2 + $0x8c] ss:$60 sps:$4 sm:$0xff]  }
 0x119   :  { %v203_v27 = vpop.f32.mrf.mxu0 }
 0x11a   :  { %v8759_v28 = vadd.f32 %v203_v27, %v111_v25  ;;  %209 = vadd.xlane.f32.xlu0 %v207_v26  ;;  %v8043_v25 = vld [vmem:[#allocation2 + $0x94] ss:$60 sps:$4 sm:$0xff]   ;;  %v8038_v26 = vld [vmem:[#allocation2 + $0x88] ss:$60 sps:$4 sm:$0xff]  }
 0x11b   :  { %v7570_v29 = vpop.f32.mrf.mxu0  ;;  %v8041_v27 = vld [vmem:[#allocation2 + $0x90] ss:$60 sps:$4 sm:$0xff]  }
 0x11c   :  { %v208_v30 = vmul.f32 %v8759_v28, %v8759_v28  ;;  %v8046_v29 = vld [vmem:[#allocation2 + $0x14] ss:$60 sps:$4 sm:$0xff]  }
 0x11e   :  { %211 = vadd.xlane.f32.xlu0 %v208_v30  ;;  %v8049_v30 = vld [vmem:[#allocation2 + $0x1c] ss:$60 sps:$4 sm:$0xff]  }
 0x1a3   :  { %v210_v55 = vpop.xlane.xlu0 %209 }
 0x1a4   :  { %v213_v56 = vmax.f32 %v210_v55, 1e-10  ;;  %v8085_v55 = vld [vmem:[#allocation2 + $0x11c] ss:$60 sps:$4 sm:$0xff]  }
 0x1a6   :  { %8418 = vrsqrt.f32 %v213_v56  ;;  %v8080_v56 = vld [vmem:[#allocation2 + $0x110] ss:$60 sps:$4 sm:$0xff]  }
 0x1a7   :  { %v212_v57 = vpop.xlane.xlu0 %211 }
 0x1a8   :  { %v214_v58 = vmax.f32 %v212_v57, 1e-10  ;;  %v8083_v57 = vld [vmem:[#allocation2 + $0x118] ss:$60 sps:$4 sm:$0xff]  }
 0x1aa   :  { %8420 = vrsqrt.f32 %v214_v58  ;;  %v8088_v58 = vld [vmem:[#allocation2 + $0x9c] ss:$60 sps:$4 sm:$0xff]  }
 0x1b3   :  { %v8419_v59 = vpop.eup %8418 }
 0x1b4   :  { %v217_v61 = vmul.f32 %v8419_v59, %v8752_v23  ;;  %v8091_v59 = vld [vmem:[#allocation2 + $0xa4] ss:$60 sps:$4 sm:$0xff]  }
 0x1b7   :  { %v8421_v60 = vpop.eup %8420 }
 0x1b8   :  { %v218_v62 = vmul.f32 %v8421_v60, %v8759_v28  ;;  %v8086_v60 = vld [vmem:[#allocation2 + $0x98] ss:$60 sps:$4 sm:$0xff]  }
 0x1ba   :  { %v8767_v2 = vpack.c.bf16 %v218_v62, %v217_v61  ;;  %v8089_v61 = vld [vmem:[#allocation2 + $0xa0] ss:$60 sps:$4 sm:$0xff]  }
 0x1bb   :  { %v8094_v62 = vld [vmem:[#allocation2 + $0x24] ss:$60 sps:$4 sm:$0xff]  }
 0x1bc   :  { %989 = vmatmul.mubr.bf16.vlgmr.msra.gmra.mxu1 %v8767_v2  ;;  %1032 = vmatmul.mubr.bf16.vlgmr.msra.gmra.mxu0 %v8767_v2 }
 0x1bd   :  { %1043 = vmatpush1.bf16.msra.mxu1 %v8002_v63  ;;  %1086 = vmatpush1.bf16.msra.mxu0 %v8005_v1  ;;  %v8097_v63 = vld [vmem:[#allocation2 + $0x2c] ss:$60 sps:$4 sm:$0xff]   ;;  %v8092_v1 = vld [vmem:[#allocation2 + $0x20] ss:$60 sps:$4 sm:$0xff]  }
 0x1be   :  { %1044 = vmatprep.subr.bf16.mxu1 %v8010_v3  ;;  %1087 = vmatprep.subr.bf16.mxu0 %v8013_v4  ;;  %v8095_v3 = vld [vmem:[#allocation2 + $0x28] ss:$60 sps:$4 sm:$0xff]   ;;  %v8100_v4 = vld [vmem:[#allocation2 + $0x37c] ss:$60 sps:$4 sm:$0xff]  }
 0x1bf   :  { %1074 = vmatprep.mubr.bf16.mxu1 %v8632_v54  ;;  %1117 = vmatprep.mubr.bf16.mxu0 %v8632_v54 }
 0x1c1   :  { %1045 = vmatpush1.bf16.msra.mxu1 %v8008_v5  ;;  %1088 = vmatpush1.bf16.msra.mxu0 %v8011_v6  ;;  %v8098_v5 = vld [vmem:[#allocation2 + $0x378] ss:$60 sps:$4 sm:$0xff]   ;;  %v8101_v6 = vld [vmem:[#allocation2 + $0x380] ss:$60 sps:$4 sm:$0xff]  }
 0x1c2   :  { %1046 = vmatprep.subr.bf16.mxu1 %v8016_v7  ;;  %1089 = vmatprep.subr.bf16.mxu0 %v8019_v8  ;;  %v8104_v7 = vld [vmem:[#allocation2 + $0x304] ss:$60 sps:$4 sm:$0xff]  }
 0x1c3   :  { %v8102_v8 = vld [vmem:[#allocation2 + $0x300] ss:$60 sps:$4 sm:$0xff]  }
 0x1c5   :  { %1047 = vmatpush1.bf16.msra.mxu1 %v8014_v9  ;;  %1090 = vmatpush1.bf16.msra.mxu0 %v8017_v10  ;;  %v8105_v9 = vld [vmem:[#allocation2 + $0x308] ss:$60 sps:$4 sm:$0xff]  }
 0x1c6   :  { %1048 = vmatprep.subr.bf16.mxu1 %v8022_v11  ;;  %1091 = vmatprep.subr.bf16.mxu0 %v8025_v12  ;;  %v8108_v10 = vld [vmem:[#allocation2 + $0x28c] ss:$60 sps:$4 sm:$0xff]  }
 0x1c7   :  { %v8106_v11 = vld [vmem:[#allocation2 + $0x288] ss:$60 sps:$4 sm:$0xff]   ;;  %v8109_v12 = vld [vmem:[#allocation2 + $0x290] ss:$60 sps:$4 sm:$0xff]  }
 0x1c9   :  { %1049 = vmatpush1.bf16.msra.mxu1 %v8020_v13  ;;  %1092 = vmatpush1.bf16.msra.mxu0 %v8023_v14  ;;  %v8112_v13 = vld [vmem:[#allocation2 + $0x214] ss:$60 sps:$4 sm:$0xff]  }
 0x1ca   :  { %1050 = vmatprep.subr.bf16.mxu1 %v8028_v15  ;;  %1093 = vmatprep.subr.bf16.mxu0 %v8031_v16  ;;  %v8110_v14 = vld [vmem:[#allocation2 + $0x210] ss:$60 sps:$4 sm:$0xff]   ;;  %v8113_v15 = vld [vmem:[#allocation2 + $0x218] ss:$60 sps:$4 sm:$0xff]  }
 0x1cb   :  { %v8116_v16 = vld [vmem:[#allocation2 + $0x19c] ss:$60 sps:$4 sm:$0xff]  }
 0x1cd   :  { %1051 = vmatpush1.bf16.msra.mxu1 %v8026_v17  ;;  %1094 = vmatpush1.bf16.msra.mxu0 %v8029_v18  ;;  %v8114_v17 = vld [vmem:[#allocation2 + $0x198] ss:$60 sps:$4 sm:$0xff]   ;;  %v8117_v18 = vld [vmem:[#allocation2 + $0x1a0] ss:$60 sps:$4 sm:$0xff]  }
 0x1ce   :  { %1052 = vmatprep.subr.bf16.mxu1 %v8034_v19  ;;  %1095 = vmatprep.subr.bf16.mxu0 %v8037_v20  ;;  %v8120_v19 = vld [vmem:[#allocation2 + $0x124] ss:$60 sps:$4 sm:$0xff]  }
 0x1cf   :  { %v8118_v20 = vld [vmem:[#allocation2 + $0x120] ss:$60 sps:$4 sm:$0xff]  }
 0x1d1   :  { %1053 = vmatpush1.bf16.msra.mxu1 %v8032_v21  ;;  %1096 = vmatpush1.bf16.msra.mxu0 %v8035_v22  ;;  %v8121_v21 = vld [vmem:[#allocation2 + $0x128] ss:$60 sps:$4 sm:$0xff]  }
 0x1d2   :  { %1054 = vmatprep.subr.bf16.mxu1 %v8040_v24  ;;  %1097 = vmatprep.subr.bf16.mxu0 %v8043_v25  ;;  %v8124_v22 = vld [vmem:[#allocation2 + $0xac] ss:$60 sps:$4 sm:$0xff]  }
 0x1d3   :  { %v8122_v24 = vld [vmem:[#allocation2 + $0xa8] ss:$60 sps:$4 sm:$0xff]   ;;  %v8125_v25 = vld [vmem:[#allocation2 + $0xb0] ss:$60 sps:$4 sm:$0xff]  }
 0x1d5   :  { %1055 = vmatpush1.bf16.msra.mxu1 %v8038_v26  ;;  %1098 = vmatpush1.bf16.msra.mxu0 %v8041_v27  ;;  %v8128_v26 = vld [vmem:[#allocation2 + $0x34] ss:$60 sps:$4 sm:$0xff]  }
 0x1d6   :  { %1056 = vmatprep.subr.bf16.mxu1 %v8046_v29  ;;  %1099 = vmatprep.subr.bf16.mxu0 %v8049_v30  ;;  %v8126_v27 = vld [vmem:[#allocation2 + $0x30] ss:$60 sps:$4 sm:$0xff]   ;;  %v8129_v29 = vld [vmem:[#allocation2 + $0x38] ss:$60 sps:$4 sm:$0xff]  }
 0x1d9   :  { %1057 = vmatpush1.bf16.msra.mxu1 %v8044_v31  ;;  %1100 = vmatpush1.bf16.msra.mxu0 %v8047_v32 }
 0x1da   :  { %1128 = vmatprep.subr.bf16.mxu1 %v8052_v33  ;;  %1171 = vmatprep.subr.bf16.mxu0 %v8055_v34 }
 0x1dc   :  { %1075 = vmatmul.mubr.bf16.vlgmr.msra.gmra.mxu1 %v8767_v2  ;;  %1118 = vmatmul.mubr.bf16.vlgmr.msra.gmra.mxu0 %v8767_v2 }
 0x1dd   :  { %1129 = vmatpush1.bf16.msra.mxu1 %v8050_v35  ;;  %1172 = vmatpush1.bf16.msra.mxu0 %v8053_v36 }
 0x1de   :  { %1130 = vmatprep.subr.bf16.mxu1 %v8058_v37  ;;  %1173 = vmatprep.subr.bf16.mxu0 %v8061_v38 }
 0x1df   :  { %1160 = vmatprep.mubr.bf16.mxu1 %v8632_v54  ;;  %1203 = vmatprep.mubr.bf16.mxu0 %v8632_v54 }
 0x1e1   :  { %1131 = vmatpush1.bf16.msra.mxu1 %v8056_v39  ;;  %1174 = vmatpush1.bf16.msra.mxu0 %v8059_v40 }
 0x1e2   :  { %1132 = vmatprep.subr.bf16.mxu1 %v8064_v41  ;;  %1175 = vmatprep.subr.bf16.mxu0 %v8067_v42 }
 0x1e5   :  { %1133 = vmatpush1.bf16.msra.mxu1 %v8062_v43  ;;  %1176 = vmatpush1.bf16.msra.mxu0 %v8065_v44 }
 0x1e6   :  { %1134 = vmatprep.subr.bf16.mxu1 %v8070_v45  ;;  %1177 = vmatprep.subr.bf16.mxu0 %v8073_v46 }
 0x1e9   :  { %1135 = vmatpush1.bf16.msra.mxu1 %v8068_v47  ;;  %1178 = vmatpush1.bf16.msra.mxu0 %v8071_v48 }
 0x1ea   :  { %1136 = vmatprep.subr.bf16.mxu1 %v8076_v49  ;;  %1179 = vmatprep.subr.bf16.mxu0 %v8079_v50 }
 0x1ed   :  { %1137 = vmatpush1.bf16.msra.mxu1 %v8074_v51  ;;  %1180 = vmatpush1.bf16.msra.mxu0 %v8077_v52 }
 0x1ee   :  { %1138 = vmatprep.subr.bf16.mxu1 %v8082_v53  ;;  %1181 = vmatprep.subr.bf16.mxu0 %v8085_v55 }
 0x1f1   :  { %1139 = vmatpush1.bf16.msra.mxu1 %v8080_v56  ;;  %1182 = vmatpush1.bf16.msra.mxu0 %v8083_v57 }
 0x1f2   :  { %1140 = vmatprep.subr.bf16.mxu1 %v8088_v58  ;;  %1183 = vmatprep.subr.bf16.mxu0 %v8091_v59 }
 0x1f5   :  { %1141 = vmatpush1.bf16.msra.mxu1 %v8086_v60  ;;  %1184 = vmatpush1.bf16.msra.mxu0 %v8089_v61 }
 0x1f6   :  { %1142 = vmatprep.subr.bf16.mxu1 %v8094_v62  ;;  %1185 = vmatprep.subr.bf16.mxu0 %v8097_v63 }
 0x1f9   :  { %1143 = vmatpush1.bf16.msra.mxu1 %v8092_v1  ;;  %1186 = vmatpush1.bf16.msra.mxu0 %v8095_v3 }
 0x1fa   :  { %1214 = vmatprep.subr.bf16.mxu1 %v8100_v4  ;;  %7571 = vmatprep.subr.bf16.mxu0 %v8630_v0 }
 0x1fc   :  { %1161 = vmatmul.mubr.bf16.vlgmr.msra.gmra.mxu1 %v8767_v2  ;;  %1204 = vmatmul.mubr.bf16.vlgmr.msra.gmra.mxu0 %v8767_v2 }
 0x1fd   :  { %1215 = vmatpush1.bf16.msra.mxu1 %v8098_v5  ;;  %7572 = vmatpush3.bf16.msra.mxu0 %v8101_v6 }
 0x1fe   :  { %1216 = vmatprep.subr.bf16.mxu1 %v8104_v7  ;;  %7573 = vmatprep.subr.bf16.mxu0 %v8630_v0 }
 0x1ff   :  { %1246 = vmatprep.mubr.bf16.mxu1 %v8632_v54  ;;  %7587 = vmatprep.mubr.msk.bf16.mxu0 %vm8631_vm0, %v8630_v0 }
 0x201   :  { %1217 = vmatpush1.bf16.msra.mxu1 %v8102_v8  ;;  %7574 = vmatpush3.bf16.msra.mxu0 %v8105_v9 }
 0x202   :  { %1218 = vmatprep.subr.bf16.mxu1 %v8108_v10  ;;  %7575 = vmatprep.subr.bf16.mxu0 %v8630_v0 }
 0x205   :  { %1219 = vmatpush1.bf16.msra.mxu1 %v8106_v11  ;;  %7576 = vmatpush3.bf16.msra.mxu0 %v8109_v12 }
 0x206   :  { %1220 = vmatprep.subr.bf16.mxu1 %v8112_v13  ;;  %7577 = vmatprep.subr.bf16.mxu0 %v8630_v0 }
 0x209   :  { %1221 = vmatpush1.bf16.msra.mxu1 %v8110_v14  ;;  %7578 = vmatpush3.bf16.msra.mxu0 %v8113_v15 }
 0x20a   :  { %1222 = vmatprep.subr.bf16.mxu1 %v8116_v16  ;;  %7579 = vmatprep.subr.bf16.mxu0 %v8630_v0 }
 0x20d   :  { %1223 = vmatpush1.bf16.msra.mxu1 %v8114_v17  ;;  %7580 = vmatpush3.bf16.msra.mxu0 %v8117_v18 }
 0x20e   :  { %1224 = vmatprep.subr.bf16.mxu1 %v8120_v19  ;;  %7581 = vmatprep.subr.bf16.mxu0 %v8630_v0 }
 0x211   :  { %1225 = vmatpush1.bf16.msra.mxu1 %v8118_v20  ;;  %7582 = vmatpush3.bf16.msra.mxu0 %v8121_v21 }
 0x212   :  { %1226 = vmatprep.subr.bf16.mxu1 %v8124_v22  ;;  %7583 = vmatprep.subr.bf16.mxu0 %v8630_v0 }
 0x215   :  { %1227 = vmatpush1.bf16.msra.mxu1 %v8122_v24  ;;  %7584 = vmatpush3.bf16.msra.mxu0 %v8125_v25 }
 0x216   :  { %1228 = vmatprep.subr.bf16.mxu1 %v8128_v26  ;;  %7585 = vmatprep.subr.bf16.mxu0 %v8630_v0 }
 0x219   :  { %1229 = vmatpush1.bf16.msra.mxu1 %v8126_v27  ;;  %7586 = vmatpush3.bf16.msra.mxu0 %v8129_v29 }
 0x21a   :  { %7591 = vmatprep.subr.mxu1 %v8630_v0  ;;  %7671 = vmatprep.subr.mxu0 %v8630_v0 }
 0x21c   :  { %1247 = vmatmul.mubr.bf16.vlgmr.msra.gmra.mxu1 %v8767_v2  ;;  %7588 = vmatmul.mubr.bf16.vlgmr.msra.gmra.mxu0 %v8767_v2 }
 0x21d   :  { %7593 = vmatprep.mubr.msk.f32.mxu1 %vm8631_vm0, %v8630_v0  ;;  %7673 = vmatprep.mubr.msk.f32.mxu0 %vm8631_vm0, %v8630_v0 }
 0x27c   :  { %v990_v30 = vpop.f32.mrf.mxu1  ;;  %v8806_v36 = vpop.f32.mrf.mxu0 }
 0x27e   :  { %v8798_v31 = vpop.f32.mrf.mxu1  ;;  %v8811_v2 = vpop.f32.mrf.mxu0 }
 0x280   :  { %v8800_v32 = vpop.f32.mrf.mxu1  ;;  %v8813_v37 = vpop.f32.mrf.mxu0 }
 0x282   :  { %v8802_v33 = vpop.f32.mrf.mxu1  ;;  %v1039_v38 = vpop.f32.mrf.mxu0 }
 0x29c   :  { %v8804_v34 = vpop.f32.mrf.mxu1  ;;  %v1119_v39 = vpop.f32.mrf.mxu0 }
 0x29e   :  { %v1078_v35 = vpop.f32.mrf.mxu1  ;;  %v8815_v40 = vpop.f32.mrf.mxu0 }
 0x29f   :  { %7592 = vmatpush3.xpose.msra.mxu1 %v1078_v35 }
 0x2a0   :  { %7596 = vmatprep.subr.mxu1 %v8630_v0  ;;  %v1080_v41 = vpop.f32.mrf.mxu1  ;;  %v8817_v42 = vpop.f32.mrf.mxu0 }
 0x2a2   :  { %7594 = vmatmul.mubr.f32.vlgmr.msra.gmra.mxu1 %v990_v30  ;;  %v8819_v43 = vpop.f32.mrf.mxu1  ;;  %v8821_v44 = vpop.f32.mrf.mxu0 }
 0x2a3   :  { %7598 = vmatprep.mubr.msk.f32.mxu1 %vm8631_vm0, %v8630_v0 }
 0x2bc   :  { %v8823_v45 = vpop.f32.mrf.mxu1  ;;  %v1205_v46 = vpop.f32.mrf.mxu0 }
 0x2bd   :  { %7597 = vmatpush3.msra.mxu1 %v1205_v46 }
 0x2be   :  { %v8825_v47 = vpop.f32.mrf.mxu1  ;;  %7601 = vmatprep.subr.mxu1 %v8630_v0  ;;  %v1207_v50 = vpop.f32.mrf.mxu0 }
 0x2c0   :  { %v1166_v48 = vpop.f32.mrf.mxu1  ;;  %v8831_v51 = vpop.f32.mrf.mxu0 }
 0x2c1   :  { %7672 = vmatpush3.xpose.msra.mxu0 %v1166_v48 }
 0x2c2   :  { %7681 = vmatprep.subr.mxu0 %v8630_v0  ;;  %v1168_v49 = vpop.f32.mrf.mxu1  ;;  %v8833_v52 = vpop.f32.mrf.mxu0 }
 0x2c4   :  { %7674 = vmatmul.mubr.f32.vlgmr.msra.gmra.mxu0 %v1039_v38 }
 0x2c5   :  { %7682 = vmatpush3.xpose.msra.mxu0 %v1168_v49  ;;  %7683 = vmatprep.mubr.msk.f32.mxu0 %vm8631_vm0, %v8630_v0 }
 0x2c8   :  { %7684 = vmatmul.mubr.f32.vlgmr.msra.gmra.mxu0 %v1080_v41 }
 0x2dc   :  { %v8835_v53 = vpop.f32.mrf.mxu0  ;;  %v1248_v58 = vpop.f32.mrf.mxu1 }
 0x2de   :  { %v7589_v55 = vpop.f32.mrf.mxu0  ;;  %v8839_v59 = vpop.f32.mrf.mxu1 }
 0x2e0   :  { %v8837_v56 = vpop.f32.mrf.mxu0  ;;  %v8841_v60 = vpop.f32.mrf.mxu1 }
 0x2e2   :  { %v7590_v57 = vpop.f32.mrf.mxu0  ;;  %v8843_v61 = vpop.f32.mrf.mxu1 }
 0x362   :  { %v1364_v62 = vpop.f32.mrf.mxu1 }
 0x363   :  { %v1369_v63 = vsel %vm1368_vm1, %v1364_v62, -inf }
 0x364   :  { %1370 = vmax.xlane.f32.xlu1 %v1369_v63  ;;  %v7595_v1 = vpop.f32.mrf.mxu1 }
 0x384   :  { %v8846_v3 = vpop.f32.mrf.mxu0 }
 0x386   :  { %v7675_v4 = vpop.f32.mrf.mxu0 }
 0x388   :  { %v8848_v5 = vpop.f32.mrf.mxu0 }
 0x38a   :  { %v7685_v6 = vpop.f32.mrf.mxu0 }
 0x3ed   :  { %v1371_v7 = vpop.xlane.xlu1 %1370 }
 0x3ee   :  { %v1372_v8 = vsub.f32 %v1364_v62, %v1371_v7 }
 0x3f0   :  { %v1373_v9 = vmul.f32 1.442695, %v1372_v8 }
 0x3f2   :  { %8422 = vpow2.f32 %v1373_v9 }
 0x3ff   :  { %v8423_v10 = vpop.eup %8422 }
 0x400   :  { %v1375_v11 = vsel %vm1368_vm1, %v8423_v10, 0.0 }
 0x401   :  { %1376 = vadd.xlane.f32.xlu1 %v1375_v11 }
 0x48a   :  { %v1377_v12 = vpop.xlane.xlu1 %1376 }
 0x48b   :  { %8424 = vrcp.f32 %v1377_v12 }
 0x498   :  { %v8425_v13 = vpop.eup %8424 }
 0x499   :  { %v1379_v14 = vmul.f32 %v8425_v13, %v8423_v10 }
 0x49b   :  { %7599 = vmatmul.mubr.msk.f32.vlgmr.msra.gmra.mxu1 %vm1368_vm1, %v1379_v14 }
 0x49c   :  { %7602 = vmatpush3.xpose.msra.mxu1 %v1119_v39  ;;  %7603 = vmatprep.mubr.msk.f32.mxu1 %vm8631_vm0, %v8630_v0 }
 0x49d   :  { %7606 = vmatprep.subr.mxu1 %v8630_v0 }
 0x49f   :  { %7604 = vmatmul.mubr.f32.vlgmr.msra.gmra.mxu1 %v8798_v31 }
 0x4a0   :  { %7607 = vmatpush3.msra.mxu1 %v1207_v50  ;;  %7608 = vmatprep.mubr.msk.f32.mxu1 %vm8631_vm0, %v8630_v0 }
 0x4a1   :  { %7611 = vmatprep.subr.mxu1 %v8630_v0 }
 0x55b   :  { %v8859_v15 = vpop.f32.mrf.mxu1 }
 0x55d   :  { %v7600_v16 = vpop.f32.mrf.mxu1 }
 0x55f   :  { %v1519_v17 = vpop.f32.mrf.mxu1 }
 0x560   :  { %v1523_v18 = vsel %vm1368_vm1, %v1519_v17, -inf }
 0x561   :  { %1524 = vmax.xlane.f32.xlu0 %v1523_v18  ;;  %v7605_v19 = vpop.f32.mrf.mxu1 }
 0x5ea   :  { %v1525_v20 = vpop.xlane.xlu0 %1524 }
 0x5eb   :  { %v1526_v21 = vsub.f32 %v1519_v17, %v1525_v20 }
 0x5ed   :  { %v1527_v22 = vmul.f32 1.442695, %v1526_v21 }
 0x5ef   :  { %8426 = vpow2.f32 %v1527_v22 }
 0x5fc   :  { %v8427_v24 = vpop.eup %8426 }
 0x5fd   :  { %v1529_v25 = vsel %vm1368_vm1, %v8427_v24, 0.0 }
 0x5fe   :  { %1530 = vadd.xlane.f32.xlu1 %v1529_v25 }
 0x687   :  { %v1531_v26 = vpop.xlane.xlu1 %1530 }
 0x688   :  { %8428 = vrcp.f32 %v1531_v26 }
 0x695   :  { %v8429_v27 = vpop.eup %8428 }
 0x696   :  { %v1533_v29 = vmul.f32 %v8429_v27, %v8427_v24 }
 0x698   :  { %7609 = vmatmul.mubr.msk.f32.vlgmr.msra.gmra.mxu1 %vm1368_vm1, %v1533_v29 }
 0x699   :  { %7612 = vmatpush3.xpose.msra.mxu1 %v8815_v40  ;;  %7613 = vmatprep.mubr.msk.f32.mxu1 %vm8631_vm0, %v8630_v0 }
 0x69a   :  { %7616 = vmatprep.subr.mxu1 %v8630_v0 }
 0x69c   :  { %7614 = vmatmul.mubr.f32.vlgmr.msra.gmra.mxu1 %v8806_v36 }
 0x69d   :  { %7617 = vmatpush3.msra.mxu1 %v1248_v58  ;;  %7618 = vmatprep.mubr.msk.f32.mxu1 %vm8631_vm0, %v8630_v0 }
 0x69e   :  { %7621 = vmatprep.subr.mxu1 %v8630_v0 }
 0x758   :  { %v8872_v30 = vpop.f32.mrf.mxu1 }
 0x75a   :  { %v7610_v31 = vpop.f32.mrf.mxu1 }
 0x75c   :  { %v1673_v35 = vpop.f32.mrf.mxu1 }
 0x75d   :  { %v1677_v38 = vsel %vm1368_vm1, %v1673_v35, -inf }
 0x75e   :  { %1678 = vmax.xlane.f32.xlu0 %v1677_v38  ;;  %v7615_v39 = vpop.f32.mrf.mxu1 }
 0x7e7   :  { %v1679_v40 = vpop.xlane.xlu0 %1678 }
 0x7e8   :  { %v1680_v41 = vsub.f32 %v1673_v35, %v1679_v40 }
 0x7ea   :  { %v1681_v46 = vmul.f32 1.442695, %v1680_v41 }
 0x7ec   :  { %8430 = vpow2.f32 %v1681_v46 }
 0x7f9   :  { %v8431_v48 = vpop.eup %8430 }
 0x7fa   :  { %v1683_v36 = vsel %vm1368_vm1, %v8431_v48, 0.0 }
 0x7fb   :  { %1684 = vadd.xlane.f32.xlu1 %v1683_v36 }
 0x884   :  { %v1685_v49 = vpop.xlane.xlu1 %1684 }
 0x885   :  { %8432 = vrcp.f32 %v1685_v49 }
 0x892   :  { %v8433_v50 = vpop.eup %8432 }
 0x893   :  { %v1687_v55 = vmul.f32 %v8433_v50, %v8431_v48  ;;  %v2601_v50 = vsel %vm1368_vm1, %v8846_v3, -inf }
 0x895   :  { %7619 = vmatmul.mubr.msk.f32.vlgmr.msra.gmra.mxu1 %vm1368_vm1, %v1687_v55  ;;  %v8130_v55 = vld [vmem:[#allocation5 + $0x78] sm:$0xff]  }
 0x896   :  { %7622 = vmatpush3.xpose.msra.mxu1 %v8823_v45  ;;  %7623 = vmatprep.mubr.msk.f32.mxu1 %vm8631_vm0, %v8630_v0 }
 0x897   :  { %7626 = vmatprep.subr.mxu1 %v8630_v0  ;;  %7360 = vmatprep.subr.bf16.mxu0 %v8130_v55 }
 0x899   :  { %7624 = vmatmul.mubr.f32.vlgmr.msra.gmra.mxu1 %v8811_v2 }
 0x89a   :  { %7627 = vmatpush3.msra.mxu1 %v8839_v59  ;;  %7628 = vmatprep.mubr.msk.f32.mxu1 %vm8631_vm0, %v8630_v0 }
 0x89b   :  { %7631 = vmatprep.subr.mxu1 %v8630_v0 }
 0x955   :  { %v8886_v57 = vpop.f32.mrf.mxu1 }
 0x957   :  { %v7620_v58 = vpop.f32.mrf.mxu1 }
 0x958   :  { %v8131_v58 = vld [vmem:[#allocation5 + $0x38] sm:$0xff]  }
 0x959   :  { %v1827_v62 = vpop.f32.mrf.mxu1  ;;  %7361 = vmatpush3.bf16.msra.mxu0 %v8131_v58  ;;  %v8147_v58 = vld [vmem:[#allocation5 + $0xb8] sm:$0xff]  }
 0x95a   :  { %v1831_v45 = vsel %vm1368_vm1, %v1827_v62, -inf }
 0x95b   :  { %1832 = vmax.xlane.f32.xlu0 %v1831_v45  ;;  %v7625_v63 = vpop.f32.mrf.mxu1  ;;  %v8133_v45 = vld [vmem:[#allocation5 + $0x30] sm:$0xff]  }
 0x95c   :  { %v8134_v63 = vld [vmem:[#allocation5 + $0x68] sm:$0xff]  }
 0x9e4   :  { %v1833_v1 = vpop.xlane.xlu0 %1832 }
 0x9e5   :  { %v1834_v4 = vsub.f32 %v1827_v62, %v1833_v1  ;;  %v8132_v62 = vld [vmem:[#allocation5 + $0x70] sm:$0xff]   ;;  %v8135_v1 = vld [vmem:[#allocation5 + $0x28] sm:$0xff]  }
 0x9e6   :  { %7362 = vmatprep.subr.bf16.mxu0 %v8132_v62 }
 0x9e7   :  { %v1835_v6 = vmul.f32 1.442695, %v1834_v4  ;;  %7363 = vmatpush3.bf16.msra.mxu0 %v8133_v45  ;;  %v8136_v4 = vld [vmem:[#allocation5 + $0x60] sm:$0xff]   ;;  %v8148_v45 = vld [vmem:[#allocation5 + $0xf0] sm:$0xff]  }
 0x9e8   :  { %7364 = vmatprep.subr.bf16.mxu0 %v8134_v63  ;;  %v8151_v63 = vld [vmem:[#allocation5 + $0xe8] sm:$0xff]  }
 0x9e9   :  { %8434 = vpow2.f32 %v1835_v6  ;;  %v8137_v6 = vld [vmem:[#allocation5 + $0x20] sm:$0xff]  }
 0x9eb   :  { %7365 = vmatpush3.bf16.msra.mxu0 %v8135_v1  ;;  %v8153_v1 = vld [vmem:[#allocation5 + $0xa8] sm:$0xff]  }
 0x9ec   :  { %7366 = vmatprep.subr.bf16.mxu0 %v8136_v4  ;;  %v8154_v4 = vld [vmem:[#allocation5 + $0xe0] sm:$0xff]  }
 0x9ef   :  { %7367 = vmatpush3.bf16.msra.mxu0 %v8137_v6  ;;  %v8156_v6 = vld [vmem:[#allocation5 + $0xa0] sm:$0xff]  }
 0x9f6   :  { %v8435_v2 = vpop.eup %8434 }
 0x9f7   :  { %v1837_v59 = vsel %vm1368_vm1, %v8435_v2, 0.0 }
 0x9f8   :  { %1838 = vadd.xlane.f32.xlu1 %v1837_v59  ;;  %v8139_v59 = vld [vmem:[#allocation5 + $0x18] sm:$0xff]  }
 0xa81   :  { %v1839_v7 = vpop.xlane.xlu1 %1838 }
 0xa82   :  { %8436 = vrcp.f32 %v1839_v7  ;;  %v8140_v7 = vld [vmem:[#allocation5 + $0x50] sm:$0xff]  }
 0xa8f   :  { %v8437_v8 = vpop.eup %8436 }
 0xa90   :  { %v1841_v9 = vmul.f32 %v8437_v8, %v8435_v2  ;;  %v8138_v2 = vld [vmem:[#allocation5 + $0x58] sm:$0xff]   ;;  %v8141_v8 = vld [vmem:[#allocation5 + $0x10] sm:$0xff]  }
 0xa91   :  { %7368 = vmatprep.subr.bf16.mxu0 %v8138_v2  ;;  %v8159_v2 = vld [vmem:[#allocation5 + $0x98] sm:$0xff]  }
 0xa92   :  { %7629 = vmatmul.mubr.msk.f32.vlgmr.msra.gmra.mxu1 %vm1368_vm1, %v1841_v9  ;;  %7369 = vmatpush3.bf16.msra.mxu0 %v8139_v59  ;;  %v8142_v9 = vld [vmem:[#allocation5 + $0x48] sm:$0xff]   ;;  %v8160_v59 = vld [vmem:[#allocation5 + $0xd0] sm:$0xff]  }
 0xa93   :  { %7632 = vmatpush3.xpose.msra.mxu1 %v8825_v47  ;;  %7633 = vmatprep.mubr.msk.f32.mxu1 %vm8631_vm0, %v8630_v0 }
 0xa94   :  { %7636 = vmatprep.subr.mxu1 %v8630_v0  ;;  %7370 = vmatprep.subr.bf16.mxu0 %v8140_v7  ;;  %v8162_v7 = vld [vmem:[#allocation5 + $0x90] sm:$0xff]  }
 0xa96   :  { %7634 = vmatmul.mubr.f32.vlgmr.msra.gmra.mxu1 %v8804_v34  ;;  %7371 = vmatpush3.bf16.msra.mxu0 %v8141_v8  ;;  %v8163_v8 = vld [vmem:[#allocation5 + $0xc8] sm:$0xff]  }
 0xa97   :  { %7637 = vmatpush3.msra.mxu1 %v8835_v53  ;;  %7638 = vmatprep.mubr.msk.f32.mxu1 %vm8631_vm0, %v8630_v0 }
 0xa98   :  { %7641 = vmatprep.subr.mxu1 %v8630_v0  ;;  %7372 = vmatprep.subr.bf16.mxu0 %v8142_v9  ;;  %v8164_v9 = vld [vmem:[#allocation5 + $0x110] sm:$0xff]  }
 0xb52   :  { %v8900_v10 = vpop.f32.mrf.mxu1 }
 0xb54   :  { %v7630_v11 = vpop.f32.mrf.mxu1 }
 0xb55   :  { %v8143_v11 = vld [vmem:[#allocation5 + $0x8] sm:$0xff]  }
 0xb56   :  { %v1981_v12 = vpop.f32.mrf.mxu1  ;;  %7373 = vmatpush3.bf16.msra.mxu0 %v8143_v11  ;;  %v8165_v11 = vld [vmem:[#allocation5 + $0x88] sm:$0xff]  }
 0xb57   :  { %v1985_v47 = vsel %vm1368_vm1, %v1981_v12, -inf }
 0xb58   :  { %1986 = vmax.xlane.f32.xlu0 %v1985_v47  ;;  %v7635_v13 = vpop.f32.mrf.mxu1 }
 0xbe1   :  { %v1987_v14 = vpop.xlane.xlu0 %1986 }
 0xbe2   :  { %v1988_v16 = vsub.f32 %v1981_v12, %v1987_v14  ;;  %v8144_v14 = vld [vmem:[#allocation5 + $0x40] sm:$0xff]  }
 0xbe3   :  { %7374 = vmatprep.subr.bf16.mxu0 %v8144_v14  ;;  %v8169_v14 = vld [vmem:[#allocation5 + $0x100] sm:$0xff]  }
 0xbe4   :  { %v1989_v17 = vmul.f32 1.442695, %v1988_v16  ;;  %v8145_v16 = vld [vmem:[#allocation5] sm:$0xff]  }
 0xbe5   :  { %7375 = vmatpush3.bf16.msra.mxu0 %v8145_v16 }
 0xbe6   :  { %8438 = vpow2.f32 %v1989_v17  ;;  %7691 = vmatprep.subr.bf16.mxu0 %v8630_v0 }
 0xbf3   :  { %v8439_v34 = vpop.eup %8438 }
 0xbf4   :  { %v1991_v53 = vsel %vm1368_vm1, %v8439_v34, 0.0 }
 0xbf5   :  { %1992 = vadd.xlane.f32.xlu1 %v1991_v53 }
 0xc7e   :  { %v1993_v18 = vpop.xlane.xlu1 %1992 }
 0xc7f   :  { %8440 = vrcp.f32 %v1993_v18 }
 0xc8c   :  { %v8441_v19 = vpop.eup %8440 }
 0xc8d   :  { %v1995_v20 = vmul.f32 %v8441_v19, %v8439_v34 }
 0xc8f   :  { %7639 = vmatmul.mubr.msk.f32.vlgmr.msra.gmra.mxu1 %vm1368_vm1, %v1995_v20 }
 0xc90   :  { %7642 = vmatpush3.xpose.msra.mxu1 %v8819_v43  ;;  %7643 = vmatprep.mubr.msk.f32.mxu1 %vm8631_vm0, %v8630_v0 }
 0xc91   :  { %7646 = vmatprep.subr.mxu1 %v8630_v0 }
 0xc93   :  { %7644 = vmatmul.mubr.f32.vlgmr.msra.gmra.mxu1 %v8800_v32 }
 0xc94   :  { %7647 = vmatpush3.msra.mxu1 %v8831_v51  ;;  %7648 = vmatprep.mubr.msk.f32.mxu1 %vm8631_vm0, %v8630_v0 }
 0xc95   :  { %7651 = vmatprep.subr.mxu1 %v8630_v0 }
 0xd4f   :  { %v8914_v21 = vpop.f32.mrf.mxu1 }
 0xd51   :  { %v7640_v22 = vpop.f32.mrf.mxu1 }
 0xd53   :  { %v2135_v24 = vpop.f32.mrf.mxu1 }
 0xd54   :  { %v2139_v43 = vsel %vm1368_vm1, %v2135_v24, -inf }
 0xd55   :  { %2140 = vmax.xlane.f32.xlu0 %v2139_v43  ;;  %v7645_v25 = vpop.f32.mrf.mxu1 }
 0xdde   :  { %v2141_v26 = vpop.xlane.xlu0 %2140 }
 0xddf   :  { %v2142_v27 = vsub.f32 %v2135_v24, %v2141_v26 }
 0xde1   :  { %v2143_v29 = vmul.f32 1.442695, %v2142_v27 }
 0xde3   :  { %8442 = vpow2.f32 %v2143_v29 }
 0xdf0   :  { %v8443_v32 = vpop.eup %8442 }
 0xdf1   :  { %v2145_v51 = vsel %vm1368_vm1, %v8443_v32, 0.0 }
 0xdf2   :  { %2146 = vadd.xlane.f32.xlu1 %v2145_v51 }
 0xe7b   :  { %v2147_v31 = vpop.xlane.xlu1 %2146 }
 0xe7c   :  { %8444 = vrcp.f32 %v2147_v31 }
 0xe89   :  { %v8445_v35 = vpop.eup %8444 }
 0xe8a   :  { %v2149_v38 = vmul.f32 %v8445_v35, %v8443_v32 }
 0xe8c   :  { %7649 = vmatmul.mubr.msk.f32.vlgmr.msra.gmra.mxu1 %vm1368_vm1, %v2149_v38  ;;  %v8149_v38 = vld [vmem:[#allocation5 + $0x138] sm:$0xff]  }
 0xe8d   :  { %7652 = vmatpush3.xpose.msra.mxu1 %v8817_v42  ;;  %7653 = vmatprep.mubr.msk.f32.mxu1 %vm8631_vm0, %v8630_v0 }
 0xe8e   :  { %7656 = vmatprep.subr.mxu1 %v8630_v0 }
 0xe90   :  { %7654 = vmatmul.mubr.f32.vlgmr.msra.gmra.mxu1 %v8802_v33 }
 0xe91   :  { %7657 = vmatpush3.msra.mxu1 %v8833_v52  ;;  %7658 = vmatprep.mubr.msk.f32.mxu1 %vm8631_vm0, %v8630_v0 }
 0xe92   :  { %7661 = vmatprep.subr.mxu1 %v8630_v0 }
 0xf4c   :  { %v8928_v39 = vpop.f32.mrf.mxu1 }
 0xf4e   :  { %v7650_v40 = vpop.f32.mrf.mxu1 }
 0xf4f   :  { %v8155_v40 = vld [vmem:[#allocation5 + $0x128] sm:$0xff]  }
 0xf50   :  { %v2289_v41 = vpop.f32.mrf.mxu1 }
 0xf51   :  { %v2293_v42 = vsel %vm1368_vm1, %v2289_v41, -inf }
 0xf52   :  { %2294 = vmax.xlane.f32.xlu0 %v2293_v42  ;;  %v7655_v46 = vpop.f32.mrf.mxu1 }
 0xfdb   :  { %v2295_v48 = vpop.xlane.xlu0 %2294 }
 0xfdc   :  { %v2296_v36 = vsub.f32 %v2289_v41, %v2295_v48  ;;  %v8161_v41 = vld [vmem:[#allocation5 + $0x118] sm:$0xff]  }
 0xfde   :  { %v2297_v49 = vmul.f32 1.442695, %v2296_v36 }
 0xfe0   :  { %8446 = vpow2.f32 %v2297_v49 }
 0xfed   :  { %v8447_v33 = vpop.eup %8446 }
 0xfee   :  { %v2299_v52 = vsel %vm1368_vm1, %v8447_v33, 0.0 }
 0xfef   :  { %2300 = vadd.xlane.f32.xlu1 %v2299_v52 }
 0xff3   :  { %2602 = vmax.xlane.f32.xlu1 %v2601_v50  ;;  %v8146_v50 = vld [vmem:[#allocation5 + $0xf8] sm:$0xff]  }
0x1078   :  { %v2301_v12 = vpop.xlane.xlu1 %2300 }
0x1079   :  { %8448 = vrcp.f32 %v2301_v12  ;;  %v8166_v12 = vld [vmem:[#allocation5 + $0xc0] sm:$0xff]  }
0x1086   :  { %v8449_v47 = vpop.eup %8448 }
0x1087   :  { %v2303_v13 = vmul.f32 %v8449_v47, %v8447_v33  ;;  %v8167_v47 = vld [vmem:[#allocation5 + $0x108] sm:$0xff]  }
0x1089   :  { %7659 = vmatmul.mubr.msk.f32.vlgmr.msra.gmra.mxu1 %vm1368_vm1, %v2303_v13  ;;  %v8168_v13 = vld [vmem:[#allocation5 + $0x80] sm:$0xff]  }
0x108a   :  { %7662 = vmatpush3.xpose.msra.mxu1 %v8821_v44  ;;  %7663 = vmatprep.mubr.msk.f32.mxu1 %vm8631_vm0, %v8630_v0  ;;  %v2603_v44 = vpop.xlane.xlu1 %2602 }
0x108b   :  { %7666 = vmatprep.subr.mxu1 %v8630_v0  ;;  %v2604_v17 = vsub.f32 %v8846_v3, %v2603_v44  ;;  %v2755_v3 = vsel %vm1368_vm1, %v8848_v5, -inf }
0x108d   :  { %7664 = vmatmul.mubr.f32.vlgmr.msra.gmra.mxu1 %v8813_v37  ;;  %v2605_v34 = vmul.f32 1.442695, %v2604_v17 }
0x108e   :  { %7667 = vmatpush3.msra.mxu1 %v8841_v60  ;;  %7668 = vmatprep.mubr.msk.f32.mxu1 %vm8631_vm0, %v8630_v0  ;;  %v2839_v60 = vpack.c.bf16 %v8928_v39, %v8859_v15  ;;  %v8152_v39 = vld [vmem:[#allocation5 + $0x130] sm:$0xff]  }
0x108f   :  { %7676 = vmatprep.subr.mxu1 %v8630_v0  ;;  %8450 = vpow2.f32 %v2605_v34 }
0x109c   :  { %v8451_v24 = vpop.eup %8450 }
0x1149   :  { %v2373_v53 = vpop.f32.mrf.mxu1 }
0x114a   :  { %v2840_v37 = vpack.c.bf16 %v2373_v53, %v8872_v30  ;;  %v2607_v30 = vsel %vm1368_vm1, %v8451_v24, 0.0 }
0x114b   :  { %v7660_v18 = vpop.f32.mrf.mxu1 }
0x114c   :  { %3203 = vmatprep.mubr.bf16.mxu0 %v2840_v37 }
0x114d   :  { %v2443_v19 = vpop.f32.mrf.mxu1  ;;  %3204 = vmatmul.mubr.bf16.vlgmr.msra.gmra.mxu0 %v2839_v60 }
0x114e   :  { %v2447_v20 = vsel %vm1368_vm1, %v2443_v19, -inf  ;;  %7707 = vmatprep.mubr.msk.bf16.mxu0 %vm8631_vm0, %v8630_v0  ;;  %7692 = vmatpush3.bf16.msra.mxu0 %v8149_v38 }
0x114f   :  { %2448 = vmax.xlane.f32.xlu0 %v2447_v20  ;;  %v7665_v22 = vpop.f32.mrf.mxu1  ;;  %7693 = vmatprep.subr.bf16.mxu0 %v8630_v0  ;;  %v8170_v20 = vld [vmem:[#allocation7 + $0x38] sm:$0xff]  }
0x1150   :  { %v8171_v22 = vld [vmem:[#allocation7 + $0x30] sm:$0xff]  }
0x1152   :  { %7694 = vmatpush3.bf16.msra.mxu0 %v8152_v39 }
0x1153   :  { %2756 = vmax.xlane.f32.xlu0 %v2755_v3  ;;  %7695 = vmatprep.subr.bf16.mxu0 %v8630_v0 }
0x1156   :  { %7696 = vmatpush3.bf16.msra.mxu0 %v8155_v40 }
0x1157   :  { %2608 = vadd.xlane.f32.xlu0 %v2607_v30  ;;  %7697 = vmatprep.subr.bf16.mxu0 %v8630_v0 }
0x11d8   :  { %v2449_v15 = vpop.xlane.xlu0 %2448 }
0x11d9   :  { %v2450_v43 = vsub.f32 %v2443_v19, %v2449_v15 }
0x11db   :  { %v2451_v25 = vmul.f32 1.442695, %v2450_v43 }
0x11dc   :  { %v2757_v26 = vpop.xlane.xlu0 %2756 }
0x11dd   :  { %8452 = vpow2.f32 %v2451_v25  ;;  %v2758_v27 = vsub.f32 %v8848_v5, %v2757_v26  ;;  %v8158_v5 = vld [vmem:[#allocation5 + $0x120] sm:$0xff]  }
0x11de   :  { %7698 = vmatpush3.bf16.msra.mxu0 %v8158_v5 }
0x11df   :  { %v2759_v29 = vmul.f32 1.442695, %v2758_v27  ;;  %7699 = vmatprep.subr.bf16.mxu0 %v8630_v0 }
0x11e0   :  { %v2609_v42 = vpop.xlane.xlu0 %2608 }
0x11e1   :  { %8454 = vpow2.f32 %v2759_v29 }
0x11e2   :  { %7700 = vmatpush3.bf16.msra.mxu0 %v8161_v41 }
0x11e3   :  { %7701 = vmatprep.subr.bf16.mxu0 %v8630_v0 }
0x11e6   :  { %7702 = vmatpush3.bf16.msra.mxu0 %v8164_v9 }
0x11e7   :  { %7703 = vmatprep.subr.bf16.mxu0 %v8630_v0 }
0x11ea   :  { %v8453_v32 = vpop.eup %8452  ;;  %7704 = vmatpush3.bf16.msra.mxu0 %v8167_v47  ;;  %v8184_v47 = vld [vmem:[#allocation8 + $0x8] sm:$0xff]  }
0x11eb   :  { %v2453_v51 = vsel %vm1368_vm1, %v8453_v32, 0.0  ;;  %7705 = vmatprep.subr.bf16.mxu0 %v8630_v0 }
0x11ec   :  { %2454 = vadd.xlane.f32.xlu1 %v2453_v51 }
0x11ee   :  { %v8455_v31 = vpop.eup %8454  ;;  %7706 = vmatpush3.bf16.msra.mxu0 %v8169_v14  ;;  %v7092_v14 = vld [vmem:[%s9303_s7] ss:$0 sm:$0xff] }
0x11ef   :  { %v2761_v35 = vsel %vm1368_vm1, %v8455_v31, 0.0  ;;  %7731 = vmatprep.subr.bf16.mxu0 %v8630_v0 }
0x11f0   :  { %2762 = vadd.xlane.f32.xlu1 %v2761_v35 }
0x1275   :  { %v2455_v46 = vpop.xlane.xlu1 %2454 }
0x1276   :  { %8456 = vrcp.f32 %v2455_v46 }
0x1277   :  { %8458 = vrcp.f32 %v2609_v42 }
0x1279   :  { %v2763_v48 = vpop.xlane.xlu1 %2762 }
0x127a   :  { %8460 = vrcp.f32 %v2763_v48 }
0x1283   :  { %v8457_v36 = vpop.eup %8456 }
0x1284   :  { %v2457_v49 = vmul.f32 %v8457_v36, %v8453_v32  ;;  %v8459_v33 = vpop.eup %8458 }
0x1285   :  { %v2611_v52 = vmul.f32 %v8459_v33, %v8451_v24  ;;  %v7051_v24 = vld [vmem:[%s9301_s5] ss:$0 sm:$0xff] }
0x1286   :  { %7669 = vmatmul.mubr.msk.f32.vlgmr.msra.gmra.mxu1 %vm1368_vm1, %v2457_v49 }
0x1287   :  { %7677 = vmatpush3.msra.mxu1 %v8843_v61  ;;  %7678 = vmatprep.mubr.msk.f32.mxu1 %vm8631_vm0, %v8630_v0  ;;  %v8461_v55 = vpop.eup %8460  ;;  %v8150_v61 = vld [vmem:[#allocation5 + $0xb0] sm:$0xff]  }
0x1288   :  { %7686 = vmatprep.subr.mxu1 %v8630_v0  ;;  %v2765_v62 = vmul.f32 %v8461_v55, %v8455_v31  ;;  %v8175_v55 = vld [vmem:[#allocation7 + $0x10] sm:$0xff]  }
0x128a   :  { %7679 = vmatmul.mubr.msk.f32.vlgmr.msra.gmra.mxu1 %vm1368_vm1, %v2611_v52  ;;  %v8172_v52 = vld [vmem:[#allocation7 + $0x28] sm:$0xff]  }
0x128b   :  { %7687 = vmatpush3.msra.mxu1 %v8837_v56  ;;  %7688 = vmatprep.mubr.msk.f32.mxu1 %vm8631_vm0, %v8630_v0  ;;  %v8157_v56 = vld [vmem:[#allocation5 + $0xd8] sm:$0xff]  }
0x128c   :  { %7382 = vmatprep.subr.bf16.mxu1 %v8146_v50  ;;  %v8174_v50 = vld [vmem:[#allocation7 + $0x18] sm:$0xff]  }
0x128e   :  { %7689 = vmatmul.mubr.msk.f32.vlgmr.msra.gmra.mxu1 %vm1368_vm1, %v2765_v62  ;;  %v8178_v62 = vld [vmem:[#allocation8 + $0x38] sm:$0xff]  }
0x128f   :  { %7383 = vmatpush3.bf16.msra.mxu1 %v8147_v58  ;;  %v8177_v58 = vld [vmem:[#allocation7] sm:$0xff]  }
0x1290   :  { %7384 = vmatprep.subr.bf16.mxu1 %v8148_v45  ;;  %v8179_v45 = vld [vmem:[#allocation8 + $0x30] sm:$0xff]  }
0x1293   :  { %7385 = vmatpush3.bf16.msra.mxu1 %v8150_v61  ;;  %v8180_v61 = vld [vmem:[#allocation8 + $0x28] sm:$0xff]  }
0x1294   :  { %7386 = vmatprep.subr.bf16.mxu1 %v8151_v63  ;;  %v8181_v63 = vld [vmem:[#allocation8 + $0x20] sm:$0xff]  }
0x1297   :  { %7387 = vmatpush3.bf16.msra.mxu1 %v8153_v1  ;;  %v8182_v1 = vld [vmem:[#allocation8 + $0x18] sm:$0xff]  }
0x1298   :  { %7388 = vmatprep.subr.bf16.mxu1 %v8154_v4 }
0x129b   :  { %7389 = vmatpush3.bf16.msra.mxu1 %v8156_v6 }
0x129c   :  { %7390 = vmatprep.subr.bf16.mxu1 %v8157_v56 }
0x129f   :  { %7391 = vmatpush3.bf16.msra.mxu1 %v8159_v2 }
0x12a0   :  { %7392 = vmatprep.subr.bf16.mxu1 %v8160_v59 }
0x12a3   :  { %7393 = vmatpush3.bf16.msra.mxu1 %v8162_v7 }
0x12a4   :  { %7394 = vmatprep.subr.bf16.mxu1 %v8163_v8 }
0x12a7   :  { %7395 = vmatpush3.bf16.msra.mxu1 %v8165_v11 }
0x12a8   :  { %7396 = vmatprep.subr.bf16.mxu1 %v8166_v12  ;;  %v8183_v12 = vld [vmem:[#allocation8 + $0x10] sm:$0xff]  }
0x12ab   :  { %7397 = vmatpush3.bf16.msra.mxu1 %v8168_v13  ;;  %v8185_v13 = vld [vmem:[#allocation8] sm:$0xff]  }
0x12ac   :  { %7711 = vmatprep.subr.bf16.mxu1 %v8630_v0 }
0x1346   :  { %v2527_v16 = vpop.f32.mrf.mxu1 }
0x1347   :  { %v2841_v53 = vpack.c.bf16 %v2527_v16, %v8886_v57  ;;  %v7376_v57 = vpop.f32.mrf.mxu0 }
0x1348   :  { %v7670_v44 = vpop.f32.mrf.mxu1 }
0x134a   :  { %v2681_v17 = vpop.f32.mrf.mxu1 }
0x134b   :  { %v2842_v34 = vpack.c.bf16 %v2681_v17, %v8900_v10  ;;  %v7377_v10 = vpop.f32.mrf.mxu0 }
0x134c   :  { %v7680_v37 = vpop.f32.mrf.mxu1 }
0x134d   :  { %3244 = vmatprep.mubr.bf16.mxu1 %v2842_v34  ;;  %v7379_v3 = vpop.f32.mrf.mxu0 }
0x134e   :  { %v2835_v60 = vpop.f32.mrf.mxu1  ;;  %3245 = vmatmul.mubr.bf16.vlgmr.msra.gmra.mxu1 %v2841_v53 }
0x134f   :  { %v2843_v18 = vpack.c.bf16 %v2835_v60, %v8914_v21  ;;  %7727 = vmatprep.mubr.msk.bf16.mxu1 %vm8631_vm0, %v8630_v0  ;;  %7712 = vmatpush3.bf16.msra.mxu1 %v8170_v20  ;;  %v7378_v21 = vadd.f32 %v7377_v10, %v7376_v57  ;;  %v7380_v30 = vpop.f32.mrf.mxu0  ;;  %v8186_v20 = vld [vmem:[#allocation2 + $0x708] ss:$60 sps:$4 sm:$0xff]   ;;  %v8189_v57 = vld [vmem:[#allocation2 + $0x710] ss:$60 sps:$4 sm:$0xff]  }
0x1350   :  { %v7690_v19 = vpop.f32.mrf.mxu1  ;;  %7713 = vmatprep.subr.bf16.mxu1 %v8630_v0  ;;  %v7381_v26 = vadd.f32 %v7380_v30, %v7379_v3  ;;  %v8191_v10 = vld [vmem:[#allocation2 + $0x714] ss:$60 sps:$4 sm:$0xff]  }
0x1351   :  { %7708 = vmatmul.mubr.bf16.vlgmr.msra.gmra.mxu0 %v2843_v18  ;;  %v3206_v25 = vadd.f32 %v7378_v21, %v7051_v24  ;;  %v8194_v3 = vld [vmem:[#allocation2 + $0x694] ss:$60 sps:$4 sm:$0xff]   ;;  %v8197_v21 = vld [vmem:[#allocation2 + $0x69c] ss:$60 sps:$4 sm:$0xff]  }
0x1352   :  { %7747 = vmatprep.mubr.msk.bf16.mxu0 %vm8631_vm0, %v8630_v0  ;;  %v3209_v38 = vadd.f32 %v7381_v26, %v7051_v24  ;;  %7732 = vmatpush3.bf16.msra.mxu0 %v8178_v62  ;;  %v8192_v24 = vld [vmem:[#allocation2 + $0x690] ss:$60 sps:$4 sm:$0xff]   ;;  %v8195_v30 = vld [vmem:[#allocation2 + $0x698] ss:$60 sps:$4 sm:$0xff]   ;;  %v8201_v26 = vld [vmem:[#allocation2 + $0x620] ss:$60 sps:$4 sm:$0xff]  }
0x1353   :  { %7714 = vmatpush3.bf16.msra.mxu1 %v8171_v22  ;;  %7733 = vmatprep.subr.bf16.mxu0 %v8630_v0  ;;  %v8188_v22 = vld [vmem:[#allocation2 + $0x70c] ss:$60 sps:$4 sm:$0xff]   ;;  %v8224_v62 = vld [vmem:[#allocation2 + $0x43c] ss:$60 sps:$4 sm:$0xff]  }
0x1354   :  { %7715 = vmatprep.subr.bf16.mxu1 %v8630_v0 }
0x1356   :  { %7734 = vmatpush3.bf16.msra.mxu0 %v8179_v45  ;;  %v8227_v45 = vld [vmem:[#allocation2 + $0x444] ss:$60 sps:$4 sm:$0xff]  }
0x1357   :  { %7716 = vmatpush3.bf16.msra.mxu1 %v8172_v52  ;;  %7735 = vmatprep.subr.bf16.mxu0 %v8630_v0  ;;  %v8215_v52 = vld [vmem:[#allocation2 + $0x534] ss:$60 sps:$4 sm:$0xff]  }
0x1358   :  { %7717 = vmatprep.subr.bf16.mxu1 %v8630_v0 }
0x135a   :  { %7736 = vmatpush3.bf16.msra.mxu0 %v8180_v61  ;;  %v8222_v61 = vld [vmem:[#allocation2 + $0x438] ss:$60 sps:$4 sm:$0xff]  }
0x135b   :  { %7737 = vmatprep.subr.bf16.mxu0 %v8630_v0 }
0x135e   :  { %7738 = vmatpush3.bf16.msra.mxu0 %v8181_v63  ;;  %v8225_v63 = vld [vmem:[#allocation2 + $0x440] ss:$60 sps:$4 sm:$0xff]  }
0x135f   :  { %7739 = vmatprep.subr.bf16.mxu0 %v8630_v0 }
0x1362   :  { %7740 = vmatpush3.bf16.msra.mxu0 %v8182_v1  ;;  %v8230_v1 = vld [vmem:[#allocation2 + $0x3c4] ss:$60 sps:$4 sm:$0xff]  }
0x1363   :  { %7741 = vmatprep.subr.bf16.mxu0 %v8630_v0 }
0x1366   :  { %7742 = vmatpush3.bf16.msra.mxu0 %v8183_v12 }
0x1367   :  { %7743 = vmatprep.subr.bf16.mxu0 %v8630_v0 }
0x136a   :  { %7744 = vmatpush3.bf16.msra.mxu0 %v8184_v47 }
0x136b   :  { %7745 = vmatprep.subr.bf16.mxu0 %v8630_v0 }
0x136e   :  { %7746 = vmatpush3.bf16.msra.mxu0 %v8185_v13 }
0x136f   :  { %4331 = vmatprep.subr.bf16.mxu0 %v8191_v10  ;;  %v8257_v10 = vld [vmem:[#allocation2 + $0x5bc] ss:$60 sps:$4 sm:$0xff]  }
0x140e   :  { %v7398_v15 = vpop.f32.mrf.mxu1 }
0x1410   :  { %v7399_v43 = vpop.f32.mrf.mxu1 }
0x1411   :  { %v7400_v27 = vadd.f32 %v7399_v43, %v7398_v15  ;;  %v3287_v29 = vpop.f32.mrf.mxu0  ;;  %v8200_v15 = vld [vmem:[#allocation2 + $0x61c] ss:$60 sps:$4 sm:$0xff]   ;;  %v8203_v43 = vld [vmem:[#allocation2 + $0x624] ss:$60 sps:$4 sm:$0xff]  }
0x1412   :  { %v7401_v32 = vpop.f32.mrf.mxu1 }
0x1413   :  { %v3247_v51 = vadd.f32 %v7400_v27, %v3206_v25  ;;  %v7709_v31 = vpop.f32.mrf.mxu0  ;;  %v8198_v25 = vld [vmem:[#allocation2 + $0x618] ss:$60 sps:$4 sm:$0xff]   ;;  %v7101_v27 = vld [vmem:[%s9305_s9] ss:$0 sm:$0xff] }
0x1414   :  { %v7402_v35 = vpop.f32.mrf.mxu1 }
0x1415   :  { %v3288_v39 = vadd.f32 %v3287_v29, %v3247_v51  ;;  %v7403_v40 = vadd.f32 %v7402_v35, %v7401_v32  ;;  %v3290_v5 = vpop.f32.mrf.mxu0 }
0x1417   :  { %v8990_v41 = vadd.f32 %v3288_v39, %v8752_v23  ;;  %v3250_v42 = vadd.f32 %v7403_v40, %v3209_v38  ;;  %v7710_v46 = vpop.f32.mrf.mxu0  ;;  %v8173_v23 = vld [vmem:[#allocation7 + $0x20] sm:$0xff]  }
0x1418   :  { %7718 = vmatpush3.bf16.msra.mxu1 %v8173_v23  ;;  %v8206_v46 = vld [vmem:[#allocation2 + $0x5a4] ss:$60 sps:$4 sm:$0xff]  }
0x1419   :  { %v3291_v48 = vadd.f32 %v3290_v5, %v3250_v42  ;;  %v3296_v36 = vmul.f32 %v8990_v41, %v8990_v41  ;;  %7719 = vmatprep.subr.bf16.mxu1 %v8630_v0  ;;  %v8210_v23 = vld [vmem:[#allocation2 + $0x528] ss:$60 sps:$4 sm:$0xff]  }
0x141b   :  { %v8995_v49 = vadd.f32 %v3291_v48, %v8759_v28  ;;  %3298 = vadd.xlane.f32.xlu0 %v3296_v36  ;;  %v8176_v28 = vld [vmem:[#allocation7 + $0x8] sm:$0xff]   ;;  %v8204_v36 = vld [vmem:[#allocation2 + $0x5a0] ss:$60 sps:$4 sm:$0xff]  }
0x141c   :  { %7720 = vmatpush3.bf16.msra.mxu1 %v8174_v50  ;;  %v8209_v48 = vld [vmem:[#allocation2 + $0x5ac] ss:$60 sps:$4 sm:$0xff]  }
0x141d   :  { %v3297_v33 = vmul.f32 %v8995_v49, %v8995_v49  ;;  %7721 = vmatprep.subr.bf16.mxu1 %v8630_v0  ;;  %v8213_v50 = vld [vmem:[#allocation2 + $0x530] ss:$60 sps:$4 sm:$0xff]  }
0x141f   :  { %3300 = vadd.xlane.f32.xlu1 %v3297_v33  ;;  %v8207_v33 = vld [vmem:[#allocation2 + $0x5a8] ss:$60 sps:$4 sm:$0xff]  }
0x1420   :  { %7722 = vmatpush3.bf16.msra.mxu1 %v8175_v55  ;;  %v8221_v55 = vld [vmem:[#allocation2 + $0x4bc] ss:$60 sps:$4 sm:$0xff]  }
0x1421   :  { %7723 = vmatprep.subr.bf16.mxu1 %v8630_v0 }
0x1424   :  { %7724 = vmatpush3.bf16.msra.mxu1 %v8176_v28  ;;  %v8216_v28 = vld [vmem:[#allocation2 + $0x4b0] ss:$60 sps:$4 sm:$0xff]  }
0x1425   :  { %7725 = vmatprep.subr.bf16.mxu1 %v8630_v0 }
0x1428   :  { %7726 = vmatpush3.bf16.msra.mxu1 %v8177_v58  ;;  %v8219_v58 = vld [vmem:[#allocation2 + $0x4b8] ss:$60 sps:$4 sm:$0xff]  }
0x1429   :  { %4288 = vmatprep.subr.bf16.mxu1 %v8188_v22  ;;  %v8249_v22 = vld [vmem:[#allocation2 + $0x630] ss:$60 sps:$4 sm:$0xff]  }
0x14a4   :  { %v3299_v4 = vpop.xlane.xlu0 %3298 }
0x14a5   :  { %v3302_v6 = vmax.f32 %v3299_v4, 1e-10  ;;  %v8233_v4 = vld [vmem:[#allocation2 + $0x3cc] ss:$60 sps:$4 sm:$0xff]  }
0x14a7   :  { %8462 = vrsqrt.f32 %v3302_v6  ;;  %v8228_v6 = vld [vmem:[#allocation2 + $0x3c0] ss:$60 sps:$4 sm:$0xff]  }
0x14a8   :  { %v3301_v56 = vpop.xlane.xlu1 %3300 }
0x14a9   :  { %v3303_v2 = vmax.f32 %v3301_v56, 1e-10  ;;  %v8231_v56 = vld [vmem:[#allocation2 + $0x3c8] ss:$60 sps:$4 sm:$0xff]  }
0x14ab   :  { %8464 = vrsqrt.f32 %v3303_v2  ;;  %v8236_v2 = vld [vmem:[#allocation2 + $0x71c] ss:$60 sps:$4 sm:$0xff]  }
0x14b4   :  { %v8463_v59 = vpop.eup %8462 }
0x14b5   :  { %v3306_v8 = vmul.f32 %v8463_v59, %v8990_v41  ;;  %v8239_v59 = vld [vmem:[#allocation2 + $0x724] ss:$60 sps:$4 sm:$0xff]  }
0x14b8   :  { %v8465_v7 = vpop.eup %8464 }
0x14b9   :  { %v3307_v9 = vmul.f32 %v8465_v7, %v8995_v49 }
0x14bb   :  { %v3308_v11 = vpack.c.bf16 %v3307_v9, %v3306_v8 }
0x14bd   :  { %7728 = vmatmul.mubr.bf16.vlgmr.msra.gmra.mxu1 %v3308_v11 }
0x14be   :  { %4320 = vmatprep.mubr.bf16.mxu1 %v8632_v54  ;;  %4289 = vmatpush1.bf16.msra.mxu1 %v8186_v20  ;;  %v8246_v20 = vld [vmem:[#allocation2 + $0x628] ss:$60 sps:$4 sm:$0xff]  }
0x14bf   :  { %4290 = vmatprep.subr.bf16.mxu1 %v8194_v3  ;;  %v8252_v3 = vld [vmem:[#allocation2 + $0x5b0] ss:$60 sps:$4 sm:$0xff]  }
0x14c2   :  { %4291 = vmatpush1.bf16.msra.mxu1 %v8192_v24  ;;  %v8260_v24 = vld [vmem:[#allocation2 + $0x53c] ss:$60 sps:$4 sm:$0xff]  }
0x14c3   :  { %4292 = vmatprep.subr.bf16.mxu1 %v8200_v15  ;;  %v8258_v15 = vld [vmem:[#allocation2 + $0x538] ss:$60 sps:$4 sm:$0xff]  }
0x14c6   :  { %4293 = vmatpush1.bf16.msra.mxu1 %v8198_v25  ;;  %v8266_v25 = vld [vmem:[#allocation2 + $0x4c4] ss:$60 sps:$4 sm:$0xff]  }
0x14c7   :  { %4294 = vmatprep.subr.bf16.mxu1 %v8206_v46  ;;  %v8279_v46 = vld [vmem:[#allocation2 + $0x3d8] ss:$60 sps:$4 sm:$0xff]  }
0x14ca   :  { %4295 = vmatpush1.bf16.msra.mxu1 %v8204_v36  ;;  %v8287_v36 = vld [vmem:[#allocation2 + $0x734] ss:$60 sps:$4 sm:$0xff]  }
0x157d   :  { %v3414_v16 = vpop.f32.mrf.mxu1 }
0x157e   :  { %v3415_v17 = vadd.f32 %v7092_v14, %v3414_v16  ;;  %v8234_v16 = vld [vmem:[#allocation2 + $0x718] ss:$60 sps:$4 sm:$0xff]  }
0x157f   :  { %v7729_v44 = vpop.f32.mrf.mxu1 }
0x1580   :  { %v3421_v60 = vmax.f32 %v3415_v17, 0.0  ;;  %v8237_v44 = vld [vmem:[#allocation2 + $0x720] ss:$60 sps:$4 sm:$0xff]  }
0x1581   :  { %v3417_v34 = vpop.f32.mrf.mxu1 }
0x1582   :  { %v3418_v53 = vadd.f32 %v7092_v14, %v3417_v34  ;;  %v8242_v34 = vld [vmem:[#allocation2 + $0x6a4] ss:$60 sps:$4 sm:$0xff]  }
0x1583   :  { %v7730_v37 = vpop.f32.mrf.mxu1 }
0x1584   :  { %v3422_v18 = vmax.f32 %v3418_v53, 0.0  ;;  %v8245_v53 = vld [vmem:[#allocation2 + $0x6ac] ss:$60 sps:$4 sm:$0xff]   ;;  %v8240_v37 = vld [vmem:[#allocation2 + $0x6a0] ss:$60 sps:$4 sm:$0xff]  }
0x1586   :  { %v3423_v19 = vpack.c.bf16 %v3422_v18, %v3421_v60  ;;  %v8243_v60 = vld [vmem:[#allocation2 + $0x6a8] ss:$60 sps:$4 sm:$0xff]  }
0x1587   :  { %v8248_v18 = vld [vmem:[#allocation2 + $0x62c] ss:$60 sps:$4 sm:$0xff]  }
0x1588   :  { %7748 = vmatmul.mubr.bf16.vlgmr.msra.gmra.mxu0 %v3423_v19  ;;  %v8251_v19 = vld [vmem:[#allocation2 + $0x634] ss:$60 sps:$4 sm:$0xff]  }
0x1589   :  { %4363 = vmatprep.mubr.bf16.mxu0 %v8632_v54  ;;  %4332 = vmatpush1.bf16.msra.mxu0 %v8189_v57  ;;  %v8254_v57 = vld [vmem:[#allocation2 + $0x5b4] ss:$60 sps:$4 sm:$0xff]  }
0x158a   :  { %4333 = vmatprep.subr.bf16.mxu0 %v8197_v21  ;;  %v8255_v21 = vld [vmem:[#allocation2 + $0x5b8] ss:$60 sps:$4 sm:$0xff]  }
0x158d   :  { %4334 = vmatpush1.bf16.msra.mxu0 %v8195_v30  ;;  %v8263_v30 = vld [vmem:[#allocation2 + $0x544] ss:$60 sps:$4 sm:$0xff]  }
0x158e   :  { %4335 = vmatprep.subr.bf16.mxu0 %v8203_v43  ;;  %v8261_v43 = vld [vmem:[#allocation2 + $0x540] ss:$60 sps:$4 sm:$0xff]  }
0x1591   :  { %4336 = vmatpush1.bf16.msra.mxu0 %v8201_v26  ;;  %v8269_v26 = vld [vmem:[#allocation2 + $0x4cc] ss:$60 sps:$4 sm:$0xff]  }
0x1592   :  { %4337 = vmatprep.subr.bf16.mxu0 %v8209_v48  ;;  %v8284_v48 = vld [vmem:[#allocation2 + $0x72c] ss:$60 sps:$4 sm:$0xff]  }
0x1595   :  { %4338 = vmatpush1.bf16.msra.mxu0 %v8207_v33  ;;  %v8282_v33 = vld [vmem:[#allocation2 + $0x728] ss:$60 sps:$4 sm:$0xff]  }
0x1596   :  { %4339 = vmatprep.subr.bf16.mxu0 %v8215_v52  ;;  %v8290_v52 = vld [vmem:[#allocation2 + $0x6b4] ss:$60 sps:$4 sm:$0xff]  }
0x1599   :  { %4340 = vmatpush1.bf16.msra.mxu0 %v8213_v50  ;;  %v8288_v50 = vld [vmem:[#allocation2 + $0x6b0] ss:$60 sps:$4 sm:$0xff]  }
0x159a   :  { %4341 = vmatprep.subr.bf16.mxu0 %v8221_v55  ;;  %v8296_v55 = vld [vmem:[#allocation2 + $0x63c] ss:$60 sps:$4 sm:$0xff]  }
0x159d   :  { %4342 = vmatpush1.bf16.msra.mxu0 %v8219_v58  ;;  %v8294_v58 = vld [vmem:[#allocation2 + $0x638] ss:$60 sps:$4 sm:$0xff]  }
0x159e   :  { %4343 = vmatprep.subr.bf16.mxu0 %v8227_v45  ;;  %v8302_v45 = vld [vmem:[#allocation2 + $0x5c4] ss:$60 sps:$4 sm:$0xff]  }
0x15a1   :  { %4344 = vmatpush1.bf16.msra.mxu0 %v8225_v63  ;;  %v8300_v63 = vld [vmem:[#allocation2 + $0x5c0] ss:$60 sps:$4 sm:$0xff]  }
0x15a2   :  { %4345 = vmatprep.subr.bf16.mxu0 %v8233_v4  ;;  %v8308_v4 = vld [vmem:[#allocation2 + $0x54c] ss:$60 sps:$4 sm:$0xff]  }
0x15a5   :  { %4346 = vmatpush1.bf16.msra.mxu0 %v8231_v56  ;;  %v8306_v56 = vld [vmem:[#allocation2 + $0x548] ss:$60 sps:$4 sm:$0xff]  }
0x15a6   :  { %4417 = vmatprep.subr.bf16.mxu0 %v8239_v59  ;;  %v8314_v59 = vld [vmem:[#allocation2 + $0x4d4] ss:$60 sps:$4 sm:$0xff]  }
0x1648   :  { %v3529_v29 = vpop.f32.mrf.mxu0 }
0x1649   :  { %v3530_v32 = vadd.f32 %v7101_v27, %v3529_v29  ;;  %v8267_v29 = vld [vmem:[#allocation2 + $0x4c8] ss:$60 sps:$4 sm:$0xff]  }
0x164a   :  { %v7749_v51 = vpop.f32.mrf.mxu0 }
0x164b   :  { %v9022_v31 = vadd.f32 %v3530_v32, %v8990_v41  ;;  %v8212_v41 = vld [vmem:[#allocation2 + $0x52c] ss:$60 sps:$4 sm:$0xff]   ;;  %v8275_v51 = vld [vmem:[#allocation2 + $0x454] ss:$60 sps:$4 sm:$0xff]  }
0x164c   :  { %v3532_v35 = vpop.f32.mrf.mxu0  ;;  %4296 = vmatprep.subr.bf16.mxu1 %v8212_v41  ;;  %v8272_v32 = vld [vmem:[#allocation2 + $0x44c] ss:$60 sps:$4 sm:$0xff]  }
0x164d   :  { %v3533_v38 = vadd.f32 %v7101_v27, %v3532_v35  ;;  %v3538_v39 = vmul.f32 %v9022_v31, %v9022_v31  ;;  %4297 = vmatpush1.bf16.msra.mxu1 %v8210_v23  ;;  %v8264_v27 = vld [vmem:[#allocation2 + $0x4c0] ss:$60 sps:$4 sm:$0xff]   ;;  %v8270_v35 = vld [vmem:[#allocation2 + $0x448] ss:$60 sps:$4 sm:$0xff]   ;;  %v8285_v41 = vld [vmem:[#allocation2 + $0x730] ss:$60 sps:$4 sm:$0xff]  }
0x164e   :  { %v7750_v40 = vpop.f32.mrf.mxu0  ;;  %v8293_v23 = vld [vmem:[#allocation2 + $0x6bc] ss:$60 sps:$4 sm:$0xff]  }
0x164f   :  { %v9027_v5 = vadd.f32 %v3533_v38, %v8995_v49  ;;  %3540 = vadd.xlane.f32.xlu0 %v3538_v39  ;;  %v8218_v49 = vld [vmem:[#allocation2 + $0x4b4] ss:$60 sps:$4 sm:$0xff]   ;;  %v8281_v40 = vld [vmem:[#allocation2 + $0x3dc] ss:$60 sps:$4 sm:$0xff]  }
0x1650   :  { %4298 = vmatprep.subr.bf16.mxu1 %v8218_v49  ;;  %v8273_v38 = vld [vmem:[#allocation2 + $0x450] ss:$60 sps:$4 sm:$0xff]   ;;  %v8291_v49 = vld [vmem:[#allocation2 + $0x6b8] ss:$60 sps:$4 sm:$0xff]  }
0x1651   :  { %v3539_v42 = vmul.f32 %v9027_v5, %v9027_v5  ;;  %4299 = vmatpush1.bf16.msra.mxu1 %v8216_v28  ;;  %v8278_v39 = vld [vmem:[#allocation2 + $0x3d4] ss:$60 sps:$4 sm:$0xff]   ;;  %v8299_v28 = vld [vmem:[#allocation2 + $0x644] ss:$60 sps:$4 sm:$0xff]  }
0x1652   :  { %4300 = vmatprep.subr.bf16.mxu1 %v8224_v62  ;;  %v8297_v62 = vld [vmem:[#allocation2 + $0x640] ss:$60 sps:$4 sm:$0xff]  }
0x1653   :  { %3542 = vadd.xlane.f32.xlu1 %v3539_v42  ;;  %v8276_v42 = vld [vmem:[#allocation2 + $0x3d0] ss:$60 sps:$4 sm:$0xff]  }
0x1655   :  { %4301 = vmatpush1.bf16.msra.mxu1 %v8222_v61  ;;  %v8305_v61 = vld [vmem:[#allocation2 + $0x5cc] ss:$60 sps:$4 sm:$0xff]  }
0x1656   :  { %4302 = vmatprep.subr.bf16.mxu1 %v8230_v1  ;;  %v8303_v1 = vld [vmem:[#allocation2 + $0x5c8] ss:$60 sps:$4 sm:$0xff]  }
0x1659   :  { %4303 = vmatpush1.bf16.msra.mxu1 %v8228_v6  ;;  %v8311_v6 = vld [vmem:[#allocation2 + $0x554] ss:$60 sps:$4 sm:$0xff]  }
0x165a   :  { %4374 = vmatprep.subr.bf16.mxu1 %v8236_v2  ;;  %v8309_v2 = vld [vmem:[#allocation2 + $0x550] ss:$60 sps:$4 sm:$0xff]  }
0x16d8   :  { %v3541_v7 = vpop.xlane.xlu0 %3540 }
0x16d9   :  { %v3544_v8 = vmax.f32 %v3541_v7, 1e-10  ;;  %v8317_v7 = vld [vmem:[#allocation2 + $0x4dc] ss:$60 sps:$4 sm:$0xff]  }
0x16db   :  { %8466 = vrsqrt.f32 %v3544_v8  ;;  %v8312_v8 = vld [vmem:[#allocation2 + $0x4d0] ss:$60 sps:$4 sm:$0xff]  }
0x16dc   :  { %v3543_v9 = vpop.xlane.xlu1 %3542 }
0x16dd   :  { %v3545_v11 = vmax.f32 %v3543_v9, 1e-10  ;;  %v8315_v9 = vld [vmem:[#allocation2 + $0x4d8] ss:$60 sps:$4 sm:$0xff]  }
0x16df   :  { %8468 = vrsqrt.f32 %v3545_v11  ;;  %v8320_v11 = vld [vmem:[#allocation2 + $0x45c] ss:$60 sps:$4 sm:$0xff]  }
0x16e8   :  { %v8467_v12 = vpop.eup %8466 }
0x16e9   :  { %v3548_v13 = vmul.f32 %v8467_v12, %v9022_v31  ;;  %v8323_v12 = vld [vmem:[#allocation2 + $0x464] ss:$60 sps:$4 sm:$0xff]  }
0x16ec   :  { %v8469_v47 = vpop.eup %8468 }
0x16ed   :  { %v3549_v14 = vmul.f32 %v8469_v47, %v9027_v5  ;;  %v8318_v47 = vld [vmem:[#allocation2 + $0x458] ss:$60 sps:$4 sm:$0xff]  }
0x16ef   :  { %v9033_v17 = vpack.c.bf16 %v3549_v14, %v3548_v13  ;;  %v8321_v13 = vld [vmem:[#allocation2 + $0x460] ss:$60 sps:$4 sm:$0xff]  }
0x16f0   :  { %v8326_v14 = vld [vmem:[#allocation2 + $0x3e4] ss:$60 sps:$4 sm:$0xff]  }
0x16f1   :  { %4321 = vmatmul.mubr.bf16.vlgmr.msra.gmra.mxu1 %v9033_v17  ;;  %4364 = vmatmul.mubr.bf16.vlgmr.msra.gmra.mxu0 %v9033_v17 }
0x16f2   :  { %4375 = vmatpush1.bf16.msra.mxu1 %v8234_v16  ;;  %4418 = vmatpush1.bf16.msra.mxu0 %v8237_v44  ;;  %v8329_v16 = vld [vmem:[#allocation2 + $0x3ec] ss:$60 sps:$4 sm:$0xff]   ;;  %v8324_v44 = vld [vmem:[#allocation2 + $0x3e0] ss:$60 sps:$4 sm:$0xff]  }
0x16f3   :  { %4376 = vmatprep.subr.bf16.mxu1 %v8242_v34  ;;  %4419 = vmatprep.subr.bf16.mxu0 %v8245_v53  ;;  %v8327_v34 = vld [vmem:[#allocation2 + $0x3e8] ss:$60 sps:$4 sm:$0xff]   ;;  %v8332_v53 = vld [vmem:[#allocation2 + $0x73c] ss:$60 sps:$4 sm:$0xff]  }
0x16f4   :  { %4406 = vmatprep.mubr.bf16.mxu1 %v8632_v54  ;;  %4449 = vmatprep.mubr.bf16.mxu0 %v8632_v54 }
0x16f6   :  { %4377 = vmatpush1.bf16.msra.mxu1 %v8240_v37  ;;  %4420 = vmatpush1.bf16.msra.mxu0 %v8243_v60  ;;  %v8330_v37 = vld [vmem:[#allocation2 + $0x738] ss:$60 sps:$4 sm:$0xff]   ;;  %v8333_v60 = vld [vmem:[#allocation2 + $0x740] ss:$60 sps:$4 sm:$0xff]  }
0x16f7   :  { %4378 = vmatprep.subr.bf16.mxu1 %v8248_v18  ;;  %4421 = vmatprep.subr.bf16.mxu0 %v8251_v19  ;;  %v8336_v18 = vld [vmem:[#allocation2 + $0x6c4] ss:$60 sps:$4 sm:$0xff]  }
0x16f8   :  { %v8334_v19 = vld [vmem:[#allocation2 + $0x6c0] ss:$60 sps:$4 sm:$0xff]  }
0x16fa   :  { %4379 = vmatpush1.bf16.msra.mxu1 %v8246_v20  ;;  %4422 = vmatpush1.bf16.msra.mxu0 %v8249_v22  ;;  %v8337_v20 = vld [vmem:[#allocation2 + $0x6c8] ss:$60 sps:$4 sm:$0xff]  }
0x16fb   :  { %4380 = vmatprep.subr.bf16.mxu1 %v8254_v57  ;;  %4423 = vmatprep.subr.bf16.mxu0 %v8257_v10  ;;  %v8340_v22 = vld [vmem:[#allocation2 + $0x64c] ss:$60 sps:$4 sm:$0xff]  }
0x16fc   :  { %v8338_v57 = vld [vmem:[#allocation2 + $0x648] ss:$60 sps:$4 sm:$0xff]   ;;  %v8341_v10 = vld [vmem:[#allocation2 + $0x650] ss:$60 sps:$4 sm:$0xff]  }
0x16fe   :  { %4381 = vmatpush1.bf16.msra.mxu1 %v8252_v3  ;;  %4424 = vmatpush1.bf16.msra.mxu0 %v8255_v21  ;;  %v8344_v3 = vld [vmem:[#allocation2 + $0x5d4] ss:$60 sps:$4 sm:$0xff]  }
0x16ff   :  { %4382 = vmatprep.subr.bf16.mxu1 %v8260_v24  ;;  %4425 = vmatprep.subr.bf16.mxu0 %v8263_v30  ;;  %v8342_v21 = vld [vmem:[#allocation2 + $0x5d0] ss:$60 sps:$4 sm:$0xff]   ;;  %v8345_v24 = vld [vmem:[#allocation2 + $0x5d8] ss:$60 sps:$4 sm:$0xff]  }
0x1700   :  { %v8348_v30 = vld [vmem:[#allocation2 + $0x55c] ss:$60 sps:$4 sm:$0xff]  }
0x1702   :  { %4383 = vmatpush1.bf16.msra.mxu1 %v8258_v15  ;;  %4426 = vmatpush1.bf16.msra.mxu0 %v8261_v43  ;;  %v8349_v15 = vld [vmem:[#allocation2 + $0x560] ss:$60 sps:$4 sm:$0xff]  }
0x1703   :  { %4384 = vmatprep.subr.bf16.mxu1 %v8266_v25  ;;  %4427 = vmatprep.subr.bf16.mxu0 %v8269_v26  ;;  %v8352_v43 = vld [vmem:[#allocation2 + $0x4e4] ss:$60 sps:$4 sm:$0xff]  }
0x1704   :  { %v8350_v25 = vld [vmem:[#allocation2 + $0x4e0] ss:$60 sps:$4 sm:$0xff]   ;;  %v8353_v26 = vld [vmem:[#allocation2 + $0x4e8] ss:$60 sps:$4 sm:$0xff]  }
0x1706   :  { %4385 = vmatpush1.bf16.msra.mxu1 %v8264_v27  ;;  %4428 = vmatpush1.bf16.msra.mxu0 %v8267_v29  ;;  %v8356_v27 = vld [vmem:[#allocation2 + $0x46c] ss:$60 sps:$4 sm:$0xff]  }
0x1707   :  { %4386 = vmatprep.subr.bf16.mxu1 %v8272_v32  ;;  %4429 = vmatprep.subr.bf16.mxu0 %v8275_v51  ;;  %v8354_v29 = vld [vmem:[#allocation2 + $0x468] ss:$60 sps:$4 sm:$0xff]   ;;  %v8357_v32 = vld [vmem:[#allocation2 + $0x470] ss:$60 sps:$4 sm:$0xff]  }
0x1708   :  { %v8360_v51 = vld [vmem:[#allocation2 + $0x3f4] ss:$60 sps:$4 sm:$0xff]  }
0x170a   :  { %4387 = vmatpush1.bf16.msra.mxu1 %v8270_v35  ;;  %4430 = vmatpush1.bf16.msra.mxu0 %v8273_v38  ;;  %v8358_v35 = vld [vmem:[#allocation2 + $0x3f0] ss:$60 sps:$4 sm:$0xff]   ;;  %v8361_v38 = vld [vmem:[#allocation2 + $0x3f8] ss:$60 sps:$4 sm:$0xff]  }
0x170b   :  { %4388 = vmatprep.subr.bf16.mxu1 %v8278_v39  ;;  %4431 = vmatprep.subr.bf16.mxu0 %v8281_v40 }
0x170e   :  { %4389 = vmatpush1.bf16.msra.mxu1 %v8276_v42  ;;  %4432 = vmatpush1.bf16.msra.mxu0 %v8279_v46 }
0x170f   :  { %4460 = vmatprep.subr.bf16.mxu1 %v8284_v48  ;;  %4503 = vmatprep.subr.bf16.mxu0 %v8287_v36 }
0x1711   :  { %4407 = vmatmul.mubr.bf16.vlgmr.msra.gmra.mxu1 %v9033_v17  ;;  %4450 = vmatmul.mubr.bf16.vlgmr.msra.gmra.mxu0 %v9033_v17 }
0x1712   :  { %4461 = vmatpush1.bf16.msra.mxu1 %v8282_v33  ;;  %4504 = vmatpush1.bf16.msra.mxu0 %v8285_v41 }
0x1713   :  { %4462 = vmatprep.subr.bf16.mxu1 %v8290_v52  ;;  %4505 = vmatprep.subr.bf16.mxu0 %v8293_v23 }
0x1714   :  { %4492 = vmatprep.mubr.bf16.mxu1 %v8632_v54  ;;  %4535 = vmatprep.mubr.bf16.mxu0 %v8632_v54 }
0x1716   :  { %4463 = vmatpush1.bf16.msra.mxu1 %v8288_v50  ;;  %4506 = vmatpush1.bf16.msra.mxu0 %v8291_v49 }
0x1717   :  { %4464 = vmatprep.subr.bf16.mxu1 %v8296_v55  ;;  %4507 = vmatprep.subr.bf16.mxu0 %v8299_v28 }
0x171a   :  { %4465 = vmatpush1.bf16.msra.mxu1 %v8294_v58  ;;  %4508 = vmatpush1.bf16.msra.mxu0 %v8297_v62 }
0x171b   :  { %4466 = vmatprep.subr.bf16.mxu1 %v8302_v45  ;;  %4509 = vmatprep.subr.bf16.mxu0 %v8305_v61 }
0x171e   :  { %4467 = vmatpush1.bf16.msra.mxu1 %v8300_v63  ;;  %4510 = vmatpush1.bf16.msra.mxu0 %v8303_v1 }
0x171f   :  { %4468 = vmatprep.subr.bf16.mxu1 %v8308_v4  ;;  %4511 = vmatprep.subr.bf16.mxu0 %v8311_v6 }
0x1722   :  { %4469 = vmatpush1.bf16.msra.mxu1 %v8306_v56  ;;  %4512 = vmatpush1.bf16.msra.mxu0 %v8309_v2 }
0x1723   :  { %4470 = vmatprep.subr.bf16.mxu1 %v8314_v59  ;;  %4513 = vmatprep.subr.bf16.mxu0 %v8317_v7 }
0x1726   :  { %4471 = vmatpush1.bf16.msra.mxu1 %v8312_v8  ;;  %4514 = vmatpush1.bf16.msra.mxu0 %v8315_v9 }
0x1727   :  { %4472 = vmatprep.subr.bf16.mxu1 %v8320_v11  ;;  %4515 = vmatprep.subr.bf16.mxu0 %v8323_v12 }
0x172a   :  { %4473 = vmatpush1.bf16.msra.mxu1 %v8318_v47  ;;  %4516 = vmatpush1.bf16.msra.mxu0 %v8321_v13 }
0x172b   :  { %4474 = vmatprep.subr.bf16.mxu1 %v8326_v14  ;;  %4517 = vmatprep.subr.bf16.mxu0 %v8329_v16 }
0x172e   :  { %4475 = vmatpush1.bf16.msra.mxu1 %v8324_v44  ;;  %4518 = vmatpush1.bf16.msra.mxu0 %v8327_v34 }
0x172f   :  { %4546 = vmatprep.subr.bf16.mxu1 %v8332_v53  ;;  %7751 = vmatprep.subr.bf16.mxu0 %v8630_v0 }
0x1731   :  { %4493 = vmatmul.mubr.bf16.vlgmr.msra.gmra.mxu1 %v9033_v17  ;;  %4536 = vmatmul.mubr.bf16.vlgmr.msra.gmra.mxu0 %v9033_v17 }
0x1732   :  { %4547 = vmatpush1.bf16.msra.mxu1 %v8330_v37  ;;  %7752 = vmatpush3.bf16.msra.mxu0 %v8333_v60 }
0x1733   :  { %4548 = vmatprep.subr.bf16.mxu1 %v8336_v18  ;;  %7753 = vmatprep.subr.bf16.mxu0 %v8630_v0 }
0x1734   :  { %4578 = vmatprep.mubr.bf16.mxu1 %v8632_v54  ;;  %7767 = vmatprep.mubr.msk.bf16.mxu0 %vm8631_vm0, %v8630_v0  ;;  %v8346_v54 = vld [vmem:[#allocation2 + $0x558] ss:$60 sps:$4 sm:$0xff]  }
0x1736   :  { %4549 = vmatpush1.bf16.msra.mxu1 %v8334_v19  ;;  %7754 = vmatpush3.bf16.msra.mxu0 %v8337_v20 }
0x1737   :  { %4550 = vmatprep.subr.bf16.mxu1 %v8340_v22  ;;  %7755 = vmatprep.subr.bf16.mxu0 %v8630_v0 }
0x173a   :  { %4551 = vmatpush1.bf16.msra.mxu1 %v8338_v57  ;;  %7756 = vmatpush3.bf16.msra.mxu0 %v8341_v10 }
0x173b   :  { %4552 = vmatprep.subr.bf16.mxu1 %v8344_v3  ;;  %7757 = vmatprep.subr.bf16.mxu0 %v8630_v0 }
0x173e   :  { %4553 = vmatpush1.bf16.msra.mxu1 %v8342_v21  ;;  %7758 = vmatpush3.bf16.msra.mxu0 %v8345_v24 }
0x173f   :  { %4554 = vmatprep.subr.bf16.mxu1 %v8348_v30  ;;  %7759 = vmatprep.subr.bf16.mxu0 %v8630_v0 }
0x1742   :  { %4555 = vmatpush1.bf16.msra.mxu1 %v8346_v54  ;;  %7760 = vmatpush3.bf16.msra.mxu0 %v8349_v15 }
0x1743   :  { %4556 = vmatprep.subr.bf16.mxu1 %v8352_v43  ;;  %7761 = vmatprep.subr.bf16.mxu0 %v8630_v0 }
0x1746   :  { %4557 = vmatpush1.bf16.msra.mxu1 %v8350_v25  ;;  %7762 = vmatpush3.bf16.msra.mxu0 %v8353_v26 }
0x1747   :  { %4558 = vmatprep.subr.bf16.mxu1 %v8356_v27  ;;  %7763 = vmatprep.subr.bf16.mxu0 %v8630_v0 }
0x174a   :  { %4559 = vmatpush1.bf16.msra.mxu1 %v8354_v29  ;;  %7764 = vmatpush3.bf16.msra.mxu0 %v8357_v32 }
0x174b   :  { %4560 = vmatprep.subr.bf16.mxu1 %v8360_v51  ;;  %7765 = vmatprep.subr.bf16.mxu0 %v8630_v0 }
0x174e   :  { %4561 = vmatpush1.bf16.msra.mxu1 %v8358_v35  ;;  %7766 = vmatpush3.bf16.msra.mxu0 %v8361_v38 }
0x174f   :  { %7771 = vmatprep.subr.mxu1 %v8630_v0  ;;  %7811 = vmatprep.subr.mxu0 %v8630_v0 }
0x1751   :  { %4579 = vmatmul.mubr.bf16.vlgmr.msra.gmra.mxu1 %v9033_v17  ;;  %7768 = vmatmul.mubr.bf16.vlgmr.msra.gmra.mxu0 %v9033_v17 }
0x1752   :  { %7773 = vmatprep.mubr.msk.f32.mxu1 %vm8631_vm0, %v8630_v0  ;;  %7813 = vmatprep.mubr.msk.f32.mxu0 %vm8631_vm0, %v8630_v0 }
0x17b1   :  { %v4322_v39 = vpop.f32.mrf.mxu1  ;;  %v9066_v33 = vpop.f32.mrf.mxu0 }
0x17b3   :  { %v9064_v40 = vpop.f32.mrf.mxu1  ;;  %v9071_v17 = vpop.f32.mrf.mxu0 }
0x17b5   :  { %v4326_v42 = vpop.f32.mrf.mxu1  ;;  %v4369_v41 = vpop.f32.mrf.mxu0 }
0x17b7   :  { %v4328_v46 = vpop.f32.mrf.mxu1  ;;  %v4371_v52 = vpop.f32.mrf.mxu0 }
0x17d1   :  { %v4408_v48 = vpop.f32.mrf.mxu1  ;;  %v9073_v23 = vpop.f32.mrf.mxu0 }
0x17d3   :  { %v4410_v36 = vpop.f32.mrf.mxu1  ;;  %v9075_v50 = vpop.f32.mrf.mxu0 }
0x17d4   :  { %7772 = vmatpush3.xpose.msra.mxu1 %v4410_v36 }
0x17d5   :  { %7776 = vmatprep.subr.mxu1 %v8630_v0  ;;  %v4412_v49 = vpop.f32.mrf.mxu1  ;;  %v4455_v55 = vpop.f32.mrf.mxu0 }
0x17d7   :  { %7774 = vmatmul.mubr.f32.vlgmr.msra.gmra.mxu1 %v4322_v39  ;;  %v4414_v28 = vpop.f32.mrf.mxu1  ;;  %v4457_v58 = vpop.f32.mrf.mxu0 }
0x17d8   :  { %7778 = vmatprep.mubr.msk.f32.mxu1 %vm8631_vm0, %v8630_v0 }
0x17f1   :  { %v9077_v62 = vpop.f32.mrf.mxu1  ;;  %v4537_v45 = vpop.f32.mrf.mxu0 }
0x17f2   :  { %7777 = vmatpush3.msra.mxu1 %v4537_v45 }
0x17f3   :  { %v4496_v61 = vpop.f32.mrf.mxu1  ;;  %7781 = vmatprep.subr.mxu1 %v8630_v0  ;;  %v4539_v1 = vpop.f32.mrf.mxu0 }
0x17f4   :  { %7812 = vmatpush3.xpose.msra.mxu0 %v4496_v61 }
0x17f5   :  { %7821 = vmatprep.subr.mxu0 %v8630_v0  ;;  %v4498_v63 = vpop.f32.mrf.mxu1  ;;  %v9095_v6 = vpop.f32.mrf.mxu0 }
0x17f7   :  { %7814 = vmatmul.mubr.f32.vlgmr.msra.gmra.mxu0 %v4408_v48  ;;  %v4500_v4 = vpop.f32.mrf.mxu1  ;;  %v9097_v56 = vpop.f32.mrf.mxu0 }
0x17f8   :  { %7822 = vmatpush3.xpose.msra.mxu0 %v4414_v28  ;;  %7823 = vmatprep.mubr.msk.f32.mxu0 %vm8631_vm0, %v8630_v0 }
0x17f9   :  { %7831 = vmatprep.subr.mxu0 %v8630_v0 }
0x17fb   :  { %7824 = vmatmul.mubr.f32.vlgmr.msra.gmra.mxu0 %v4326_v42 }
0x17fc   :  { %7832 = vmatpush3.xpose.msra.mxu0 %v4455_v55  ;;  %7833 = vmatprep.mubr.msk.f32.mxu0 %vm8631_vm0, %v8630_v0 }
0x17fd   :  { %7841 = vmatprep.subr.mxu0 %v8630_v0 }
0x17ff   :  { %7834 = vmatmul.mubr.f32.vlgmr.msra.gmra.mxu0 %v4328_v46 }
0x1800   :  { %7842 = vmatpush3.xpose.msra.mxu0 %v4457_v58  ;;  %7843 = vmatprep.mubr.msk.f32.mxu0 %vm8631_vm0, %v8630_v0 }
0x1801   :  { %7851 = vmatprep.subr.mxu0 %v8630_v0 }
0x1803   :  { %7844 = vmatmul.mubr.f32.vlgmr.msra.gmra.mxu0 %v4369_v41 }
0x1804   :  { %7852 = vmatpush3.xpose.msra.mxu0 %v4498_v63  ;;  %7853 = vmatprep.mubr.msk.f32.mxu0 %vm8631_vm0, %v8630_v0 }
0x1805   :  { %7861 = vmatprep.subr.mxu0 %v8630_v0 }
0x1807   :  { %7854 = vmatmul.mubr.f32.vlgmr.msra.gmra.mxu0 %v4371_v52 }
0x1808   :  { %7862 = vmatpush3.xpose.msra.mxu0 %v4500_v4  ;;  %7863 = vmatprep.mubr.msk.f32.mxu0 %vm8631_vm0, %v8630_v0 }
0x180b   :  { %7864 = vmatmul.mubr.f32.vlgmr.msra.gmra.mxu0 %v4412_v49 }
0x1811   :  { %v9099_v2 = vpop.f32.mrf.mxu0  ;;  %v4580_v9 = vpop.f32.mrf.mxu1 }
0x1813   :  { %v7769_v59 = vpop.f32.mrf.mxu0  ;;  %v9103_v11 = vpop.f32.mrf.mxu1 }
0x1815   :  { %v9101_v7 = vpop.f32.mrf.mxu0  ;;  %v9105_v12 = vpop.f32.mrf.mxu1 }
0x1817   :  { %v7770_v8 = vpop.f32.mrf.mxu0  ;;  %v9107_v47 = vpop.f32.mrf.mxu1 }
0x1897   :  { %v4696_v13 = vpop.f32.mrf.mxu1 }
0x1898   :  { %v4700_v14 = vsel %vm1368_vm1, %v4696_v13, -inf }
0x1899   :  { %4701 = vmax.xlane.f32.xlu0 %v4700_v14  ;;  %v7775_v16 = vpop.f32.mrf.mxu1 }
0x18b7   :  { %v9110_v44 = vpop.f32.mrf.mxu0 }
0x18b8   :  { %v5316_v63 = vsel %vm1368_vm1, %v9110_v44, -inf }
0x18b9   :  { %v7815_v34 = vpop.f32.mrf.mxu0 }
0x18bb   :  { %v9112_v53 = vpop.f32.mrf.mxu0 }
0x18bd   :  { %v7825_v37 = vpop.f32.mrf.mxu0 }
0x18bf   :  { %v9114_v60 = vpop.f32.mrf.mxu0 }
0x18c1   :  { %v7835_v18 = vpop.f32.mrf.mxu0 }
0x18c3   :  { %v9116_v19 = vpop.f32.mrf.mxu0 }
0x18c5   :  { %v7845_v20 = vpop.f32.mrf.mxu0 }
0x18c7   :  { %v9118_v22 = vpop.f32.mrf.mxu0 }
0x18c8   :  { %v5932_v4 = vsel %vm1368_vm1, %v9118_v22, -inf }
0x18c9   :  { %v7855_v57 = vpop.f32.mrf.mxu0 }
0x18cb   :  { %v9120_v10 = vpop.f32.mrf.mxu0 }
0x18cd   :  { %v7865_v3 = vpop.f32.mrf.mxu0 }
0x1922   :  { %v4702_v21 = vpop.xlane.xlu0 %4701 }
0x1923   :  { %v4703_v24 = vsub.f32 %v4696_v13, %v4702_v21 }
0x1925   :  { %v4704_v30 = vmul.f32 1.442695, %v4703_v24 }
0x1927   :  { %8470 = vpow2.f32 %v4704_v30  ;;  %v6086_v30 = vsel %vm1368_vm1, %v9120_v10, -inf }
0x1934   :  { %v8471_v54 = vpop.eup %8470 }
0x1935   :  { %v4706_v15 = vsel %vm1368_vm1, %v8471_v54, 0.0 }
0x1936   :  { %4707 = vadd.xlane.f32.xlu1 %v4706_v15 }
0x19bf   :  { %v4708_v43 = vpop.xlane.xlu1 %4707 }
0x19c0   :  { %8472 = vrcp.f32 %v4708_v43 }
0x19cd   :  { %v8473_v25 = vpop.eup %8472 }
0x19ce   :  { %v4710_v26 = vmul.f32 %v8473_v25, %v8471_v54 }
0x19d0   :  { %7779 = vmatmul.mubr.msk.f32.vlgmr.msra.gmra.mxu1 %vm1368_vm1, %v4710_v26 }
0x19d1   :  { %7782 = vmatpush3.xpose.msra.mxu1 %v9073_v23  ;;  %7783 = vmatprep.mubr.msk.f32.mxu1 %vm8631_vm0, %v8630_v0 }
0x19d2   :  { %7786 = vmatprep.subr.mxu1 %v8630_v0 }
0x19d4   :  { %7784 = vmatmul.mubr.f32.vlgmr.msra.gmra.mxu1 %v9064_v40 }
0x19d5   :  { %7787 = vmatpush3.msra.mxu1 %v4539_v1  ;;  %7788 = vmatprep.mubr.msk.f32.mxu1 %vm8631_vm0, %v8630_v0  ;;  %v5624_v1 = vsel %vm1368_vm1, %v9114_v60, -inf }
0x19d6   :  { %7791 = vmatprep.subr.mxu1 %v8630_v0 }
0x1a90   :  { %v9132_v27 = vpop.f32.mrf.mxu1 }
0x1a92   :  { %v7780_v29 = vpop.f32.mrf.mxu1 }
0x1a94   :  { %v4850_v32 = vpop.f32.mrf.mxu1 }
0x1a95   :  { %v4854_v51 = vsel %vm1368_vm1, %v4850_v32, -inf }
0x1a96   :  { %4855 = vmax.xlane.f32.xlu0 %v4854_v51  ;;  %v7785_v35 = vpop.f32.mrf.mxu1 }
0x1b1f   :  { %v4856_v38 = vpop.xlane.xlu0 %4855 }
0x1b20   :  { %v4857_v39 = vsub.f32 %v4850_v32, %v4856_v38 }
0x1b22   :  { %v4858_v42 = vmul.f32 1.442695, %v4857_v39 }
0x1b24   :  { %8474 = vpow2.f32 %v4858_v42 }
0x1b31   :  { %v8475_v46 = vpop.eup %8474 }
0x1b32   :  { %v4860_v40 = vsel %vm1368_vm1, %v8475_v46, 0.0 }
0x1b33   :  { %4861 = vadd.xlane.f32.xlu1 %v4860_v40 }
0x1bbc   :  { %v4862_v48 = vpop.xlane.xlu1 %4861 }
0x1bbd   :  { %8476 = vrcp.f32 %v4862_v48 }
0x1bca   :  { %v8477_v36 = vpop.eup %8476 }
0x1bcb   :  { %v4864_v41 = vmul.f32 %v8477_v36, %v8475_v46 }
0x1bcd   :  { %7789 = vmatmul.mubr.msk.f32.vlgmr.msra.gmra.mxu1 %vm1368_vm1, %v4864_v41 }
0x1bce   :  { %7792 = vmatpush3.xpose.msra.mxu1 %v9075_v50  ;;  %7793 = vmatprep.mubr.msk.f32.mxu1 %vm8631_vm0, %v8630_v0 }
0x1bcf   :  { %7796 = vmatprep.subr.mxu1 %v8630_v0 }
0x1bd1   :  { %7794 = vmatmul.mubr.f32.vlgmr.msra.gmra.mxu1 %v9066_v33 }
0x1bd2   :  { %7797 = vmatpush3.msra.mxu1 %v4580_v9  ;;  %7798 = vmatprep.mubr.msk.f32.mxu1 %vm8631_vm0, %v8630_v0 }
0x1bd3   :  { %7801 = vmatprep.subr.mxu1 %v8630_v0 }
0x1c8d   :  { %v9145_v52 = vpop.f32.mrf.mxu1 }
0x1c8f   :  { %v7790_v23 = vpop.f32.mrf.mxu1 }
0x1c91   :  { %v5004_v49 = vpop.f32.mrf.mxu1 }
0x1c92   :  { %v5008_v55 = vsel %vm1368_vm1, %v5004_v49, -inf }
0x1c93   :  { %5009 = vmax.xlane.f32.xlu0 %v5008_v55  ;;  %v7795_v50 = vpop.f32.mrf.mxu1 }
0x1d1c   :  { %v5010_v28 = vpop.xlane.xlu0 %5009 }
0x1d1d   :  { %v5011_v58 = vsub.f32 %v5004_v49, %v5010_v28 }
0x1d1f   :  { %v5012_v45 = vmul.f32 1.442695, %v5011_v58  ;;  %v8362_v58 = vld [vmem:[#allocation5 + $0x1b8] sm:$0xff]  }
0x1d20   :  { %7480 = vmatprep.subr.bf16.mxu0 %v8362_v58 }
0x1d21   :  { %8478 = vpow2.f32 %v5012_v45  ;;  %v8363_v45 = vld [vmem:[#allocation5 + $0x178] sm:$0xff]  }
0x1d22   :  { %7481 = vmatpush3.bf16.msra.mxu0 %v8363_v45 }
0x1d2e   :  { %v8479_v61 = vpop.eup %8478 }
0x1d2f   :  { %v5014_v33 = vsel %vm1368_vm1, %v8479_v61, 0.0 }
0x1d30   :  { %5015 = vadd.xlane.f32.xlu1 %v5014_v33  ;;  %v8365_v33 = vld [vmem:[#allocation5 + $0x170] sm:$0xff]  }
0x1d34   :  { %5317 = vmax.xlane.f32.xlu1 %v5316_v63  ;;  %v8366_v63 = vld [vmem:[#allocation5 + $0x1a8] sm:$0xff]  }
0x1d38   :  { %5625 = vmax.xlane.f32.xlu1 %v5624_v1  ;;  %v8367_v1 = vld [vmem:[#allocation5 + $0x168] sm:$0xff]  }
0x1d3c   :  { %5933 = vmax.xlane.f32.xlu1 %v5932_v4  ;;  %v8370_v4 = vld [vmem:[#allocation5 + $0x1a0] sm:$0xff]  }
0x1db9   :  { %v5016_v59 = vpop.xlane.xlu1 %5015 }
0x1dba   :  { %8480 = vrcp.f32 %v5016_v59  ;;  %v8371_v59 = vld [vmem:[#allocation5 + $0x160] sm:$0xff]  }
0x1dbd   :  { %v5318_v13 = vpop.xlane.xlu1 %5317 }
0x1dbe   :  { %v5319_v16 = vsub.f32 %v9110_v44, %v5318_v13  ;;  %v5470_v44 = vsel %vm1368_vm1, %v9112_v53, -inf }
0x1dc1   :  { %v5626_v14 = vpop.xlane.xlu1 %5625 }
0x1dc2   :  { %v5627_v37 = vsub.f32 %v9114_v60, %v5626_v14  ;;  %v5778_v60 = vsel %vm1368_vm1, %v9116_v19, -inf }
0x1dc5   :  { %v5934_v18 = vpop.xlane.xlu1 %5933 }
0x1dc7   :  { %v8481_v8 = vpop.eup %8480 }
0x1dc8   :  { %v5018_v9 = vmul.f32 %v8481_v8, %v8479_v61  ;;  %v8364_v61 = vld [vmem:[#allocation5 + $0x1b0] sm:$0xff]   ;;  %v8374_v8 = vld [vmem:[#allocation5 + $0x198] sm:$0xff]  }
0x1dc9   :  { %7482 = vmatprep.subr.bf16.mxu0 %v8364_v61 }
0x1dca   :  { %7799 = vmatmul.mubr.msk.f32.vlgmr.msra.gmra.mxu1 %vm1368_vm1, %v5018_v9  ;;  %7483 = vmatpush3.bf16.msra.mxu0 %v8365_v33  ;;  %v8391_v33 = vld [vmem:[#allocation5 + $0x278] sm:$0xff]  }
0x1dcb   :  { %7802 = vmatpush3.xpose.msra.mxu1 %v9077_v62  ;;  %7803 = vmatprep.mubr.msk.f32.mxu1 %vm8631_vm0, %v8630_v0  ;;  %v5320_v62 = vmul.f32 1.442695, %v5319_v16 }
0x1dcc   :  { %7806 = vmatprep.subr.mxu1 %v8630_v0  ;;  %7484 = vmatprep.subr.bf16.mxu0 %v8366_v63 }
0x1dcd   :  { %8482 = vpow2.f32 %v5320_v62 }
0x1dce   :  { %7804 = vmatmul.mubr.f32.vlgmr.msra.gmra.mxu1 %v9071_v17  ;;  %v5628_v17 = vmul.f32 1.442695, %v5627_v37  ;;  %7485 = vmatpush3.bf16.msra.mxu0 %v8367_v1 }
0x1dcf   :  { %7807 = vmatpush3.msra.mxu1 %v9103_v11  ;;  %7808 = vmatprep.mubr.msk.f32.mxu1 %vm8631_vm0, %v8630_v0  ;;  %v5935_v11 = vsub.f32 %v9118_v22, %v5934_v18 }
0x1dd0   :  { %7816 = vmatprep.subr.mxu1 %v8630_v0  ;;  %8484 = vpow2.f32 %v5628_v17  ;;  %7486 = vmatprep.subr.bf16.mxu0 %v8370_v4 }
0x1dd1   :  { %v5936_v24 = vmul.f32 1.442695, %v5935_v11 }
0x1dd2   :  { %7487 = vmatpush3.bf16.msra.mxu0 %v8371_v59  ;;  %v8394_v59 = vld [vmem:[#allocation5 + $0x270] sm:$0xff]  }
0x1dd3   :  { %8486 = vpow2.f32 %v5936_v24  ;;  %7488 = vmatprep.subr.bf16.mxu0 %v8374_v8 }
0x1dda   :  { %v9177_v54 = vpop.eup %8482 }
0x1ddb   :  { %v5322_v22 = vsel %vm1368_vm1, %v9177_v54, 0.0 }
0x1ddd   :  { %v9181_v15 = vpop.eup %8484 }
0x1dde   :  { %v5630_v43 = vsel %vm1368_vm1, %v9181_v15, 0.0 }
0x1de0   :  { %v9185_v25 = vpop.eup %8486 }
0x1de1   :  { %v5938_v26 = vsel %vm1368_vm1, %v9185_v25, 0.0 }
0x1e8a   :  { %v9166_v34 = vpop.f32.mrf.mxu1 }
0x1e8c   :  { %v7800_v20 = vpop.f32.mrf.mxu1 }
0x1e8e   :  { %v5158_v57 = vpop.f32.mrf.mxu1 }
0x1e8f   :  { %v5162_v3 = vsel %vm1368_vm1, %v5158_v57, -inf }
0x1e90   :  { %5163 = vmax.xlane.f32.xlu0 %v5162_v3  ;;  %v7805_v21 = vpop.f32.mrf.mxu1 }
0x1e94   :  { %5471 = vmax.xlane.f32.xlu0 %v5470_v44 }
0x1e98   :  { %5779 = vmax.xlane.f32.xlu0 %v5778_v60 }
0x1e9c   :  { %6087 = vmax.xlane.f32.xlu0 %v6086_v30 }
0x1ea0   :  { %5323 = vadd.xlane.f32.xlu0 %v5322_v22 }
0x1ea4   :  { %5631 = vadd.xlane.f32.xlu0 %v5630_v43  ;;  %v8375_v43 = vld [vmem:[#allocation5 + $0x158] sm:$0xff]  }
0x1ea5   :  { %7489 = vmatpush3.bf16.msra.mxu0 %v8375_v43 }
0x1ea8   :  { %5939 = vadd.xlane.f32.xlu0 %v5938_v26  ;;  %v8377_v26 = vld [vmem:[#allocation5 + $0x1e8] sm:$0xff]  }
0x1f19   :  { %v5164_v29 = vpop.xlane.xlu0 %5163 }
0x1f1a   :  { %v5165_v32 = vsub.f32 %v5158_v57, %v5164_v29  ;;  %v8379_v29 = vld [vmem:[#allocation5 + $0x150] sm:$0xff]  }
0x1f1c   :  { %v5166_v51 = vmul.f32 1.442695, %v5165_v32  ;;  %v8380_v32 = vld [vmem:[#allocation5 + $0x220] sm:$0xff]  }
0x1f1d   :  { %v5472_v35 = vpop.xlane.xlu0 %5471 }
0x1f1e   :  { %8488 = vpow2.f32 %v5166_v51  ;;  %v5473_v38 = vsub.f32 %v9112_v53, %v5472_v35  ;;  %v8381_v51 = vld [vmem:[#allocation5 + $0x1e0] sm:$0xff]   ;;  %v8382_v35 = vld [vmem:[#allocation5 + $0x188] sm:$0xff]  }
0x1f20   :  { %v5474_v39 = vmul.f32 1.442695, %v5473_v38  ;;  %v8383_v38 = vld [vmem:[#allocation5 + $0x148] sm:$0xff]  }
0x1f21   :  { %v5780_v42 = vpop.xlane.xlu0 %5779 }
0x1f22   :  { %8490 = vpow2.f32 %v5474_v39  ;;  %v5781_v46 = vsub.f32 %v9116_v19, %v5780_v42  ;;  %v8384_v39 = vld [vmem:[#allocation5 + $0x218] sm:$0xff]  }
0x1f23   :  { %v8385_v42 = vld [vmem:[#allocation5 + $0x1d8] sm:$0xff]  }
0x1f24   :  { %v5782_v40 = vmul.f32 1.442695, %v5781_v46  ;;  %v8386_v46 = vld [vmem:[#allocation5 + $0x180] sm:$0xff]  }
0x1f25   :  { %v6088_v48 = vpop.xlane.xlu0 %6087 }
0x1f26   :  { %8492 = vpow2.f32 %v5782_v40  ;;  %v6089_v36 = vsub.f32 %v9120_v10, %v6088_v48  ;;  %v8387_v40 = vld [vmem:[#allocation5 + $0x140] sm:$0xff]   ;;  %v8388_v48 = vld [vmem:[#allocation5 + $0x210] sm:$0xff]  }
0x1f28   :  { %v6090_v41 = vmul.f32 1.442695, %v6089_v36  ;;  %v8389_v36 = vld [vmem:[#allocation5 + $0x1d0] sm:$0xff]  }
0x1f29   :  { %v5324_v9 = vpop.xlane.xlu0 %5323 }
0x1f2a   :  { %8494 = vpow2.f32 %v6090_v41  ;;  %v8390_v41 = vld [vmem:[#allocation5 + $0x208] sm:$0xff]  }
0x1f2b   :  { %v8489_v23 = vpop.eup %8488 }
0x1f2c   :  { %v5168_v49 = vsel %vm1368_vm1, %v8489_v23, 0.0 }
0x1f2d   :  { %5169 = vadd.xlane.f32.xlu1 %v5168_v49  ;;  %v5632_v16 = vpop.xlane.xlu0 %5631  ;;  %v8393_v49 = vld [vmem:[#allocation5 + $0x200] sm:$0xff]  }
0x1f2f   :  { %v8491_v55 = vpop.eup %8490 }
0x1f30   :  { %v5476_v50 = vsel %vm1368_vm1, %v8491_v55, 0.0 }
0x1f31   :  { %5477 = vadd.xlane.f32.xlu1 %v5476_v50  ;;  %v5940_v57 = vpop.xlane.xlu0 %5939 }
0x1f33   :  { %v9194_v53 = vpop.eup %8492 }
0x1f34   :  { %v5784_v19 = vsel %vm1368_vm1, %v9194_v53, 0.0 }
0x1f35   :  { %5785 = vadd.xlane.f32.xlu1 %v5784_v19 }
0x1f37   :  { %v9198_v28 = vpop.eup %8494 }
0x1f38   :  { %v6092_v10 = vsel %vm1368_vm1, %v9198_v28, 0.0 }
0x1f39   :  { %6093 = vadd.xlane.f32.xlu1 %v6092_v10 }
0x1fb6   :  { %v5170_v13 = vpop.xlane.xlu1 %5169 }
0x1fb7   :  { %8496 = vrcp.f32 %v5170_v13 }
0x1fb8   :  { %8498 = vrcp.f32 %v5324_v9 }
0x1fba   :  { %v5478_v14 = vpop.xlane.xlu1 %5477 }
0x1fbb   :  { %8500 = vrcp.f32 %v5478_v14  ;;  %v8396_v14 = vld [vmem:[#allocation5 + $0x268] sm:$0xff]  }
0x1fbc   :  { %8502 = vrcp.f32 %v5632_v16 }
0x1fbe   :  { %v5786_v62 = vpop.xlane.xlu1 %5785 }
0x1fbf   :  { %8504 = vrcp.f32 %v5786_v62  ;;  %v8397_v62 = vld [vmem:[#allocation5 + $0x260] sm:$0xff]  }
0x1fc0   :  { %8506 = vrcp.f32 %v5940_v57  ;;  %v8401_v57 = vld [vmem:[#allocation5 + $0x240] sm:$0xff]  }
0x1fc2   :  { %v6094_v3 = vpop.xlane.xlu1 %6093 }
0x1fc3   :  { %8508 = vrcp.f32 %v6094_v3  ;;  %v8403_v3 = vld [vmem:[#allocation7 + $0x70] sm:$0xff]  }
0x1fc4   :  { %v8497_v37 = vpop.eup %8496 }
0x1fc5   :  { %v5172_v18 = vmul.f32 %v8497_v37, %v8489_v23  ;;  %v8499_v20 = vpop.eup %8498  ;;  %v8392_v23 = vld [vmem:[#allocation5 + $0x1c8] sm:$0xff]  }
0x1fc6   :  { %v5326_v17 = vmul.f32 %v8499_v20, %v9177_v54  ;;  %v8369_v54 = vld [vmem:[#allocation5 + $0x1f8] sm:$0xff]   ;;  %v8400_v20 = vld [vmem:[#allocation5 + $0x248] sm:$0xff]  }
0x1fc7   :  { %7809 = vmatmul.mubr.msk.f32.vlgmr.msra.gmra.mxu1 %vm1368_vm1, %v5172_v18  ;;  %v8398_v18 = vld [vmem:[#allocation5 + $0x258] sm:$0xff]  }
0x1fc8   :  { %7817 = vmatpush3.msra.mxu1 %v9099_v2  ;;  %7818 = vmatprep.mubr.msk.f32.mxu1 %vm8631_vm0, %v8630_v0  ;;  %v8501_v11 = vpop.eup %8500 }
0x1fc9   :  { %7826 = vmatprep.subr.mxu1 %v8630_v0  ;;  %v5480_v2 = vmul.f32 %v8501_v11, %v8491_v55  ;;  %v8503_v21 = vpop.eup %8502  ;;  %v8395_v55 = vld [vmem:[#allocation5 + $0x1c0] sm:$0xff]   ;;  %v8402_v11 = vld [vmem:[#allocation7 + $0x78] sm:$0xff]  }
0x1fca   :  { %v5634_v24 = vmul.f32 %v8503_v21, %v9181_v15  ;;  %v8373_v15 = vld [vmem:[#allocation5 + $0x1f0] sm:$0xff]  }
0x1fcb   :  { %7819 = vmatmul.mubr.msk.f32.vlgmr.msra.gmra.mxu1 %vm1368_vm1, %v5326_v17 }
0x1fcc   :  { %7827 = vmatpush3.msra.mxu1 %v9095_v6  ;;  %7828 = vmatprep.mubr.msk.f32.mxu1 %vm8631_vm0, %v8630_v0  ;;  %v8505_v6 = vpop.eup %8504 }
0x1fcd   :  { %7836 = vmatprep.subr.mxu1 %v8630_v0  ;;  %v5788_v44 = vmul.f32 %v8505_v6, %v9194_v53 }
0x1fcf   :  { %7829 = vmatmul.mubr.msk.f32.vlgmr.msra.gmra.mxu1 %vm1368_vm1, %v5480_v2 }
0x1fd0   :  { %7837 = vmatpush3.msra.mxu1 %v9097_v56  ;;  %7838 = vmatprep.mubr.msk.f32.mxu1 %vm8631_vm0, %v8630_v0  ;;  %v8507_v56 = vpop.eup %8506 }
0x1fd1   :  { %7846 = vmatprep.subr.mxu1 %v8630_v0  ;;  %v5942_v60 = vmul.f32 %v8507_v56, %v9185_v25  ;;  %v8509_v30 = vpop.eup %8508  ;;  %v8376_v25 = vld [vmem:[#allocation5 + $0x228] sm:$0xff]  }
0x1fd2   :  { %v6096_v22 = vmul.f32 %v8509_v30, %v9198_v28 }
0x1fd3   :  { %7839 = vmatmul.mubr.msk.f32.vlgmr.msra.gmra.mxu1 %vm1368_vm1, %v5634_v24 }
0x1fd4   :  { %7847 = vmatpush3.msra.mxu1 %v9105_v12  ;;  %7848 = vmatprep.mubr.msk.f32.mxu1 %vm8631_vm0, %v8630_v0  ;;  %v8368_v12 = vld [vmem:[#allocation5 + $0x238] sm:$0xff]  }
0x1fd5   :  { %7856 = vmatprep.subr.mxu1 %v8630_v0 }
0x1fd7   :  { %7849 = vmatmul.mubr.msk.f32.vlgmr.msra.gmra.mxu1 %vm1368_vm1, %v5788_v44 }
0x1fd8   :  { %7857 = vmatpush3.msra.mxu1 %v9107_v47  ;;  %7858 = vmatprep.mubr.msk.f32.mxu1 %vm8631_vm0, %v8630_v0  ;;  %v8372_v47 = vld [vmem:[#allocation5 + $0x230] sm:$0xff]  }
0x1fd9   :  { %7866 = vmatprep.subr.mxu1 %v8630_v0 }
0x1fdb   :  { %7859 = vmatmul.mubr.msk.f32.vlgmr.msra.gmra.mxu1 %vm1368_vm1, %v5942_v60 }
0x1fdc   :  { %7867 = vmatpush3.msra.mxu1 %v9101_v7  ;;  %7868 = vmatprep.mubr.msk.f32.mxu1 %vm8631_vm0, %v8630_v0  ;;  %v8378_v7 = vld [vmem:[#allocation5 + $0x190] sm:$0xff]  }
0x1fdd   :  { %7502 = vmatprep.subr.bf16.mxu1 %v8368_v12  ;;  %7490 = vmatprep.subr.bf16.mxu0 %v8378_v7  ;;  %v7241_v12 = vld [vmem:[%s9301_s5 + $0x1] ss:$0 sm:$0xff] }
0x1fde   :  { %7491 = vmatpush3.bf16.msra.mxu0 %v8379_v29 }
0x1fdf   :  { %7869 = vmatmul.mubr.msk.f32.vlgmr.msra.gmra.mxu1 %vm1368_vm1, %v6096_v22  ;;  %7492 = vmatprep.subr.bf16.mxu0 %v8382_v35 }
0x1fe0   :  { %7503 = vmatpush3.bf16.msra.mxu1 %v8369_v54 }
0x1fe1   :  { %7504 = vmatprep.subr.bf16.mxu1 %v8372_v47 }
0x1fe2   :  { %7493 = vmatpush3.bf16.msra.mxu0 %v8383_v38 }
0x1fe3   :  { %7494 = vmatprep.subr.bf16.mxu0 %v8386_v46 }
0x1fe4   :  { %7505 = vmatpush3.bf16.msra.mxu1 %v8373_v15 }
0x1fe5   :  { %7506 = vmatprep.subr.bf16.mxu1 %v8376_v25 }
0x1fe6   :  { %7495 = vmatpush3.bf16.msra.mxu0 %v8387_v40 }
0x1fe7   :  { %7871 = vmatprep.subr.bf16.mxu0 %v8630_v0 }
0x1fe8   :  { %7507 = vmatpush3.bf16.msra.mxu1 %v8377_v26 }
0x1fe9   :  { %7508 = vmatprep.subr.bf16.mxu1 %v8380_v32 }
0x1fec   :  { %7509 = vmatpush3.bf16.msra.mxu1 %v8381_v51 }
0x1fed   :  { %7510 = vmatprep.subr.bf16.mxu1 %v8384_v39 }
0x1ff0   :  { %7511 = vmatpush3.bf16.msra.mxu1 %v8385_v42 }
0x1ff1   :  { %7512 = vmatprep.subr.bf16.mxu1 %v8388_v48 }
0x1ff4   :  { %7513 = vmatpush3.bf16.msra.mxu1 %v8389_v36  ;;  %v8404_v36 = vld [vmem:[#allocation7 + $0x68] sm:$0xff]  }
0x1ff5   :  { %7514 = vmatprep.subr.bf16.mxu1 %v8390_v41  ;;  %v8406_v41 = vld [vmem:[#allocation7 + $0x58] sm:$0xff]  }
0x1ff8   :  { %7515 = vmatpush3.bf16.msra.mxu1 %v8392_v23  ;;  %v8407_v23 = vld [vmem:[#allocation7 + $0x50] sm:$0xff]  }
0x1ff9   :  { %7516 = vmatprep.subr.bf16.mxu1 %v8393_v49  ;;  %v8409_v49 = vld [vmem:[#allocation7 + $0x40] sm:$0xff]  }
0x1ffc   :  { %7517 = vmatpush3.bf16.msra.mxu1 %v8395_v55  ;;  %v8410_v55 = vld [vmem:[#allocation8 + $0x78] sm:$0xff]  }
0x1ffd   :  { %7891 = vmatprep.subr.bf16.mxu1 %v8630_v0 }
0x2087   :  { %v5242_v50 = vpop.f32.mrf.mxu1 }
0x2089   :  { %v7810_v53 = vpop.f32.mrf.mxu1 }
0x208a   :  { %v8412_v53 = vld [vmem:[#allocation8 + $0x68] sm:$0xff]  }
0x208b   :  { %v5396_v19 = vpop.f32.mrf.mxu1 }
0x208d   :  { %v7820_v28 = vpop.f32.mrf.mxu1 }
0x208e   :  { %v8414_v28 = vld [vmem:[#allocation8 + $0x58] sm:$0xff]  }
0x208f   :  { %v5550_v10 = vpop.f32.mrf.mxu1 }
0x2090   :  { %v6170_v63 = vpack.c.bf16 %v5550_v10, %v9132_v27 }
0x2091   :  { %v7830_v58 = vpop.f32.mrf.mxu1 }
0x2093   :  { %v5704_v45 = vpop.f32.mrf.mxu1 }
0x2094   :  { %v6171_v61 = vpack.c.bf16 %v5704_v45, %v9145_v52 }
0x2095   :  { %v7840_v1 = vpop.f32.mrf.mxu1 }
0x2096   :  { %6536 = vmatprep.mubr.bf16.mxu0 %v6171_v61 }
0x2097   :  { %v5858_v4 = vpop.f32.mrf.mxu1  ;;  %6537 = vmatmul.mubr.bf16.vlgmr.msra.gmra.mxu0 %v6170_v63 }
0x2098   :  { %7872 = vmatpush3.bf16.msra.mxu0 %v8391_v33  ;;  %7887 = vmatprep.mubr.msk.bf16.mxu0 %vm8631_vm0, %v8630_v0  ;;  %v6172_v52 = vpack.c.bf16 %v5858_v4, %v9166_v34  ;;  %v8399_v34 = vld [vmem:[#allocation5 + $0x250] sm:$0xff]  }
0x2099   :  { %v7850_v8 = vpop.f32.mrf.mxu1  ;;  %7873 = vmatprep.subr.bf16.mxu0 %v8630_v0 }
0x209a   :  { %v8415_v8 = vld [vmem:[#allocation8 + $0x50] sm:$0xff]  }
0x209b   :  { %v6012_v9 = vpop.f32.mrf.mxu1 }
0x209c   :  { %v6173_v13 = vpack.c.bf16 %v6012_v9, %v5242_v50  ;;  %7874 = vmatpush3.bf16.msra.mxu0 %v8394_v59  ;;  %v8411_v50 = vld [vmem:[#allocation8 + $0x70] sm:$0xff]   ;;  %v8416_v9 = vld [vmem:[#allocation8 + $0x48] sm:$0xff]  }
0x209d   :  { %v7860_v16 = vpop.f32.mrf.mxu1  ;;  %7875 = vmatprep.subr.bf16.mxu0 %v8630_v0 }
0x209e   :  { %6577 = vmatprep.mubr.bf16.mxu1 %v6173_v13  ;;  %v8417_v13 = vld [vmem:[#allocation8 + $0x40] sm:$0xff]  }
0x209f   :  { %v6166_v27 = vpop.f32.mrf.mxu1  ;;  %6578 = vmatmul.mubr.bf16.vlgmr.msra.gmra.mxu1 %v6172_v52 }
0x20a0   :  { %7876 = vmatpush3.bf16.msra.mxu0 %v8396_v14  ;;  %7907 = vmatprep.mubr.msk.bf16.mxu1 %vm8631_vm0, %v8630_v0  ;;  %v6174_v17 = vpack.c.bf16 %v6166_v27, %v5396_v19  ;;  %v8413_v19 = vld [vmem:[#allocation8 + $0x60] sm:$0xff]  }
0x20a1   :  { %v7870_v37 = vpop.f32.mrf.mxu1  ;;  %7877 = vmatprep.subr.bf16.mxu0 %v8630_v0  ;;  %7892 = vmatpush3.bf16.msra.mxu1 %v8402_v11  ;;  %v7283_v14 = vld [vmem:[%s9303_s7 + $0x1] ss:$0 sm:$0xff]  ;;  %s8633_s7 = smov [#allocation10]  }
0x20a2   :  { %7893 = vmatprep.subr.bf16.mxu1 %v8630_v0 }
0x20a4   :  { %7878 = vmatpush3.bf16.msra.mxu0 %v8397_v62 }
0x20a5   :  { %7879 = vmatprep.subr.bf16.mxu0 %v8630_v0  ;;  %7894 = vmatpush3.bf16.msra.mxu1 %v8403_v3 }
0x20a6   :  { %7895 = vmatprep.subr.bf16.mxu1 %v8630_v0 }
0x20a8   :  { %7880 = vmatpush3.bf16.msra.mxu0 %v8398_v18 }
0x20a9   :  { %7881 = vmatprep.subr.bf16.mxu0 %v8630_v0  ;;  %7896 = vmatpush3.bf16.msra.mxu1 %v8404_v36 }
0x20aa   :  { %7897 = vmatprep.subr.bf16.mxu1 %v8630_v0 }
0x20ac   :  { %7882 = vmatpush3.bf16.msra.mxu0 %v8399_v34 }
0x20ad   :  { %7883 = vmatprep.subr.bf16.mxu0 %v8630_v0 }
0x20b0   :  { %7884 = vmatpush3.bf16.msra.mxu0 %v8400_v20 }
0x20b1   :  { %7885 = vmatprep.subr.bf16.mxu0 %v8630_v0 }
0x20b4   :  { %7886 = vmatpush3.bf16.msra.mxu0 %v8401_v57 }
0x20b5   :  { %7911 = vmatprep.subr.bf16.mxu0 %v8630_v0 }
0x20b7   :  { %7888 = vmatmul.mubr.bf16.vlgmr.msra.gmra.mxu0 %v6174_v17 }
0x20b8   :  { %7927 = vmatprep.mubr.msk.bf16.mxu0 %vm8631_vm0, %v8630_v0  ;;  %7912 = vmatpush3.bf16.msra.mxu0 %v8410_v55 }
0x20b9   :  { %7913 = vmatprep.subr.bf16.mxu0 %v8630_v0 }
0x20bc   :  { %7914 = vmatpush3.bf16.msra.mxu0 %v8411_v50 }
0x20bd   :  { %7915 = vmatprep.subr.bf16.mxu0 %v8630_v0 }
0x20c0   :  { %7916 = vmatpush3.bf16.msra.mxu0 %v8412_v53 }
0x20c1   :  { %7917 = vmatprep.subr.bf16.mxu0 %v8630_v0 }
0x20c4   :  { %7918 = vmatpush3.bf16.msra.mxu0 %v8413_v19 }
0x20c5   :  { %7919 = vmatprep.subr.bf16.mxu0 %v8630_v0 }
0x20c8   :  { %7920 = vmatpush3.bf16.msra.mxu0 %v8414_v28 }
0x20c9   :  { %7921 = vmatprep.subr.bf16.mxu0 %v8630_v0 }
0x20cc   :  { %7922 = vmatpush3.bf16.msra.mxu0 %v8415_v8 }
0x20cd   :  { %7923 = vmatprep.subr.bf16.mxu0 %v8630_v0 }
0x20d0   :  { %7924 = vmatpush3.bf16.msra.mxu0 %v8416_v9 }
0x20d1   :  { %7925 = vmatprep.subr.bf16.mxu0 %v8630_v0 }
0x20d4   :  { %7926 = vmatpush3.bf16.msra.mxu0 %v8417_v13 }
0x2157   :  { %v7496_v2 = vpop.f32.mrf.mxu0 }
0x2159   :  { %v7497_v24 = vpop.f32.mrf.mxu0 }
0x215a   :  { %v7498_v60 = vadd.f32 %v7497_v24, %v7496_v2 }
0x215b   :  { %v7499_v44 = vpop.f32.mrf.mxu0 }
0x215c   :  { %v6539_v47 = vadd.f32 %v7498_v60, %v7241_v12 }
0x215d   :  { %v7500_v30 = vpop.f32.mrf.mxu0 }
0x215e   :  { %v7501_v15 = vadd.f32 %v7500_v30, %v7499_v44 }
0x215f   :  { %v7518_v21 = vpop.f32.mrf.mxu1 }
0x2160   :  { %v6542_v7 = vadd.f32 %v7501_v15, %v7241_v12 }
0x2161   :  { %v7519_v6 = vpop.f32.mrf.mxu1 }
0x2162   :  { %v7520_v54 = vadd.f32 %v7519_v6, %v7518_v21 }
0x2163   :  { %v7521_v56 = vpop.f32.mrf.mxu1 }
0x2164   :  { %v6580_v25 = vadd.f32 %v7520_v54, %v6539_v47 }
0x2165   :  { %v7522_v22 = vpop.f32.mrf.mxu1 }
0x2166   :  { %v7523_v43 = vadd.f32 %v7522_v22, %v7521_v56 }
0x2168   :  { %v6583_v35 = vadd.f32 %v7523_v43, %v6542_v7 }
0x2177   :  { %v6620_v26 = vpop.f32.mrf.mxu0 }
0x2178   :  { %v6621_v29 = vadd.f32 %v6620_v26, %v6580_v25 }
0x2179   :  { %v7889_v32 = vpop.f32.mrf.mxu0 }
0x217a   :  { %v9262_v51 = vadd.f32 %v6621_v29, %v9022_v31  ;;  %v8405_v31 = vld [vmem:[#allocation7 + $0x60] sm:$0xff]  }
0x217b   :  { %v6623_v38 = vpop.f32.mrf.mxu0  ;;  %7898 = vmatpush3.bf16.msra.mxu1 %v8405_v31 }
0x217c   :  { %v6624_v39 = vadd.f32 %v6623_v38, %v6583_v35  ;;  %v6629_v42 = vmul.f32 %v9262_v51, %v9262_v51  ;;  %7899 = vmatprep.subr.bf16.mxu1 %v8630_v0 }
0x217d   :  { %v7890_v46 = vpop.f32.mrf.mxu0 }
0x217e   :  { %v9267_v40 = vadd.f32 %v6624_v39, %v9027_v5  ;;  %6631 = vadd.xlane.f32.xlu0 %v6629_v42  ;;  %v8408_v5 = vld [vmem:[#allocation7 + $0x48] sm:$0xff]  }
0x217f   :  { %7900 = vmatpush3.bf16.msra.mxu1 %v8406_v41 }
0x2180   :  { %v6630_v48 = vmul.f32 %v9267_v40, %v9267_v40  ;;  %7901 = vmatprep.subr.bf16.mxu1 %v8630_v0 }
0x2182   :  { %6633 = vadd.xlane.f32.xlu1 %v6630_v48 }
0x2183   :  { %7902 = vmatpush3.bf16.msra.mxu1 %v8407_v23 }
0x2184   :  { %7903 = vmatprep.subr.bf16.mxu1 %v8630_v0 }
0x2187   :  { %7904 = vmatpush3.bf16.msra.mxu1 %v8408_v5 }
0x2188   :  { %7905 = vmatprep.subr.bf16.mxu1 %v8630_v0  ;;  %v7293_v0 = vld [vmem:[%s9305_s9 + $0x1] ss:$0 sm:$0xff]  ;;  %s6898_s9 = sshll.u32 %s8633_s7, 4  ;;  %s6899_s9 = int_to_ptr.vmem [resolvable:$true] %s6898_s9 }
0x2189   :  { %s8594_s19 = scalar_lea.vmem %s6899_s9, 32  ;;  %p8599_p7 = scmp.lt.s32.totalorder %s6899_s9, %s6899_s9 }
0x218a   :  { %p8595_p6 = scmp.ne.s32.totalorder %s6899_s9, %s8594_s19  ;;  %p8600_p8 = scmp.lt.s32.totalorder %s8594_s19, %s8594_s19 }
0x218b   :  { %7906 = vmatpush3.bf16.msra.mxu1 %v8409_v49 }
0x218c   :  { %p8601_p9 = por %p8600_p8, %p8599_p7 }
0x218e   :  { %p8602_p10 = pnand %p8601_p9, %p8595_p6 }
0x2207   :  { %v6632_v10 = vpop.xlane.xlu0 %6631 }
0x2208   :  { %v6635_v58 = vmax.f32 %v6632_v10, 1e-10 }
0x220a   :  { %8510 = vrsqrt.f32 %v6635_v58 }
0x220b   :  { %v6634_v45 = vpop.xlane.xlu1 %6633 }
0x220c   :  { %v6636_v61 = vmax.f32 %v6634_v45, 1e-10 }
0x220e   :  { %8512 = vrsqrt.f32 %v6636_v61 }
0x2217   :  { %v8511_v33 = vpop.eup %8510 }
0x2218   :  { %v6639_v1 = vmul.f32 %v8511_v33, %v9262_v51 }
0x221b   :  { %v8513_v63 = vpop.eup %8512 }
0x221c   :  { %v6640_v4 = vmul.f32 %v8513_v63, %v9267_v40 }
0x221e   :  { %v6641_v59 = vpack.c.bf16 %v6640_v4, %v6639_v1 }
0x2220   :  { %7908 = vmatmul.mubr.bf16.vlgmr.msra.gmra.mxu1 %v6641_v59 }
0x22e0   :  { %v6749_v52 = vpop.f32.mrf.mxu1 }
0x22e1   :  { %v6750_v27 = vadd.f32 %v7283_v14, %v6749_v52 }
0x22e2   :  { %v7909_v16 = vpop.f32.mrf.mxu1 }
0x22e3   :  { %v6756_v34 = vmax.f32 %v6750_v27, 0.0 }
0x22e4   :  { %v6752_v62 = vpop.f32.mrf.mxu1 }
0x22e5   :  { %v6753_v37 = vadd.f32 %v7283_v14, %v6752_v62 }
0x22e6   :  { %v7910_v18 = vpop.f32.mrf.mxu1 }
0x22e7   :  { %v6757_v20 = vmax.f32 %v6753_v37, 0.0 }
0x22e9   :  { %v6758_v57 = vpack.c.bf16 %v6757_v20, %v6756_v34 }
0x22eb   :  { %7928 = vmatmul.mubr.bf16.vlgmr.msra.gmra.mxu0 %v6758_v57 }
0x23ab   :  { %v6866_v17 = vpop.f32.mrf.mxu0 }
0x23ac   :  { %v6867_v11 = vadd.f32 %v7293_v0, %v6866_v17 }
0x23ad   :  { %v7929_v3 = vpop.f32.mrf.mxu0 }
0x23ae   :  { %v6873_v2 = vadd.f32 %v6867_v11, %v9262_v51 }
0x23af   :  { %v6869_v21 = vpop.f32.mrf.mxu0 }
0x23b0   :  { %v6875_v24 = vrot.slane %v6873_v2, 4  ;;  %v6870_v6 = vadd.f32 %v7293_v0, %v6869_v21 }
0x23b1   :  { %v7930_v44 = vpop.f32.mrf.mxu0 }
0x23b2   :  { %v6876_v56 = vadd.f32 %v6875_v24, %v6873_v2  ;;  %v6874_v60 = vadd.f32 %v6870_v6, %v9267_v40 }
0x23b4   :  { %v6877_v12 = vrot.slane %v6876_v56, 2  ;;  %v6884_v30 = vrot.slane %v6874_v60, 4 }
0x23b6   :  { %v6878_v54 = vadd.f32 %v6877_v12, %v6876_v56  ;;  %v6885_v22 = vadd.f32 %v6884_v30, %v6874_v60 }
0x23b8   :  { %v6879_v47 = vrot.slane %v6878_v54, 1  ;;  %v6886_v15 = vrot.slane %v6885_v22, 2 }
0x23ba   :  { %v6880_v43 = vadd.f32 %v6879_v47, %v6878_v54  ;;  %v6887_v25 = vadd.f32 %v6886_v15, %v6885_v22 }
0x23bc   :  { %v6882_v26 = vmul.f32 0.125, %v6880_v43  ;;  %v6888_v7 = vrot.slane %v6887_v25, 1 }
0x23be   :  { %6883 = vst [vmem:[#allocation10] sm:$0x1] %v6882_v26  ;;  %v6889_v29 = vadd.f32 %v6888_v7, %v6887_v25 }
0x23c0   :  { %v6890_v32 = vmul.f32 0.125, %v6889_v29 }
0x23c2   :  { %6892 = vst [vmem:[#allocation10 + $0x1] sm:$0x1] %v6890_v32 }
0x23c3   :  { %8605 = shalt.err (!%p8602_p10)
}
0x23c4   :  { %s8634_s20 = smov 16   ;;  %s8635_s21 = smov 1  }
0x23c5   :  { %6904 = dma.vmem_to_hbm [thread:$0]  %s6899_s9, 32, %s9306_s10, [#allocation4], %s8634_s20, %s8634_s20, %s8635_s21  }
0x23c6   :  { %8620 = dma.done.wait [#allocation4], 32  }
0x23c7   :  { %8621 = vsyncadd [#allocation4], 4294967264 }
0x23c8   :  { %6908 = vsyncpa [#allocation3], 1 }
0x23c9   :  { %6909 = vsyncpa [#allocation6], 1 }
0x23ca   :  { %6910 = vsyncpa [#allocation9], 1 }
0x23cb   :  { %6911 = vsyncpa [#allocation4], 1 }

</bundles_post_ra>
